<compile_context>
chip_gen: v7x
topology: tpu7x:2x2x1
jax: 0.10.0
libtpu: 0.0.40
codegen_flags: <defaults>
</compile_context>

<pallas_src>
import jax
import jax.numpy as jnp
from jax import lax
from jax.experimental import pallas as pl
from jax.experimental.pallas import tpu as pltpu


GATE_PAD = 128  # per-gate lane-block width (vreg lane count) -> aligned slices


# ----------------------------- Pallas kernel -------------------------------

def lstm_fc_kernel(x_ref, wih_ref, whh_ref, b_ref, fcw_ref, fcb_ref, out_ref):
    # x_ref   : (B, T*I)     raw input, row t*I:(t+1)*I holds timestep t
    # wih_ref : (I, 4*HP)    input->gate weights, gate g in lanes [g*HP, g*HP+H)
    # whh_ref : (HP, 4*HP)   hidden->gate weights, zero-padded rows/cols
    # b_ref   : (1, 4*HP)    b_ih + b_hh, zero-padded
    # fcw_ref : (1, HP)      final linear weight row, zero-padded
    # fcb_ref : (1, 1)       final linear bias (SMEM scalar)
    # out_ref : (1, B)       lane-dense output row
    batch = x_ref.shape[0]
    isize = wih_ref.shape[0]
    seq = x_ref.shape[1] // isize
    hp = whh_ref.shape[0]                 # padded per-gate width (128)

    # Loop-invariant loads, hoisted out of the recurrence.
    wih = wih_ref[...]                    # (I, 4*HP)
    whh = whh_ref[...]                    # (HP, 4*HP)
    bias = b_ref[...]                     # (1, 4*HP)
    fc_row = fcw_ref[...]                 # (1, HP)

    def sigmoid(z):
        # Exact identity sigmoid(z) = 0.5*(tanh(z/2)+1): single EUP op per
        # element instead of exp + reciprocal on the serialized EUP.
        return 0.5 * (jnp.tanh(0.5 * z) + 1.0)

    h = jnp.zeros((batch, hp), jnp.float32)
    c = jnp.zeros((batch, hp), jnp.float32)

    # T is a tiny static trip count: fully unroll so the scheduler can overlap
    # the (h-independent) x-projection pushes with the recurrent chain.
    for t in range(seq):
        x_t = x_ref[:, t * isize:(t + 1) * isize]               # (B, I)
        # Non-recurrent part grouped first so it can be issued early.
        xg_t = jnp.dot(x_t, wih, preferred_element_type=jnp.float32) + bias
        gates = xg_t + jnp.dot(h, whh,
                               preferred_element_type=jnp.float32)  # (B, 4*HP)
        # Gate slices are 128-lane aligned -> pure vreg views, no rotations.
        i_g = sigmoid(gates[:, 0 * hp:1 * hp])
        f_g = sigmoid(gates[:, 1 * hp:2 * hp])
        g_g = jnp.tanh(gates[:, 2 * hp:3 * hp])
        o_g = sigmoid(gates[:, 3 * hp:4 * hp])
        c = f_g * c + i_g * g_g
        h = o_g * jnp.tanh(c)

    # Final Linear(H, 1): contract fc_row with h over the hidden lanes,
    # producing a lane-dense (1, B) row (single store) + scalar bias from SMEM.
    fc_out = lax.dot_general(fc_row, h,
                             dimension_numbers=(((1,), (1,)), ((), ())),
                             preferred_element_type=jnp.float32)   # (1, B)
    out_ref[...] = fc_out + fcb_ref[0, 0]


# ------------------------------- wrapper ------------------------------------

@jax.jit
def lstm_model_forward(x, params):
    """x: (B, T, I) float32, batch_first like the PyTorch module."""
    B, T, I = x.shape

    # Free bitcast under jit: (B, T, I) row-major == (B, T*I) row-major, so the
    # kernel consumes a dense 2-D slab and slices each timestep on lanes.
    x2 = x.reshape(B, T * I)

    vmem = pl.BlockSpec(memory_space=pltpu.MemorySpace.VMEM)
    smem = pl.BlockSpec(memory_space=pltpu.MemorySpace.SMEM)

    out_row = pl.pallas_call(
        lstm_fc_kernel,
        out_shape=jax.ShapeDtypeStruct((1, B), jnp.float32),
        in_specs=[vmem, vmem, vmem, vmem, vmem, smem],
        out_specs=vmem,
    )(x2, params["w_ih"], params["w_hh"], params["b"],
      params["fc_w"], params["fc_b"])

    return out_row.reshape(B, 1)


# ------------------------- parameter construction ---------------------------

def make_params(key, input_size, hidden_size, output_size=1, gate_pad=GATE_PAD):
    """Deterministic init mirroring PyTorch shapes: uniform(-1/sqrt(H), 1/sqrt(H))."""
    H = hidden_size
    k = 1.0 / jnp.sqrt(jnp.float32(H))
    ks = jax.random.split(key, 6)
    u = lambda kk, shape: jax.random.uniform(kk, shape, jnp.float32, -k, k)

    w_ih = u(ks[0], (4 * H, input_size))   # PyTorch weight_ih_l0  (gates i,f,g,o)
    w_hh = u(ks[1], (4 * H, H))            # PyTorch weight_hh_l0
    b_ih = u(ks[2], (4 * H,))
    b_hh = u(ks[3], (4 * H,))
    fc_w = u(ks[4], (output_size, H))      # PyTorch Linear weight
    fc_b = u(ks[5], (output_size,))

    # Lane-aligned repack: each gate gets its own gate_pad-wide lane block.
    # All padding is zero so padded h/c lanes stay exactly 0 through the
    # recurrence and contribute nothing to the final FC.
    GP = gate_pad
    w_ih_k = jnp.zeros((input_size, 4 * GP), jnp.float32)
    w_hh_k = jnp.zeros((GP, 4 * GP), jnp.float32)
    b_k = jnp.zeros((1, 4 * GP), jnp.float32)
    for g in range(4):
        w_ih_k = w_ih_k.at[:, g * GP:g * GP + H].set(w_ih[g * H:(g + 1) * H, :].T)
        w_hh_k = w_hh_k.at[:H, g * GP:g * GP + H].set(w_hh[g * H:(g + 1) * H, :].T)
        b_k = b_k.at[0, g * GP:g * GP + H].set(b_ih[g * H:(g + 1) * H]
                                               + b_hh[g * H:(g + 1) * H])
    fc_w_k = jnp.zeros((output_size, GP), jnp.float32).at[:, :H].set(fc_w)
    fc_b_k = fc_b.reshape(1, output_size)          # (1, 1) SMEM scalar

    raw = dict(w_ih=w_ih, w_hh=w_hh, b_ih=b_ih, b_hh=b_hh, fc_w=fc_w, fc_b=fc_b)
    packed = dict(w_ih=w_ih_k, w_hh=w_hh_k, b=b_k, fc_w=fc_w_k, fc_b=fc_b_k)
    return raw, packed


# --------------------------- pure-JAX reference ------------------------------

def reference_forward(x, raw):
    B, T, I = x.shape
    H = raw["w_hh"].shape[1]
    w_ih, w_hh = raw["w_ih"], raw["w_hh"]
    b = raw["b_ih"] + raw["b_hh"]

    def cell(carry, x_t):
        h, c = carry
        gates = x_t @ w_ih.T + h @ w_hh.T + b
        i = jax.nn.sigmoid(gates[:, 0:H])
        f = jax.nn.sigmoid(gates[:, H:2 * H])
        g = jnp.tanh(gates[:, 2 * H:3 * H])
        o = jax.nn.sigmoid(gates[:, 3 * H:4 * H])
        c = f * c + i * g
        h = o * jnp.tanh(c)
        return (h, c), None

    h0 = jnp.zeros((B, H), jnp.float32)
    (h_last, _), _ = lax.scan(cell, (h0, h0), jnp.transpose(x, (1, 0, 2)))
    return h_last @ raw["fc_w"].T + raw["fc_b"]


# --------------------------------- main --------------------------------------

if __name__ == "__main__":
    # Shapes implied by the module: hidden_cell = zeros(1, 64, hidden) -> batch=64,
    # hidden_layers=12, output_size=1.  Pick input_size=4, seq_len=8.
    BATCH, SEQ, INPUT, HIDDEN, OUT = 64, 8, 4, 12, 1

    key = jax.random.PRNGKey(0)
    k_x, k_p = jax.random.split(key)
    x = jax.random.normal(k_x, (BATCH, SEQ, INPUT), jnp.float32)

    raw_params, packed_params = make_params(k_p, INPUT, HIDDEN, OUT)

    y = lstm_model_forward(x, packed_params)
    y = jax.block_until_ready(y)

    y_ref = reference_forward(x, raw_params)
    assert y.shape == (BATCH, OUT)
    assert jnp.allclose(y, y_ref, atol=1e-4, rtol=1e-4), "mismatch vs reference"

    print("KERNEL_OK")
</pallas_src>

<mosaic_0001>
module attributes {stable_mosaic.version = 11 : i64} {
  func.func @lstm_fc_kernel(%arg0: memref<64x32xf32, #tpu.memory_space<vmem>>, %arg1: memref<4x512xf32, #tpu.memory_space<vmem>>, %arg2: memref<128x512xf32, #tpu.memory_space<vmem>>, %arg3: memref<1x512xf32, #tpu.memory_space<vmem>>, %arg4: memref<1x128xf32, #tpu.memory_space<vmem>>, %arg5: memref<1x1xf32, #tpu.memory_space<smem>>, %arg6: memref<1x64xf32, #tpu.memory_space<vmem>>) attributes {dimension_semantics = [], scalar_prefetch = 0 : i64, scratch_operands = 0 : i64, tpu.core_type = #tpu.core_type<tc>} {
    %c0 = arith.constant 0 : index
    %c0_0 = arith.constant 0 : index
    %0 = vector.load %arg1[%c0, %c0_0] : memref<4x512xf32, #tpu.memory_space<vmem>>, vector<4x512xf32>
    %c0_1 = arith.constant 0 : index
    %c0_2 = arith.constant 0 : index
    %1 = vector.load %arg2[%c0_1, %c0_2] : memref<128x512xf32, #tpu.memory_space<vmem>>, vector<128x512xf32>
    %c0_3 = arith.constant 0 : index
    %c0_4 = arith.constant 0 : index
    %2 = vector.load %arg3[%c0_3, %c0_4] : memref<1x512xf32, #tpu.memory_space<vmem>>, vector<1x512xf32>
    %c0_5 = arith.constant 0 : index
    %c0_6 = arith.constant 0 : index
    %3 = vector.load %arg4[%c0_5, %c0_6] : memref<1x128xf32, #tpu.memory_space<vmem>>, vector<1x128xf32>
    %cst = arith.constant 0.000000e+00 : f32
    %4 = vector.broadcast %cst : f32 to vector<64x128xf32>
    %cst_7 = arith.constant 0.000000e+00 : f32
    %5 = vector.broadcast %cst_7 : f32 to vector<64x128xf32>
    %c0_8 = arith.constant 0 : index
    %c0_9 = arith.constant 0 : index
    %6 = vector.load %arg0[%c0_8, %c0_9] : memref<64x32xf32, #tpu.memory_space<vmem>>, vector<64x4xf32>
    %cst_10 = arith.constant dense<0.000000e+00> : vector<64x512xf32>
    %7 = tpu.matmul %6, %0, %cst_10 {dimension_numbers = #tpu.dot_dimension_numbers<[1], [0], [0], [1], [0, 0, 1, 1], [], []>} : vector<64x4xf32>, vector<4x512xf32>, vector<64x512xf32> -> vector<64x512xf32>
    %8 = vector.broadcast %2 : vector<1x512xf32> to vector<64x512xf32>
    %9 = arith.addf %7, %8 : vector<64x512xf32>
    %cst_11 = arith.constant dense<0.000000e+00> : vector<64x512xf32>
    %10 = tpu.matmul %4, %1, %cst_11 {dimension_numbers = #tpu.dot_dimension_numbers<[1], [0], [0], [1], [0, 0, 1, 1], [], []>} : vector<64x128xf32>, vector<128x512xf32>, vector<64x512xf32> -> vector<64x512xf32>
    %11 = arith.addf %9, %10 : vector<64x512xf32>
    %12 = vector.extract_strided_slice %11 {offsets = [0, 0], sizes = [64, 128], strides = [1, 1]} : vector<64x512xf32> to vector<64x128xf32>
    %cst_12 = arith.constant 5.000000e-01 : f32
    %13 = vector.broadcast %cst_12 : f32 to vector<64x128xf32>
    %14 = arith.mulf %13, %12 : vector<64x128xf32>
    %15 = math.tanh %14 : vector<64x128xf32>
    %cst_13 = arith.constant 1.000000e+00 : f32
    %16 = vector.broadcast %cst_13 : f32 to vector<64x128xf32>
    %17 = arith.addf %15, %16 : vector<64x128xf32>
    %cst_14 = arith.constant 5.000000e-01 : f32
    %18 = vector.broadcast %cst_14 : f32 to vector<64x128xf32>
    %19 = arith.mulf %18, %17 : vector<64x128xf32>
    %20 = vector.extract_strided_slice %11 {offsets = [0, 128], sizes = [64, 128], strides = [1, 1]} : vector<64x512xf32> to vector<64x128xf32>
    %cst_15 = arith.constant 5.000000e-01 : f32
    %21 = vector.broadcast %cst_15 : f32 to vector<64x128xf32>
    %22 = arith.mulf %21, %20 : vector<64x128xf32>
    %23 = math.tanh %22 : vector<64x128xf32>
    %cst_16 = arith.constant 1.000000e+00 : f32
    %24 = vector.broadcast %cst_16 : f32 to vector<64x128xf32>
    %25 = arith.addf %23, %24 : vector<64x128xf32>
    %cst_17 = arith.constant 5.000000e-01 : f32
    %26 = vector.broadcast %cst_17 : f32 to vector<64x128xf32>
    %27 = arith.mulf %26, %25 : vector<64x128xf32>
    %28 = vector.extract_strided_slice %11 {offsets = [0, 256], sizes = [64, 128], strides = [1, 1]} : vector<64x512xf32> to vector<64x128xf32>
    %29 = math.tanh %28 : vector<64x128xf32>
    %30 = vector.extract_strided_slice %11 {offsets = [0, 384], sizes = [64, 128], strides = [1, 1]} : vector<64x512xf32> to vector<64x128xf32>
    %cst_18 = arith.constant 5.000000e-01 : f32
    %31 = vector.broadcast %cst_18 : f32 to vector<64x128xf32>
    %32 = arith.mulf %31, %30 : vector<64x128xf32>
    %33 = math.tanh %32 : vector<64x128xf32>
    %cst_19 = arith.constant 1.000000e+00 : f32
    %34 = vector.broadcast %cst_19 : f32 to vector<64x128xf32>
    %35 = arith.addf %33, %34 : vector<64x128xf32>
    %cst_20 = arith.constant 5.000000e-01 : f32
    %36 = vector.broadcast %cst_20 : f32 to vector<64x128xf32>
    %37 = arith.mulf %36, %35 : vector<64x128xf32>
    %38 = arith.mulf %27, %5 : vector<64x128xf32>
    %39 = arith.mulf %19, %29 : vector<64x128xf32>
    %40 = arith.addf %38, %39 : vector<64x128xf32>
    %41 = math.tanh %40 : vector<64x128xf32>
    %42 = arith.mulf %37, %41 : vector<64x128xf32>
    %c0_21 = arith.constant 0 : index
    %c4 = arith.constant 4 : index
    %43 = vector.load %arg0[%c0_21, %c4] : memref<64x32xf32, #tpu.memory_space<vmem>>, vector<64x4xf32>
    %cst_22 = arith.constant dense<0.000000e+00> : vector<64x512xf32>
    %44 = tpu.matmul %43, %0, %cst_22 {dimension_numbers = #tpu.dot_dimension_numbers<[1], [0], [0], [1], [0, 0, 1, 1], [], []>} : vector<64x4xf32>, vector<4x512xf32>, vector<64x512xf32> -> vector<64x512xf32>
    %45 = vector.broadcast %2 : vector<1x512xf32> to vector<64x512xf32>
    %46 = arith.addf %44, %45 : vector<64x512xf32>
    %cst_23 = arith.constant dense<0.000000e+00> : vector<64x512xf32>
    %47 = tpu.matmul %42, %1, %cst_23 {dimension_numbers = #tpu.dot_dimension_numbers<[1], [0], [0], [1], [0, 0, 1, 1], [], []>} : vector<64x128xf32>, vector<128x512xf32>, vector<64x512xf32> -> vector<64x512xf32>
    %48 = arith.addf %46, %47 : vector<64x512xf32>
    %49 = vector.extract_strided_slice %48 {offsets = [0, 0], sizes = [64, 128], strides = [1, 1]} : vector<64x512xf32> to vector<64x128xf32>
    %cst_24 = arith.constant 5.000000e-01 : f32
    %50 = vector.broadcast %cst_24 : f32 to vector<64x128xf32>
    %51 = arith.mulf %50, %49 : vector<64x128xf32>
    %52 = math.tanh %51 : vector<64x128xf32>
    %cst_25 = arith.constant 1.000000e+00 : f32
    %53 = vector.broadcast %cst_25 : f32 to vector<64x128xf32>
    %54 = arith.addf %52, %53 : vector<64x128xf32>
    %cst_26 = arith.constant 5.000000e-01 : f32
    %55 = vector.broadcast %cst_26 : f32 to vector<64x128xf32>
    %56 = arith.mulf %55, %54 : vector<64x128xf32>
    %57 = vector.extract_strided_slice %48 {offsets = [0, 128], sizes = [64, 128], strides = [1, 1]} : vector<64x512xf32> to vector<64x128xf32>
    %cst_27 = arith.constant 5.000000e-01 : f32
    %58 = vector.broadcast %cst_27 : f32 to vector<64x128xf32>
    %59 = arith.mulf %58, %57 : vector<64x128xf32>
    %60 = math.tanh %59 : vector<64x128xf32>
    %cst_28 = arith.constant 1.000000e+00 : f32
    %61 = vector.broadcast %cst_28 : f32 to vector<64x128xf32>
    %62 = arith.addf %60, %61 : vector<64x128xf32>
    %cst_29 = arith.constant 5.000000e-01 : f32
    %63 = vector.broadcast %cst_29 : f32 to vector<64x128xf32>
    %64 = arith.mulf %63, %62 : vector<64x128xf32>
    %65 = vector.extract_strided_slice %48 {offsets = [0, 256], sizes = [64, 128], strides = [1, 1]} : vector<64x512xf32> to vector<64x128xf32>
    %66 = math.tanh %65 : vector<64x128xf32>
    %67 = vector.extract_strided_slice %48 {offsets = [0, 384], sizes = [64, 128], strides = [1, 1]} : vector<64x512xf32> to vector<64x128xf32>
    %cst_30 = arith.constant 5.000000e-01 : f32
    %68 = vector.broadcast %cst_30 : f32 to vector<64x128xf32>
    %69 = arith.mulf %68, %67 : vector<64x128xf32>
    %70 = math.tanh %69 : vector<64x128xf32>
    %cst_31 = arith.constant 1.000000e+00 : f32
    %71 = vector.broadcast %cst_31 : f32 to vector<64x128xf32>
    %72 = arith.addf %70, %71 : vector<64x128xf32>
    %cst_32 = arith.constant 5.000000e-01 : f32
    %73 = vector.broadcast %cst_32 : f32 to vector<64x128xf32>
    %74 = arith.mulf %73, %72 : vector<64x128xf32>
    %75 = arith.mulf %64, %40 : vector<64x128xf32>
    %76 = arith.mulf %56, %66 : vector<64x128xf32>
    %77 = arith.addf %75, %76 : vector<64x128xf32>
    %78 = math.tanh %77 : vector<64x128xf32>
    %79 = arith.mulf %74, %78 : vector<64x128xf32>
    %c0_33 = arith.constant 0 : index
    %c8 = arith.constant 8 : index
    %80 = vector.load %arg0[%c0_33, %c8] : memref<64x32xf32, #tpu.memory_space<vmem>>, vector<64x4xf32>
    %cst_34 = arith.constant dense<0.000000e+00> : vector<64x512xf32>
    %81 = tpu.matmul %80, %0, %cst_34 {dimension_numbers = #tpu.dot_dimension_numbers<[1], [0], [0], [1], [0, 0, 1, 1], [], []>} : vector<64x4xf32>, vector<4x512xf32>, vector<64x512xf32> -> vector<64x512xf32>
    %82 = vector.broadcast %2 : vector<1x512xf32> to vector<64x512xf32>
    %83 = arith.addf %81, %82 : vector<64x512xf32>
    %cst_35 = arith.constant dense<0.000000e+00> : vector<64x512xf32>
    %84 = tpu.matmul %79, %1, %cst_35 {dimension_numbers = #tpu.dot_dimension_numbers<[1], [0], [0], [1], [0, 0, 1, 1], [], []>} : vector<64x128xf32>, vector<128x512xf32>, vector<64x512xf32> -> vector<64x512xf32>
    %85 = arith.addf %83, %84 : vector<64x512xf32>
    %86 = vector.extract_strided_slice %85 {offsets = [0, 0], sizes = [64, 128], strides = [1, 1]} : vector<64x512xf32> to vector<64x128xf32>
    %cst_36 = arith.constant 5.000000e-01 : f32
    %87 = vector.broadcast %cst_36 : f32 to vector<64x128xf32>
    %88 = arith.mulf %87, %86 : vector<64x128xf32>
    %89 = math.tanh %88 : vector<64x128xf32>
    %cst_37 = arith.constant 1.000000e+00 : f32
    %90 = vector.broadcast %cst_37 : f32 to vector<64x128xf32>
    %91 = arith.addf %89, %90 : vector<64x128xf32>
    %cst_38 = arith.constant 5.000000e-01 : f32
    %92 = vector.broadcast %cst_38 : f32 to vector<64x128xf32>
    %93 = arith.mulf %92, %91 : vector<64x128xf32>
    %94 = vector.extract_strided_slice %85 {offsets = [0, 128], sizes = [64, 128], strides = [1, 1]} : vector<64x512xf32> to vector<64x128xf32>
    %cst_39 = arith.constant 5.000000e-01 : f32
    %95 = vector.broadcast %cst_39 : f32 to vector<64x128xf32>
    %96 = arith.mulf %95, %94 : vector<64x128xf32>
    %97 = math.tanh %96 : vector<64x128xf32>
    %cst_40 = arith.constant 1.000000e+00 : f32
    %98 = vector.broadcast %cst_40 : f32 to vector<64x128xf32>
    %99 = arith.addf %97, %98 : vector<64x128xf32>
    %cst_41 = arith.constant 5.000000e-01 : f32
    %100 = vector.broadcast %cst_41 : f32 to vector<64x128xf32>
    %101 = arith.mulf %100, %99 : vector<64x128xf32>
    %102 = vector.extract_strided_slice %85 {offsets = [0, 256], sizes = [64, 128], strides = [1, 1]} : vector<64x512xf32> to vector<64x128xf32>
    %103 = math.tanh %102 : vector<64x128xf32>
    %104 = vector.extract_strided_slice %85 {offsets = [0, 384], sizes = [64, 128], strides = [1, 1]} : vector<64x512xf32> to vector<64x128xf32>
    %cst_42 = arith.constant 5.000000e-01 : f32
    %105 = vector.broadcast %cst_42 : f32 to vector<64x128xf32>
    %106 = arith.mulf %105, %104 : vector<64x128xf32>
    %107 = math.tanh %106 : vector<64x128xf32>
    %cst_43 = arith.constant 1.000000e+00 : f32
    %108 = vector.broadcast %cst_43 : f32 to vector<64x128xf32>
    %109 = arith.addf %107, %108 : vector<64x128xf32>
    %cst_44 = arith.constant 5.000000e-01 : f32
    %110 = vector.broadcast %cst_44 : f32 to vector<64x128xf32>
    %111 = arith.mulf %110, %109 : vector<64x128xf32>
    %112 = arith.mulf %101, %77 : vector<64x128xf32>
    %113 = arith.mulf %93, %103 : vector<64x128xf32>
    %114 = arith.addf %112, %113 : vector<64x128xf32>
    %115 = math.tanh %114 : vector<64x128xf32>
    %116 = arith.mulf %111, %115 : vector<64x128xf32>
    %c0_45 = arith.constant 0 : index
    %c12 = arith.constant 12 : index
    %117 = vector.load %arg0[%c0_45, %c12] : memref<64x32xf32, #tpu.memory_space<vmem>>, vector<64x4xf32>
    %cst_46 = arith.constant dense<0.000000e+00> : vector<64x512xf32>
    %118 = tpu.matmul %117, %0, %cst_46 {dimension_numbers = #tpu.dot_dimension_numbers<[1], [0], [0], [1], [0, 0, 1, 1], [], []>} : vector<64x4xf32>, vector<4x512xf32>, vector<64x512xf32> -> vector<64x512xf32>
    %119 = vector.broadcast %2 : vector<1x512xf32> to vector<64x512xf32>
    %120 = arith.addf %118, %119 : vector<64x512xf32>
    %cst_47 = arith.constant dense<0.000000e+00> : vector<64x512xf32>
    %121 = tpu.matmul %116, %1, %cst_47 {dimension_numbers = #tpu.dot_dimension_numbers<[1], [0], [0], [1], [0, 0, 1, 1], [], []>} : vector<64x128xf32>, vector<128x512xf32>, vector<64x512xf32> -> vector<64x512xf32>
    %122 = arith.addf %120, %121 : vector<64x512xf32>
    %123 = vector.extract_strided_slice %122 {offsets = [0, 0], sizes = [64, 128], strides = [1, 1]} : vector<64x512xf32> to vector<64x128xf32>
    %cst_48 = arith.constant 5.000000e-01 : f32
    %124 = vector.broadcast %cst_48 : f32 to vector<64x128xf32>
    %125 = arith.mulf %124, %123 : vector<64x128xf32>
    %126 = math.tanh %125 : vector<64x128xf32>
    %cst_49 = arith.constant 1.000000e+00 : f32
    %127 = vector.broadcast %cst_49 : f32 to vector<64x128xf32>
    %128 = arith.addf %126, %127 : vector<64x128xf32>
    %cst_50 = arith.constant 5.000000e-01 : f32
    %129 = vector.broadcast %cst_50 : f32 to vector<64x128xf32>
    %130 = arith.mulf %129, %128 : vector<64x128xf32>
    %131 = vector.extract_strided_slice %122 {offsets = [0, 128], sizes = [64, 128], strides = [1, 1]} : vector<64x512xf32> to vector<64x128xf32>
    %cst_51 = arith.constant 5.000000e-01 : f32
    %132 = vector.broadcast %cst_51 : f32 to vector<64x128xf32>
    %133 = arith.mulf %132, %131 : vector<64x128xf32>
    %134 = math.tanh %133 : vector<64x128xf32>
    %cst_52 = arith.constant 1.000000e+00 : f32
    %135 = vector.broadcast %cst_52 : f32 to vector<64x128xf32>
    %136 = arith.addf %134, %135 : vector<64x128xf32>
    %cst_53 = arith.constant 5.000000e-01 : f32
    %137 = vector.broadcast %cst_53 : f32 to vector<64x128xf32>
    %138 = arith.mulf %137, %136 : vector<64x128xf32>
    %139 = vector.extract_strided_slice %122 {offsets = [0, 256], sizes = [64, 128], strides = [1, 1]} : vector<64x512xf32> to vector<64x128xf32>
    %140 = math.tanh %139 : vector<64x128xf32>
    %141 = vector.extract_strided_slice %122 {offsets = [0, 384], sizes = [64, 128], strides = [1, 1]} : vector<64x512xf32> to vector<64x128xf32>
    %cst_54 = arith.constant 5.000000e-01 : f32
    %142 = vector.broadcast %cst_54 : f32 to vector<64x128xf32>
    %143 = arith.mulf %142, %141 : vector<64x128xf32>
    %144 = math.tanh %143 : vector<64x128xf32>
    %cst_55 = arith.constant 1.000000e+00 : f32
    %145 = vector.broadcast %cst_55 : f32 to vector<64x128xf32>
    %146 = arith.addf %144, %145 : vector<64x128xf32>
    %cst_56 = arith.constant 5.000000e-01 : f32
    %147 = vector.broadcast %cst_56 : f32 to vector<64x128xf32>
    %148 = arith.mulf %147, %146 : vector<64x128xf32>
    %149 = arith.mulf %138, %114 : vector<64x128xf32>
    %150 = arith.mulf %130, %140 : vector<64x128xf32>
    %151 = arith.addf %149, %150 : vector<64x128xf32>
    %152 = math.tanh %151 : vector<64x128xf32>
    %153 = arith.mulf %148, %152 : vector<64x128xf32>
    %c0_57 = arith.constant 0 : index
    %c16 = arith.constant 16 : index
    %154 = vector.load %arg0[%c0_57, %c16] : memref<64x32xf32, #tpu.memory_space<vmem>>, vector<64x4xf32>
    %cst_58 = arith.constant dense<0.000000e+00> : vector<64x512xf32>
    %155 = tpu.matmul %154, %0, %cst_58 {dimension_numbers = #tpu.dot_dimension_numbers<[1], [0], [0], [1], [0, 0, 1, 1], [], []>} : vector<64x4xf32>, vector<4x512xf32>, vector<64x512xf32> -> vector<64x512xf32>
    %156 = vector.broadcast %2 : vector<1x512xf32> to vector<64x512xf32>
    %157 = arith.addf %155, %156 : vector<64x512xf32>
    %cst_59 = arith.constant dense<0.000000e+00> : vector<64x512xf32>
    %158 = tpu.matmul %153, %1, %cst_59 {dimension_numbers = #tpu.dot_dimension_numbers<[1], [0], [0], [1], [0, 0, 1, 1], [], []>} : vector<64x128xf32>, vector<128x512xf32>, vector<64x512xf32> -> vector<64x512xf32>
    %159 = arith.addf %157, %158 : vector<64x512xf32>
    %160 = vector.extract_strided_slice %159 {offsets = [0, 0], sizes = [64, 128], strides = [1, 1]} : vector<64x512xf32> to vector<64x128xf32>
    %cst_60 = arith.constant 5.000000e-01 : f32
    %161 = vector.broadcast %cst_60 : f32 to vector<64x128xf32>
    %162 = arith.mulf %161, %160 : vector<64x128xf32>
    %163 = math.tanh %162 : vector<64x128xf32>
    %cst_61 = arith.constant 1.000000e+00 : f32
    %164 = vector.broadcast %cst_61 : f32 to vector<64x128xf32>
    %165 = arith.addf %163, %164 : vector<64x128xf32>
    %cst_62 = arith.constant 5.000000e-01 : f32
    %166 = vector.broadcast %cst_62 : f32 to vector<64x128xf32>
    %167 = arith.mulf %166, %165 : vector<64x128xf32>
    %168 = vector.extract_strided_slice %159 {offsets = [0, 128], sizes = [64, 128], strides = [1, 1]} : vector<64x512xf32> to vector<64x128xf32>
    %cst_63 = arith.constant 5.000000e-01 : f32
    %169 = vector.broadcast %cst_63 : f32 to vector<64x128xf32>
    %170 = arith.mulf %169, %168 : vector<64x128xf32>
    %171 = math.tanh %170 : vector<64x128xf32>
    %cst_64 = arith.constant 1.000000e+00 : f32
    %172 = vector.broadcast %cst_64 : f32 to vector<64x128xf32>
    %173 = arith.addf %171, %172 : vector<64x128xf32>
    %cst_65 = arith.constant 5.000000e-01 : f32
    %174 = vector.broadcast %cst_65 : f32 to vector<64x128xf32>
    %175 = arith.mulf %174, %173 : vector<64x128xf32>
    %176 = vector.extract_strided_slice %159 {offsets = [0, 256], sizes = [64, 128], strides = [1, 1]} : vector<64x512xf32> to vector<64x128xf32>
    %177 = math.tanh %176 : vector<64x128xf32>
    %178 = vector.extract_strided_slice %159 {offsets = [0, 384], sizes = [64, 128], strides = [1, 1]} : vector<64x512xf32> to vector<64x128xf32>
    %cst_66 = arith.constant 5.000000e-01 : f32
    %179 = vector.broadcast %cst_66 : f32 to vector<64x128xf32>
    %180 = arith.mulf %179, %178 : vector<64x128xf32>
    %181 = math.tanh %180 : vector<64x128xf32>
    %cst_67 = arith.constant 1.000000e+00 : f32
    %182 = vector.broadcast %cst_67 : f32 to vector<64x128xf32>
    %183 = arith.addf %181, %182 : vector<64x128xf32>
    %cst_68 = arith.constant 5.000000e-01 : f32
    %184 = vector.broadcast %cst_68 : f32 to vector<64x128xf32>
    %185 = arith.mulf %184, %183 : vector<64x128xf32>
    %186 = arith.mulf %175, %151 : vector<64x128xf32>
    %187 = arith.mulf %167, %177 : vector<64x128xf32>
    %188 = arith.addf %186, %187 : vector<64x128xf32>
    %189 = math.tanh %188 : vector<64x128xf32>
    %190 = arith.mulf %185, %189 : vector<64x128xf32>
    %c0_69 = arith.constant 0 : index
    %c20 = arith.constant 20 : index
    %191 = vector.load %arg0[%c0_69, %c20] : memref<64x32xf32, #tpu.memory_space<vmem>>, vector<64x4xf32>
    %cst_70 = arith.constant dense<0.000000e+00> : vector<64x512xf32>
    %192 = tpu.matmul %191, %0, %cst_70 {dimension_numbers = #tpu.dot_dimension_numbers<[1], [0], [0], [1], [0, 0, 1, 1], [], []>} : vector<64x4xf32>, vector<4x512xf32>, vector<64x512xf32> -> vector<64x512xf32>
    %193 = vector.broadcast %2 : vector<1x512xf32> to vector<64x512xf32>
    %194 = arith.addf %192, %193 : vector<64x512xf32>
    %cst_71 = arith.constant dense<0.000000e+00> : vector<64x512xf32>
    %195 = tpu.matmul %190, %1, %cst_71 {dimension_numbers = #tpu.dot_dimension_numbers<[1], [0], [0], [1], [0, 0, 1, 1], [], []>} : vector<64x128xf32>, vector<128x512xf32>, vector<64x512xf32> -> vector<64x512xf32>
    %196 = arith.addf %194, %195 : vector<64x512xf32>
    %197 = vector.extract_strided_slice %196 {offsets = [0, 0], sizes = [64, 128], strides = [1, 1]} : vector<64x512xf32> to vector<64x128xf32>
    %cst_72 = arith.constant 5.000000e-01 : f32
    %198 = vector.broadcast %cst_72 : f32 to vector<64x128xf32>
    %199 = arith.mulf %198, %197 : vector<64x128xf32>
    %200 = math.tanh %199 : vector<64x128xf32>
    %cst_73 = arith.constant 1.000000e+00 : f32
    %201 = vector.broadcast %cst_73 : f32 to vector<64x128xf32>
    %202 = arith.addf %200, %201 : vector<64x128xf32>
    %cst_74 = arith.constant 5.000000e-01 : f32
    %203 = vector.broadcast %cst_74 : f32 to vector<64x128xf32>
    %204 = arith.mulf %203, %202 : vector<64x128xf32>
    %205 = vector.extract_strided_slice %196 {offsets = [0, 128], sizes = [64, 128], strides = [1, 1]} : vector<64x512xf32> to vector<64x128xf32>
    %cst_75 = arith.constant 5.000000e-01 : f32
    %206 = vector.broadcast %cst_75 : f32 to vector<64x128xf32>
    %207 = arith.mulf %206, %205 : vector<64x128xf32>
    %208 = math.tanh %207 : vector<64x128xf32>
    %cst_76 = arith.constant 1.000000e+00 : f32
    %209 = vector.broadcast %cst_76 : f32 to vector<64x128xf32>
    %210 = arith.addf %208, %209 : vector<64x128xf32>
    %cst_77 = arith.constant 5.000000e-01 : f32
    %211 = vector.broadcast %cst_77 : f32 to vector<64x128xf32>
    %212 = arith.mulf %211, %210 : vector<64x128xf32>
    %213 = vector.extract_strided_slice %196 {offsets = [0, 256], sizes = [64, 128], strides = [1, 1]} : vector<64x512xf32> to vector<64x128xf32>
    %214 = math.tanh %213 : vector<64x128xf32>
    %215 = vector.extract_strided_slice %196 {offsets = [0, 384], sizes = [64, 128], strides = [1, 1]} : vector<64x512xf32> to vector<64x128xf32>
    %cst_78 = arith.constant 5.000000e-01 : f32
    %216 = vector.broadcast %cst_78 : f32 to vector<64x128xf32>
    %217 = arith.mulf %216, %215 : vector<64x128xf32>
    %218 = math.tanh %217 : vector<64x128xf32>
    %cst_79 = arith.constant 1.000000e+00 : f32
    %219 = vector.broadcast %cst_79 : f32 to vector<64x128xf32>
    %220 = arith.addf %218, %219 : vector<64x128xf32>
    %cst_80 = arith.constant 5.000000e-01 : f32
    %221 = vector.broadcast %cst_80 : f32 to vector<64x128xf32>
    %222 = arith.mulf %221, %220 : vector<64x128xf32>
    %223 = arith.mulf %212, %188 : vector<64x128xf32>
    %224 = arith.mulf %204, %214 : vector<64x128xf32>
    %225 = arith.addf %223, %224 : vector<64x128xf32>
    %226 = math.tanh %225 : vector<64x128xf32>
    %227 = arith.mulf %222, %226 : vector<64x128xf32>
    %c0_81 = arith.constant 0 : index
    %c24 = arith.constant 24 : index
    %228 = vector.load %arg0[%c0_81, %c24] : memref<64x32xf32, #tpu.memory_space<vmem>>, vector<64x4xf32>
    %cst_82 = arith.constant dense<0.000000e+00> : vector<64x512xf32>
    %229 = tpu.matmul %228, %0, %cst_82 {dimension_numbers = #tpu.dot_dimension_numbers<[1], [0], [0], [1], [0, 0, 1, 1], [], []>} : vector<64x4xf32>, vector<4x512xf32>, vector<64x512xf32> -> vector<64x512xf32>
    %230 = vector.broadcast %2 : vector<1x512xf32> to vector<64x512xf32>
    %231 = arith.addf %229, %230 : vector<64x512xf32>
    %cst_83 = arith.constant dense<0.000000e+00> : vector<64x512xf32>
    %232 = tpu.matmul %227, %1, %cst_83 {dimension_numbers = #tpu.dot_dimension_numbers<[1], [0], [0], [1], [0, 0, 1, 1], [], []>} : vector<64x128xf32>, vector<128x512xf32>, vector<64x512xf32> -> vector<64x512xf32>
    %233 = arith.addf %231, %232 : vector<64x512xf32>
    %234 = vector.extract_strided_slice %233 {offsets = [0, 0], sizes = [64, 128], strides = [1, 1]} : vector<64x512xf32> to vector<64x128xf32>
    %cst_84 = arith.constant 5.000000e-01 : f32
    %235 = vector.broadcast %cst_84 : f32 to vector<64x128xf32>
    %236 = arith.mulf %235, %234 : vector<64x128xf32>
    %237 = math.tanh %236 : vector<64x128xf32>
    %cst_85 = arith.constant 1.000000e+00 : f32
    %238 = vector.broadcast %cst_85 : f32 to vector<64x128xf32>
    %239 = arith.addf %237, %238 : vector<64x128xf32>
    %cst_86 = arith.constant 5.000000e-01 : f32
    %240 = vector.broadcast %cst_86 : f32 to vector<64x128xf32>
    %241 = arith.mulf %240, %239 : vector<64x128xf32>
    %242 = vector.extract_strided_slice %233 {offsets = [0, 128], sizes = [64, 128], strides = [1, 1]} : vector<64x512xf32> to vector<64x128xf32>
    %cst_87 = arith.constant 5.000000e-01 : f32
    %243 = vector.broadcast %cst_87 : f32 to vector<64x128xf32>
    %244 = arith.mulf %243, %242 : vector<64x128xf32>
    %245 = math.tanh %244 : vector<64x128xf32>
    %cst_88 = arith.constant 1.000000e+00 : f32
    %246 = vector.broadcast %cst_88 : f32 to vector<64x128xf32>
    %247 = arith.addf %245, %246 : vector<64x128xf32>
    %cst_89 = arith.constant 5.000000e-01 : f32
    %248 = vector.broadcast %cst_89 : f32 to vector<64x128xf32>
    %249 = arith.mulf %248, %247 : vector<64x128xf32>
    %250 = vector.extract_strided_slice %233 {offsets = [0, 256], sizes = [64, 128], strides = [1, 1]} : vector<64x512xf32> to vector<64x128xf32>
    %251 = math.tanh %250 : vector<64x128xf32>
    %252 = vector.extract_strided_slice %233 {offsets = [0, 384], sizes = [64, 128], strides = [1, 1]} : vector<64x512xf32> to vector<64x128xf32>
    %cst_90 = arith.constant 5.000000e-01 : f32
    %253 = vector.broadcast %cst_90 : f32 to vector<64x128xf32>
    %254 = arith.mulf %253, %252 : vector<64x128xf32>
    %255 = math.tanh %254 : vector<64x128xf32>
    %cst_91 = arith.constant 1.000000e+00 : f32
    %256 = vector.broadcast %cst_91 : f32 to vector<64x128xf32>
    %257 = arith.addf %255, %256 : vector<64x128xf32>
    %cst_92 = arith.constant 5.000000e-01 : f32
    %258 = vector.broadcast %cst_92 : f32 to vector<64x128xf32>
    %259 = arith.mulf %258, %257 : vector<64x128xf32>
    %260 = arith.mulf %249, %225 : vector<64x128xf32>
    %261 = arith.mulf %241, %251 : vector<64x128xf32>
    %262 = arith.addf %260, %261 : vector<64x128xf32>
    %263 = math.tanh %262 : vector<64x128xf32>
    %264 = arith.mulf %259, %263 : vector<64x128xf32>
    %c0_93 = arith.constant 0 : index
    %c28 = arith.constant 28 : index
    %265 = vector.load %arg0[%c0_93, %c28] : memref<64x32xf32, #tpu.memory_space<vmem>>, vector<64x4xf32>
    %cst_94 = arith.constant dense<0.000000e+00> : vector<64x512xf32>
    %266 = tpu.matmul %265, %0, %cst_94 {dimension_numbers = #tpu.dot_dimension_numbers<[1], [0], [0], [1], [0, 0, 1, 1], [], []>} : vector<64x4xf32>, vector<4x512xf32>, vector<64x512xf32> -> vector<64x512xf32>
    %267 = vector.broadcast %2 : vector<1x512xf32> to vector<64x512xf32>
    %268 = arith.addf %266, %267 : vector<64x512xf32>
    %cst_95 = arith.constant dense<0.000000e+00> : vector<64x512xf32>
    %269 = tpu.matmul %264, %1, %cst_95 {dimension_numbers = #tpu.dot_dimension_numbers<[1], [0], [0], [1], [0, 0, 1, 1], [], []>} : vector<64x128xf32>, vector<128x512xf32>, vector<64x512xf32> -> vector<64x512xf32>
    %270 = arith.addf %268, %269 : vector<64x512xf32>
    %271 = vector.extract_strided_slice %270 {offsets = [0, 0], sizes = [64, 128], strides = [1, 1]} : vector<64x512xf32> to vector<64x128xf32>
    %cst_96 = arith.constant 5.000000e-01 : f32
    %272 = vector.broadcast %cst_96 : f32 to vector<64x128xf32>
    %273 = arith.mulf %272, %271 : vector<64x128xf32>
    %274 = math.tanh %273 : vector<64x128xf32>
    %cst_97 = arith.constant 1.000000e+00 : f32
    %275 = vector.broadcast %cst_97 : f32 to vector<64x128xf32>
    %276 = arith.addf %274, %275 : vector<64x128xf32>
    %cst_98 = arith.constant 5.000000e-01 : f32
    %277 = vector.broadcast %cst_98 : f32 to vector<64x128xf32>
    %278 = arith.mulf %277, %276 : vector<64x128xf32>
    %279 = vector.extract_strided_slice %270 {offsets = [0, 128], sizes = [64, 128], strides = [1, 1]} : vector<64x512xf32> to vector<64x128xf32>
    %cst_99 = arith.constant 5.000000e-01 : f32
    %280 = vector.broadcast %cst_99 : f32 to vector<64x128xf32>
    %281 = arith.mulf %280, %279 : vector<64x128xf32>
    %282 = math.tanh %281 : vector<64x128xf32>
    %cst_100 = arith.constant 1.000000e+00 : f32
    %283 = vector.broadcast %cst_100 : f32 to vector<64x128xf32>
    %284 = arith.addf %282, %283 : vector<64x128xf32>
    %cst_101 = arith.constant 5.000000e-01 : f32
    %285 = vector.broadcast %cst_101 : f32 to vector<64x128xf32>
    %286 = arith.mulf %285, %284 : vector<64x128xf32>
    %287 = vector.extract_strided_slice %270 {offsets = [0, 256], sizes = [64, 128], strides = [1, 1]} : vector<64x512xf32> to vector<64x128xf32>
    %288 = math.tanh %287 : vector<64x128xf32>
    %289 = vector.extract_strided_slice %270 {offsets = [0, 384], sizes = [64, 128], strides = [1, 1]} : vector<64x512xf32> to vector<64x128xf32>
    %cst_102 = arith.constant 5.000000e-01 : f32
    %290 = vector.broadcast %cst_102 : f32 to vector<64x128xf32>
    %291 = arith.mulf %290, %289 : vector<64x128xf32>
    %292 = math.tanh %291 : vector<64x128xf32>
    %cst_103 = arith.constant 1.000000e+00 : f32
    %293 = vector.broadcast %cst_103 : f32 to vector<64x128xf32>
    %294 = arith.addf %292, %293 : vector<64x128xf32>
    %cst_104 = arith.constant 5.000000e-01 : f32
    %295 = vector.broadcast %cst_104 : f32 to vector<64x128xf32>
    %296 = arith.mulf %295, %294 : vector<64x128xf32>
    %297 = arith.mulf %286, %262 : vector<64x128xf32>
    %298 = arith.mulf %278, %288 : vector<64x128xf32>
    %299 = arith.addf %297, %298 : vector<64x128xf32>
    %300 = math.tanh %299 : vector<64x128xf32>
    %301 = arith.mulf %296, %300 : vector<64x128xf32>
    %cst_105 = arith.constant dense<0.000000e+00> : vector<1x64xf32>
    %302 = tpu.matmul %3, %301, %cst_105 {dimension_numbers = #tpu.dot_dimension_numbers<[1], [1], [0], [0], [0, 0, 1, 0], [], []>} : vector<1x128xf32>, vector<64x128xf32>, vector<1x64xf32> -> vector<1x64xf32>
    %c0_106 = arith.constant 0 : index
    %c0_107 = arith.constant 0 : index
    %303 = memref.load %arg5[%c0_106, %c0_107] : memref<1x1xf32, #tpu.memory_space<smem>>
    %304 = vector.broadcast %303 : f32 to vector<1x64xf32>
    %305 = arith.addf %302, %304 : vector<1x64xf32>
    %c0_108 = arith.constant 0 : index
    %c0_109 = arith.constant 0 : index
    %306 = vector.load %arg6[%c0_108, %c0_109] : memref<1x64xf32, #tpu.memory_space<vmem>>, vector<1x64xf32>
    tpu.vector_store %arg6[%c0_108, %c0_109], %305 {strides = array<i32>} : memref<1x64xf32, #tpu.memory_space<vmem>>, vector<1x64xf32>,
    return
  }
}

</mosaic_0001>

<bundles_post_ra>
// kernel: lstm_model_forward.1
= control target key start
LH: loop header
LB: loop body
LE: loop exit
PB: predicated region body
PF: predicated region fallthrough
CT: control target
= control target key end

     0   :  { %12 = vsyncpa [#allocation4], 0  ;;  %s9184_s0 = inlined_call_operand.vmem [shape: f32[64,32], index: 0, kind: input, shape index: {}]   ;;  %s9185_s1 = inlined_call_operand.vmem [shape: f32[4,512], index: 1, kind: input, shape index: {}]   ;;  %s9186_s2 = inlined_call_operand.hbm [shape: f32[128,512], index: 2, kind: input, shape index: {}]   ;;  %s9187_s3 = inlined_call_operand.vmem [shape: f32[1,512], index: 3, kind: input, shape index: {}]   ;;  %s9188_s4 = inlined_call_operand.vmem [shape: f32[1,128], index: 4, kind: input, shape index: {}]   ;;  %s9189_s5 = inlined_call_operand.<no memory space> [shape: f32[1,1], index: 5, kind: input, shape index: {}]   ;;  %s9190_s6 = inlined_call_operand.hbm [shape: f32[1,64], index: 6, kind: output, shape index: {}]  }
   0x1   :  { %13 = vsyncpa [#allocation5], 0  ;;  %s7557_s21 = smov [#allocation3]   ;;  %s7509_s25 = scalar_lea.hbm %s9186_s2, 8192 }
   0x2   :  { %s23_s22 = sshll.u32 %s7557_s21, 4  ;;  %p7510_p0 = scmp.ne.s32.totalorder %s9186_s2, %s7509_s25  ;;  %s24_s22 = int_to_ptr.vmem [resolvable:$true] %s23_s22 }
   0x3   :  { %p7513_p1 = scmp.lt.u32.totalorder %s7509_s25, %s9186_s2 }
   0x5   :  { %p7515_p2 = pnand %p7513_p1, %p7510_p0 }
   0x7   :  { %7518 = shalt.err (!%p7515_p2)
}
   0x8   :  { %s7519_s30 = scalar_lea.vmem %s24_s22, 8192  ;;  %p7524_p4 = scmp.lt.s32.totalorder %s24_s22, %s24_s22 }
   0x9   :  { %p7520_p3 = scmp.ne.s32.totalorder %s24_s22, %s7519_s30  ;;  %p7525_p5 = scmp.lt.s32.totalorder %s7519_s30, %s7519_s30 }
   0xb   :  { %p7526_p6 = por %p7525_p5, %p7524_p4 }
   0xd   :  { %p7527_p7 = pnand %p7526_p6, %p7520_p3 }
   0xf   :  { %7530 = shalt.err (!%p7527_p7)
}
  0x10   :  { %s7558_s7 = smov 512   ;;  %s7559_s8 = smov 32  }
  0x11   :  { %29 = dma.hbm_to_vmem [thread:$0]  %s9186_s2, 8192, %s24_s22, [#allocation4], %s7558_s7, %s7558_s7, %s7559_s8  }
  0x12   :  { %7553 = dma.done.wait [#allocation4], 8192  }
  0x13   :  { %7554 = vsyncadd [#allocation4], 4294959104  ;;  %v9191_v0 = vmov 0.0   ;;  %v7623_v1 = vld [vmem:[%s9185_s1] sm:$0xff]  ;;  %vm165_vm0 = vcmask 1043456   ;;  %v7628_v2 = vld [vmem:[%s9185_s1 + $0x8] sm:$0xff] }
  0x14   :  { %238 = vmatprep.mubr.f32.mxu0 %v9191_v0  ;;  %351 = vmatprep.mubr.f32.mxu1 %v9191_v0  ;;  %v107_v3 = vld [vmem:[%s9184_s0] sm:$0xff]  ;;  %v7635_v4 = vcombine.high %v7623_v1, %v7623_v1  ;;  %v7639_v5 = vcombine.high %v7628_v2, %v7628_v2  ;;  %v42_v6 = vld [vmem:[#allocation3 + $0x8] sm:$0xff]  ;;  %v44_v8 = vld [vmem:[#allocation3 + $0x18] sm:$0xff]  ;;  %s7561_s16 = smov 124   ;;  %vm140_vm1 = vcmask 31744   ;;  %s7562_s11 = smov 120  }
  0x15   :  { %v46_v7 = vld [vmem:[#allocation3 + $0x28] sm:$0xff]  ;;  %818 = vrot.lane.b32.xlu0 %v107_v3, %s7561_s16  ;;  %v48_v10 = vld [vmem:[#allocation3 + $0x38] sm:$0xff]  ;;  %v41_v11 = vld [vmem:[#allocation3] sm:$0xff]  ;;  %s7564_s9 = smov 112   ;;  %s7565_s10 = smov 108   ;;  %vm7569_vm2 = vmmov 0  }
  0x16   :  { %9242 = vst [vmem:[#allocation9_spill] sm:$0xff] %v7635_v4  ;;  %9243 = vst [vmem:[#allocation10_spill] sm:$0xff] %v7639_v5  ;;  %v7642_v9 = vpack.c.bf16 %v46_v7, %v42_v6  ;;  %v45_v12 = vld [vmem:[#allocation3 + $0x20] sm:$0xff]  ;;  %5623 = vmatprep.subr.msk.mxu0 %vm165_vm0, %v7635_v4  ;;  %5633 = vmatprep.subr.msk.mxu1 %vm165_vm0, %v7639_v5  ;;  %v7648_v13 = vpack.c.bf16 %v48_v10, %v44_v8  ;;  %v43_v15 = vld [vmem:[#allocation3 + $0x10] sm:$0xff]  ;;  %s7566_s29 = smov 104   ;;  %s7567_s30 = smov 100  }
  0x17   :  { %v7650_v14 = vpack.c.bf16 %v45_v12, %v41_v11  ;;  %v47_v16 = vld [vmem:[#allocation3 + $0x30] sm:$0xff]  ;;  %5624 = vmatpush1.msk.msra.mxu0 %vm165_vm0, %v7623_v1  ;;  %5634 = vmatpush1.msk.msra.mxu1 %vm165_vm0, %v7628_v2  ;;  %v50_v18 = vld [vmem:[#allocation3 + $0x48] sm:$0xff]  ;;  %v52_v20 = vld [vmem:[#allocation3 + $0x58] sm:$0xff]  ;;  %s7570_s23 = smov [#allocation6]   ;;  %vm5606_vm3 = vcmask 516096  }
  0x18   :  { %v7656_v17 = vpack.c.bf16 %v47_v16, %v43_v15  ;;  %v54_v19 = vld [vmem:[#allocation3 + $0x68] sm:$0xff]  ;;  %5625 = vmatmul.mubr.msk.f32.vlgmr.msra.gmra.mrb[0].mxu0 %vm140_vm1, %v107_v3  ;;  %5635 = vmatmul.mubr.msk.f32.vlgmr.msra.gmra.mrb[0].mxu1 %vm140_vm1, %v107_v3  ;;  %v56_v21 = vld [vmem:[#allocation3 + $0x78] sm:$0xff]  ;;  %v49_v22 = vld [vmem:[#allocation3 + $0x40] sm:$0xff]  ;;  %s5614_s24 = sshll.u32 %s7570_s23, 4  ;;  %s5615_s24 = int_to_ptr.vmem [resolvable:$true] %s5614_s24 }
  0x19   :  { %v53_v23 = vld [vmem:[#allocation3 + $0x60] sm:$0xff]  ;;  %5812 = vmatprep.subr.bf16.mxu0 %v7642_v9  ;;  %5844 = vmatprep.subr.bf16.mxu1 %v7648_v13  ;;  %v7665_v24 = vld [vmem:[%s9184_s0 + $0x8] sm:$0xff]  ;;  %v7667_v25 = vpack.c.bf16 %v54_v19, %v50_v18  ;;  %v7669_v26 = vpack.c.bf16 %v56_v21, %v52_v20  ;;  %v51_v27 = vld [vmem:[#allocation3 + $0x50] sm:$0xff]  ;;  %s7531_s25 = scalar_lea.vmem %s5615_s24, 16  ;;  %s7535_s26 = scalar_lea.vmem %s5615_s24, 32 }
  0x1a   :  { %v55_v28 = vld [vmem:[#allocation3 + $0x70] sm:$0xff]  ;;  %5814 = vmatpush1.bf16.msra.mxu0 %v7650_v14  ;;  %5846 = vmatpush1.bf16.msra.mxu1 %v7656_v17  ;;  %v7673_v29 = vpack.c.bf16 %v53_v23, %v49_v22  ;;  %v58_v31 = vld [vmem:[#allocation3 + $0x88] sm:$0xff]  ;;  %v60_v33 = vld [vmem:[#allocation3 + $0x98] sm:$0xff]  ;;  %p7532_p8 = scmp.ne.s32.totalorder %s5615_s24, %s7531_s25  ;;  %p7536_p9 = scmp.lt.s32.totalorder %s5615_s24, %s5615_s24 }
  0x1b   :  { %v7675_v30 = vpack.c.bf16 %v55_v28, %v51_v27  ;;  %v62_v32 = vld [vmem:[#allocation3 + $0xa8] sm:$0xff]  ;;  %244 = vmatprep.mubr.f32.mxu0 %v9191_v0  ;;  %357 = vmatprep.mubr.f32.mxu1 %v9191_v0  ;;  %v64_v34 = vld [vmem:[#allocation3 + $0xb8] sm:$0xff]  ;;  %v57_v35 = vld [vmem:[#allocation3 + $0x80] sm:$0xff]  ;;  %p7537_p10 = scmp.lt.s32.totalorder %s7535_s26, %s7531_s25 }
  0x1c   :  { %v61_v36 = vld [vmem:[#allocation3 + $0xa0] sm:$0xff]  ;;  %5626 = vmatmul.mubr.msk.f32.gmra.mrb[2].mxu0 %vm140_vm1, %v7665_v24  ;;  %5636 = vmatmul.mubr.msk.f32.gmra.mrb[2].mxu1 %vm140_vm1, %v7665_v24  ;;  %v59_v37 = vld [vmem:[#allocation3 + $0x90] sm:$0xff]  ;;  %v7690_v40 = vpack.c.bf16 %v62_v32, %v58_v31  ;;  %v7692_v41 = vpack.c.bf16 %v64_v34, %v60_v33  ;;  %v66_v42 = vld [vmem:[#allocation3 + $0xc8] sm:$0xff] }
  0x1d   :  { %v63_v38 = vld [vmem:[#allocation3 + $0xb0] sm:$0xff]  ;;  %5816 = vmatprep.subr.bf16.mxu0 %v7667_v25  ;;  %5848 = vmatprep.subr.bf16.mxu1 %v7669_v26  ;;  %v70_v43 = vld [vmem:[#allocation3 + $0xe8] sm:$0xff]  ;;  %v7696_v44 = vpack.c.bf16 %v61_v36, %v57_v35  ;;  %v68_v46 = vld [vmem:[#allocation3 + $0xd8] sm:$0xff]  ;;  %p7538_p11 = por %p7537_p10, %p7536_p9 }
  0x1e   :  { %v7688_v39 = vld [vmem:[%s9184_s0 + $0x10] sm:$0xff]  ;;  %5818 = vmatpush1.bf16.msra.mxu0 %v7673_v29  ;;  %5850 = vmatpush1.bf16.msra.mxu1 %v7675_v30  ;;  %v7698_v45 = vpack.c.bf16 %v63_v38, %v59_v37  ;;  %v72_v47 = vld [vmem:[#allocation3 + $0xf8] sm:$0xff]  ;;  %v65_v48 = vld [vmem:[#allocation3 + $0xc0] sm:$0xff]  ;;  %v7713_v53 = vpack.c.bf16 %v70_v43, %v66_v42 }
  0x1f   :  { %250 = vmatprep.mubr.f32.mxu0 %v9191_v0  ;;  %363 = vmatprep.mubr.f32.mxu1 %v9191_v0  ;;  %v69_v49 = vld [vmem:[#allocation3 + $0xe0] sm:$0xff]  ;;  %v67_v50 = vld [vmem:[#allocation3 + $0xd0] sm:$0xff]  ;;  %v7711_v52 = vld [vmem:[%s9184_s0 + $0x18] sm:$0xff]  ;;  %v7715_v54 = vpack.c.bf16 %v72_v47, %v68_v46  ;;  %p7539_p12 = pnand %p7538_p11, %p7532_p8 }
  0x20   :  { %v71_v51 = vld [vmem:[#allocation3 + $0xf0] sm:$0xff]  ;;  %5627 = vmatmul.mubr.msk.f32.gmra.mrb[4].mxu0 %vm140_vm1, %v7688_v39  ;;  %5637 = vmatmul.mubr.msk.f32.gmra.mrb[4].mxu1 %vm140_vm1, %v7688_v39  ;;  %v74_v55 = vld [vmem:[#allocation3 + $0x108] sm:$0xff]  ;;  %v7719_v57 = vpack.c.bf16 %v69_v49, %v65_v48  ;;  %v76_v59 = vld [vmem:[#allocation3 + $0x118] sm:$0xff] }
  0x21   :  { %5820 = vmatprep.subr.bf16.mxu0 %v7690_v40  ;;  %5852 = vmatprep.subr.bf16.mxu1 %v7692_v41  ;;  %v78_v56 = vld [vmem:[#allocation3 + $0x128] sm:$0xff]  ;;  %v7721_v58 = vpack.c.bf16 %v71_v51, %v67_v50  ;;  %v80_v60 = vld [vmem:[#allocation3 + $0x138] sm:$0xff]  ;;  %v73_v61 = vld [vmem:[#allocation3 + $0x100] sm:$0xff] }
  0x22   :  { %5822 = vmatpush1.bf16.msra.mxu0 %v7696_v44  ;;  %5854 = vmatpush1.bf16.msra.mxu1 %v7698_v45  ;;  %v77_v62 = vld [vmem:[#allocation3 + $0x120] sm:$0xff]  ;;  %v75_v63 = vld [vmem:[#allocation3 + $0x110] sm:$0xff]  ;;  %v7736_v7 = vpack.c.bf16 %v78_v56, %v74_v55  ;;  %v7738_v8 = vpack.c.bf16 %v80_v60, %v76_v59  ;;  %v82_v10 = vld [vmem:[#allocation3 + $0x148] sm:$0xff] }
  0x23   :  { %256 = vmatprep.mubr.f32.mxu0 %v9191_v0  ;;  %369 = vmatprep.mubr.f32.mxu1 %v9191_v0  ;;  %v79_v3 = vld [vmem:[#allocation3 + $0x130] sm:$0xff]  ;;  %v7734_v6 = vld [vmem:[%s9184_s0 + $0x20] sm:$0xff]  ;;  %v86_v11 = vld [vmem:[#allocation3 + $0x168] sm:$0xff]  ;;  %v7742_v12 = vpack.c.bf16 %v77_v62, %v73_v61 }
  0x24   :  { %5628 = vmatmul.mubr.msk.f32.gmra.mrb[6].mxu0 %vm140_vm1, %v7711_v52  ;;  %5638 = vmatmul.mubr.msk.f32.gmra.mrb[6].mxu1 %vm140_vm1, %v7711_v52  ;;  %v7744_v15 = vpack.c.bf16 %v79_v3, %v75_v63  ;;  %v84_v16 = vld [vmem:[#allocation3 + $0x158] sm:$0xff]  ;;  %v81_v19 = vld [vmem:[#allocation3 + $0x140] sm:$0xff]  ;;  %v83_v21 = vld [vmem:[#allocation3 + $0x150] sm:$0xff]  ;;  %v7759_v27 = vpack.c.bf16 %v86_v11, %v82_v10 }
  0x25   :  { %5824 = vmatprep.subr.bf16.mxu0 %v7713_v53  ;;  %5856 = vmatprep.subr.bf16.mxu1 %v7715_v54  ;;  %v88_v18 = vld [vmem:[#allocation3 + $0x178] sm:$0xff]  ;;  %v85_v20 = vld [vmem:[#allocation3 + $0x160] sm:$0xff]  ;;  %v87_v22 = vld [vmem:[#allocation3 + $0x170] sm:$0xff] }
  0x26   :  { %5826 = vmatpush1.bf16.msra.mxu0 %v7719_v57  ;;  %5858 = vmatpush1.bf16.msra.mxu1 %v7721_v58  ;;  %v7757_v23 = vld [vmem:[%s9184_s0 + $0x28] sm:$0xff]  ;;  %v7761_v28 = vpack.c.bf16 %v88_v18, %v84_v16  ;;  %v7765_v33 = vpack.c.bf16 %v85_v20, %v81_v19  ;;  %v7767_v34 = vpack.c.bf16 %v87_v22, %v83_v21  ;;  %v92_v35 = vld [vmem:[#allocation3 + $0x198] sm:$0xff]  ;;  %v89_v37 = vld [vmem:[#allocation3 + $0x180] sm:$0xff] }
  0x27   :  { %262 = vmatprep.mubr.f32.mxu0 %v9191_v0  ;;  %375 = vmatprep.mubr.f32.mxu1 %v9191_v0  ;;  %v90_v31 = vld [vmem:[#allocation3 + $0x188] sm:$0xff]  ;;  %v96_v36 = vld [vmem:[#allocation3 + $0x1b8] sm:$0xff]  ;;  %v93_v38 = vld [vmem:[#allocation3 + $0x1a0] sm:$0xff] }
  0x28   :  { %5629 = vmatmul.mubr.msk.f32.gmra.mrb[8].mxu0 %vm140_vm1, %v7734_v6  ;;  %5639 = vmatmul.mubr.msk.f32.gmra.mrb[8].mxu1 %vm140_vm1, %v7734_v6  ;;  %v94_v32 = vld [vmem:[#allocation3 + $0x1a8] sm:$0xff]  ;;  %v91_v42 = vld [vmem:[#allocation3 + $0x190] sm:$0xff]  ;;  %v7784_v48 = vpack.c.bf16 %v96_v36, %v92_v35  ;;  %v7788_v51 = vpack.c.bf16 %v93_v38, %v89_v37  ;;  %v100_v56 = vld [vmem:[#allocation3 + $0x1d8] sm:$0xff]  ;;  %v116_v38 = vlaneseq }
  0x29   :  { %5828 = vmatprep.subr.bf16.mxu0 %v7736_v7  ;;  %5860 = vmatprep.subr.bf16.mxu1 %v7738_v8  ;;  %v95_v43 = vld [vmem:[#allocation3 + $0x1b0] sm:$0xff]  ;;  %v7782_v47 = vpack.c.bf16 %v94_v32, %v90_v31  ;;  %v98_v49 = vld [vmem:[#allocation3 + $0x1c8] sm:$0xff]  ;;  %v104_v59 = vld [vmem:[#allocation3 + $0x1f8] sm:$0xff] }
  0x2a   :  { %5830 = vmatpush1.bf16.msra.mxu0 %v7742_v12  ;;  %5862 = vmatpush1.bf16.msra.mxu1 %v7744_v15  ;;  %v7780_v46 = vld [vmem:[%s9184_s0 + $0x30] sm:$0xff]  ;;  %9245 = vst [vmem:[#allocation12_spill] sm:$0xff] %v7784_v48  ;;  %v102_v50 = vld [vmem:[#allocation3 + $0x1e8] sm:$0xff]  ;;  %9246 = vst [vmem:[#allocation13_spill] sm:$0xff] %v7788_v51  ;;  %v7790_v55 = vpack.c.bf16 %v95_v43, %v91_v42  ;;  %v7807_v11 = vpack.c.bf16 %v104_v59, %v100_v56  ;;  %v117_v42 = vshrl.u32 %v116_v38, 7 }
  0x2b   :  { %268 = vmatprep.mubr.f32.mxu0 %v9191_v0  ;;  %381 = vmatprep.mubr.f32.mxu1 %v9191_v0  ;;  %9244 = vst [vmem:[#allocation11_spill] sm:$0xff] %v7782_v47  ;;  %v97_v60 = vld [vmem:[#allocation3 + $0x1c0] sm:$0xff]  ;;  %v99_v62 = vld [vmem:[#allocation3 + $0x1d0] sm:$0xff]  ;;  %v7803_v3 = vld [vmem:[%s9184_s0 + $0x38] sm:$0xff]  ;;  %v7805_v10 = vpack.c.bf16 %v102_v50, %v98_v49 }
  0x2c   :  { %5630 = vmatmul.mubr.msk.f32.gmra.mrb[10].mxu0 %vm140_vm1, %v7757_v23  ;;  %5640 = vmatmul.mubr.msk.f32.gmra.mrb[10].mxu1 %vm140_vm1, %v7757_v23  ;;  %9247 = vst [vmem:[#allocation14_spill] sm:$0xff] %v7790_v55  ;;  %v101_v61 = vld [vmem:[#allocation3 + $0x1e0] sm:$0xff]  ;;  %v103_v63 = vld [vmem:[#allocation3 + $0x1f0] sm:$0xff]  ;;  %9249 = vst [vmem:[#allocation16_spill] sm:$0xff] %v7807_v11  ;;  %v118_v43 = vsub.s32 0, %v117_v42  ;;  %v122_v50 = vsub.s32 1, %v117_v42 }
  0x2d   :  { %5832 = vmatprep.subr.bf16.mxu0 %v7759_v27  ;;  %5864 = vmatprep.subr.bf16.mxu1 %v7761_v28  ;;  %9248 = vst [vmem:[#allocation15_spill] sm:$0xff] %v7805_v10  ;;  %v7811_v16 = vpack.c.bf16 %v101_v61, %v97_v60  ;;  %v7813_v18 = vpack.c.bf16 %v103_v63, %v99_v62  ;;  %v7952_v36 = vld [vmem:[%s9184_s0] sm:$0xff]  ;;  %v7957_v37 = vld [vmem:[%s9184_s0 + $0x8] sm:$0xff]  ;;  %v130_v56 = vsub.s32 3, %v117_v42 }
  0x2e   :  { %5834 = vmatpush1.bf16.msra.mxu0 %v7765_v33  ;;  %5866 = vmatpush1.bf16.msra.mxu1 %v7767_v34  ;;  %9252 = vst [vmem:[#allocation19_spill] sm:$0xff] %v7952_v36  ;;  %9253 = vst [vmem:[#allocation20_spill] sm:$0xff] %v7957_v37  ;;  %v105_v49 = vld [vmem:[%s9187_s3] sm:$0xf]  ;;  %s7563_s3 = smov 116  }
  0x2f   :  { %274 = vmatprep.mubr.f32.mxu0 %v9191_v0  ;;  %387 = vmatprep.mubr.f32.mxu1 %v9191_v0  ;;  %9250 = vst [vmem:[#allocation17_spill] sm:$0xff] %v7811_v16  ;;  %9251 = vst [vmem:[#allocation18_spill] sm:$0xff] %v7813_v18  ;;  %v7970_v59 = vrot.slane %v105_v49, %v118_v43 }
  0x30   :  { %5631 = vmatmul.mubr.msk.f32.gmra.mrb[12].mxu0 %vm140_vm1, %v7780_v46  ;;  %5641 = vmatmul.mubr.msk.f32.gmra.mrb[12].mxu1 %vm140_vm1, %v7780_v46 }
  0x31   :  { %5836 = vmatprep.subr.bf16.mxu0 %v7782_v47  ;;  %5868 = vmatprep.subr.bf16.mxu1 %v7784_v48 }
  0x32   :  { %5838 = vmatpush1.bf16.msra.mxu0 %v7788_v51  ;;  %5870 = vmatpush1.bf16.msra.mxu1 %v7790_v55 }
  0x33   :  { %280 = vmatprep.mubr.f32.mxu0 %v9191_v0  ;;  %393 = vmatprep.mubr.f32.mxu1 %v9191_v0 }
  0x34   :  { %5632 = vmatmul.mubr.msk.f32.gmra.mrb[14].mxu0 %vm140_vm1, %v7803_v3  ;;  %5642 = vmatmul.mubr.msk.f32.gmra.mrb[14].mxu1 %vm140_vm1, %v7803_v3 }
  0x35   :  { %5840 = vmatprep.subr.bf16.mxu0 %v7805_v10  ;;  %5872 = vmatprep.subr.bf16.mxu1 %v7807_v11 }
  0x36   :  { %5842 = vmatpush1.bf16.msra.mxu0 %v7811_v16  ;;  %5874 = vmatpush1.bf16.msra.mxu1 %v7813_v18 }
  0x37   :  { %464 = vmatprep.mubr.f32.mxu0 %v9191_v0  ;;  %577 = vmatprep.mubr.f32.mxu1 %v9191_v0 }
  0x38   :  { %820 = vrot.lane.b32.xlu0 %v7665_v24, %s7561_s16  ;;  %822 = vrot.lane.b32.xlu1 %v7688_v39, %s7561_s16 }
  0x39   :  { %465 = vmatmul.mubr.f32.vlgmr.msra.gmra.mrb[0].mxu0 %v9191_v0  ;;  %578 = vmatmul.mubr.f32.vlgmr.msra.gmra.mrb[0].mxu1 %v9191_v0 }
  0x3a   :  { %470 = vmatprep.mubr.f32.mxu0 %v9191_v0  ;;  %583 = vmatprep.mubr.f32.mxu1 %v9191_v0 }
  0x3b   :  { %5643 = vmatprep.subr.msk.mxu0 %vm165_vm0, %v7635_v4  ;;  %5653 = vmatprep.subr.msk.mxu1 %vm165_vm0, %v7639_v5 }
  0x3c   :  { %824 = vrot.lane.b32.xlu1 %v7711_v52, %s7561_s16  ;;  %826 = vrot.lane.b32.xlu0 %v7734_v6, %s7561_s16 }
  0x3d   :  { %471 = vmatmul.mubr.f32.gmra.mrb[2].mxu0 %v9191_v0  ;;  %584 = vmatmul.mubr.f32.gmra.mrb[2].mxu1 %v9191_v0 }
  0x3e   :  { %476 = vmatprep.mubr.f32.mxu0 %v9191_v0  ;;  %589 = vmatprep.mubr.f32.mxu1 %v9191_v0 }
  0x3f   :  { %5644 = vmatpush1.msk.msra.mxu0 %vm165_vm0, %v7623_v1  ;;  %5654 = vmatpush1.msk.msra.mxu1 %vm165_vm0, %v7628_v2 }
  0x40   :  { %828 = vrot.lane.b32.xlu1 %v7757_v23, %s7561_s16  ;;  %830 = vrot.lane.b32.xlu0 %v7780_v46, %s7561_s16 }
  0x41   :  { %477 = vmatmul.mubr.f32.gmra.mrb[4].mxu0 %v9191_v0  ;;  %590 = vmatmul.mubr.f32.gmra.mrb[4].mxu1 %v9191_v0 }
  0x42   :  { %482 = vmatprep.mubr.f32.mxu0 %v9191_v0  ;;  %595 = vmatprep.mubr.f32.mxu1 %v9191_v0 }
  0x43   :  { %5876 = vmatprep.subr.bf16.mxu0 %v7642_v9  ;;  %5908 = vmatprep.subr.bf16.mxu1 %v7648_v13 }
  0x44   :  { %832 = vrot.lane.b32.xlu1 %v7803_v3, %s7561_s16  ;;  %1494 = vrot.lane.b32.xlu0 %v7952_v36, %s7562_s11 }
  0x45   :  { %483 = vmatmul.mubr.f32.gmra.mrb[6].mxu0 %v9191_v0  ;;  %596 = vmatmul.mubr.f32.gmra.mrb[6].mxu1 %v9191_v0 }
  0x46   :  { %488 = vmatprep.mubr.f32.mxu0 %v9191_v0  ;;  %601 = vmatprep.mubr.f32.mxu1 %v9191_v0 }
  0x48   :  { %1496 = vrot.lane.b32.xlu1 %v7957_v37, %s7562_s11  ;;  %1498 = vrot.lane.b32.xlu0 %v7688_v39, %s7562_s11  ;;  %v126_v39 = vsub.s32 2, %v117_v42 }
  0x49   :  { %489 = vmatmul.mubr.f32.gmra.mrb[8].mxu0 %v9191_v0  ;;  %602 = vmatmul.mubr.f32.gmra.mrb[8].mxu1 %v9191_v0 }
  0x4a   :  { %494 = vmatprep.mubr.f32.mxu0 %v9191_v0  ;;  %607 = vmatprep.mubr.f32.mxu1 %v9191_v0 }
  0x4c   :  { %1500 = vrot.lane.b32.xlu1 %v7711_v52, %s7562_s11  ;;  %1502 = vrot.lane.b32.xlu0 %v7734_v6, %s7562_s11  ;;  %v7972_v52 = vrot.slane %v105_v49, %v122_v50  ;;  %v7974_v6 = vrot.slane %v105_v49, %v130_v56 }
  0x4d   :  { %495 = vmatmul.mubr.f32.gmra.mrb[10].mxu0 %v9191_v0  ;;  %608 = vmatmul.mubr.f32.gmra.mrb[10].mxu1 %v9191_v0 }
  0x4e   :  { %500 = vmatprep.mubr.f32.mxu0 %v9191_v0  ;;  %613 = vmatprep.mubr.f32.mxu1 %v9191_v0 }
  0x50   :  { %1504 = vrot.lane.b32.xlu1 %v7757_v23, %s7562_s11  ;;  %1506 = vrot.lane.b32.xlu0 %v7780_v46, %s7562_s11  ;;  %v7976_v46 = vrot.slane %v105_v49, %v126_v39 }
  0x51   :  { %501 = vmatmul.mubr.f32.gmra.mrb[12].mxu0 %v9191_v0  ;;  %614 = vmatmul.mubr.f32.gmra.mrb[12].mxu1 %v9191_v0 }
  0x52   :  { %506 = vmatprep.mubr.f32.mxu0 %v9191_v0  ;;  %619 = vmatprep.mubr.f32.mxu1 %v9191_v0 }
  0x54   :  { %1508 = vrot.lane.b32.xlu1 %v7803_v3, %s7562_s11 }
  0x55   :  { %507 = vmatmul.mubr.f32.gmra.mrb[14].mxu0 %v9191_v0  ;;  %620 = vmatmul.mubr.f32.gmra.mrb[14].mxu1 %v9191_v0 }
  0x56   :  { %914 = vmatprep.mubr.f32.mxu0 %v9191_v0  ;;  %1027 = vmatprep.mubr.f32.mxu1 %v9191_v0 }
  0x87   :  { %v819_v24 = vpop.permute.xlu0 %818 }
  0x88   :  { %5645 = vmatmul.mubr.msk.f32.vlgmr.msra.gmra.mrb[16].mxu0 %vm140_vm1, %v819_v24  ;;  %5655 = vmatmul.mubr.msk.f32.vlgmr.msra.gmra.mrb[16].mxu1 %vm140_vm1, %v819_v24 }
  0x89   :  { %5878 = vmatpush1.bf16.msra.mxu0 %v7650_v14  ;;  %5910 = vmatpush1.bf16.msra.mxu1 %v7656_v17 }
  0x8a   :  { %920 = vmatprep.mubr.f32.mxu0 %v9191_v0  ;;  %1033 = vmatprep.mubr.f32.mxu1 %v9191_v0 }
  0x8b   :  { %5880 = vmatprep.subr.bf16.mxu0 %v7667_v25  ;;  %5912 = vmatprep.subr.bf16.mxu1 %v7669_v26 }
  0x8d   :  { %5882 = vmatpush1.bf16.msra.mxu0 %v7673_v29  ;;  %5914 = vmatpush1.bf16.msra.mxu1 %v7675_v30 }
  0x8e   :  { %5884 = vmatprep.subr.bf16.mxu0 %v7690_v40  ;;  %5916 = vmatprep.subr.bf16.mxu1 %v7692_v41 }
  0x91   :  { %5886 = vmatpush1.bf16.msra.mxu0 %v7696_v44  ;;  %5918 = vmatpush1.bf16.msra.mxu1 %v7698_v45 }
  0x92   :  { %5888 = vmatprep.subr.bf16.mxu0 %v7713_v53  ;;  %5920 = vmatprep.subr.bf16.mxu1 %v7715_v54 }
  0x95   :  { %5890 = vmatpush1.bf16.msra.mxu0 %v7719_v57  ;;  %5922 = vmatpush1.bf16.msra.mxu1 %v7721_v58 }
  0x96   :  { %5892 = vmatprep.subr.bf16.mxu0 %v7736_v7  ;;  %5924 = vmatprep.subr.bf16.mxu1 %v7738_v8 }
  0x99   :  { %5894 = vmatpush1.bf16.msra.mxu0 %v7742_v12  ;;  %5926 = vmatpush1.bf16.msra.mxu1 %v7744_v15 }
  0x9a   :  { %5896 = vmatprep.subr.bf16.mxu0 %v7759_v27  ;;  %5928 = vmatprep.subr.bf16.mxu1 %v7761_v28 }
  0x9d   :  { %5898 = vmatpush1.bf16.msra.mxu0 %v7765_v33  ;;  %5930 = vmatpush1.bf16.msra.mxu1 %v7767_v34 }
  0x9e   :  { %5900 = vmatprep.subr.bf16.mxu0 %v7782_v47  ;;  %5932 = vmatprep.subr.bf16.mxu1 %v7784_v48 }
  0xa1   :  { %5902 = vmatpush1.bf16.msra.mxu0 %v7788_v51  ;;  %5934 = vmatpush1.bf16.msra.mxu1 %v7790_v55 }
  0xa2   :  { %5904 = vmatprep.subr.bf16.mxu0 %v7805_v10  ;;  %5936 = vmatprep.subr.bf16.mxu1 %v7807_v11 }
  0xa5   :  { %5906 = vmatpush1.bf16.msra.mxu0 %v7811_v16  ;;  %5938 = vmatpush1.bf16.msra.mxu1 %v7813_v18 }
  0xa6   :  { %5663 = vmatprep.subr.msk.mxu0 %vm165_vm0, %v7635_v4  ;;  %5673 = vmatprep.subr.msk.mxu1 %vm165_vm0, %v7639_v5 }
  0xaa   :  { %v821_v19 = vpop.permute.xlu0 %820  ;;  %v823_v20 = vpop.permute.xlu1 %822 }
  0xab   :  { %5646 = vmatmul.mubr.msk.f32.gmra.mrb[18].mxu0 %vm140_vm1, %v821_v19  ;;  %5656 = vmatmul.mubr.msk.f32.gmra.mrb[18].mxu1 %vm140_vm1, %v821_v19 }
  0xac   :  { %926 = vmatprep.mubr.f32.mxu0 %v9191_v0  ;;  %1039 = vmatprep.mubr.f32.mxu1 %v9191_v0 }
  0xae   :  { %v825_v21 = vpop.permute.xlu1 %824  ;;  %v827_v22 = vpop.permute.xlu0 %826 }
  0xaf   :  { %5647 = vmatmul.mubr.msk.f32.gmra.mrb[20].mxu0 %vm140_vm1, %v823_v20  ;;  %5657 = vmatmul.mubr.msk.f32.gmra.mrb[20].mxu1 %vm140_vm1, %v823_v20 }
  0xb0   :  { %932 = vmatprep.mubr.f32.mxu0 %v9191_v0  ;;  %1045 = vmatprep.mubr.f32.mxu1 %v9191_v0 }
  0xb2   :  { %v829_v31 = vpop.permute.xlu1 %828  ;;  %v831_v32 = vpop.permute.xlu0 %830 }
  0xb3   :  { %5648 = vmatmul.mubr.msk.f32.gmra.mrb[22].mxu0 %vm140_vm1, %v825_v21  ;;  %5658 = vmatmul.mubr.msk.f32.gmra.mrb[22].mxu1 %vm140_vm1, %v825_v21 }
  0xb4   :  { %938 = vmatprep.mubr.f32.mxu0 %v9191_v0  ;;  %1051 = vmatprep.mubr.f32.mxu1 %v9191_v0 }
  0xb6   :  { %v833_v35 = vpop.permute.xlu1 %832 }
  0xb7   :  { %5649 = vmatmul.mubr.msk.f32.gmra.mrb[24].mxu0 %vm140_vm1, %v827_v22  ;;  %5659 = vmatmul.mubr.msk.f32.gmra.mrb[24].mxu1 %vm140_vm1, %v827_v22 }
  0xb8   :  { %944 = vmatprep.mubr.f32.mxu0 %v9191_v0  ;;  %1057 = vmatprep.mubr.f32.mxu1 %v9191_v0 }
  0xbb   :  { %5650 = vmatmul.mubr.msk.f32.gmra.mrb[26].mxu0 %vm140_vm1, %v829_v31  ;;  %5660 = vmatmul.mubr.msk.f32.gmra.mrb[26].mxu1 %vm140_vm1, %v829_v31 }
  0xbc   :  { %950 = vmatprep.mubr.f32.mxu0 %v9191_v0  ;;  %1063 = vmatprep.mubr.f32.mxu1 %v9191_v0 }
  0xbf   :  { %5651 = vmatmul.mubr.msk.f32.gmra.mrb[28].mxu0 %vm140_vm1, %v831_v32  ;;  %5661 = vmatmul.mubr.msk.f32.gmra.mrb[28].mxu1 %vm140_vm1, %v831_v32 }
  0xc0   :  { %956 = vmatprep.mubr.f32.mxu0 %v9191_v0  ;;  %1069 = vmatprep.mubr.f32.mxu1 %v9191_v0 }
  0xc3   :  { %5652 = vmatmul.mubr.msk.f32.gmra.mrb[30].mxu0 %vm140_vm1, %v833_v35  ;;  %5662 = vmatmul.mubr.msk.f32.gmra.mrb[30].mxu1 %vm140_vm1, %v833_v35 }
  0xc4   :  { %1140 = vmatprep.mubr.f32.mxu0 %v9191_v0  ;;  %1253 = vmatprep.mubr.f32.mxu1 %v9191_v0 }
 0x10c   :  { %v466_v23 = vpop.f32.mrb[0].mxu0  ;;  %v579_v60 = vpop.f32.mrb[0].mxu1 }
 0x10d   :  { %v6335_v61 = vadd.f32 %v466_v23, %v7970_v59  ;;  %v468_v62 = vpop.f32.mrb[1].mxu0  ;;  %v581_v63 = vpop.f32.mrb[1].mxu1  ;;  %v6351_v20 = vadd.f32 %v579_v60, %v7976_v46 }
 0x10e   :  { %v6336_v3 = vadd.f32 %v468_v62, %v7972_v52  ;;  %v6352_v19 = vadd.f32 %v581_v63, %v7974_v6 }
 0x10f   :  { %v658_v24 = vmul.f32 0.5, %v6335_v61 }
 0x110   :  { %v690_v21 = vmul.f32 0.5, %v6336_v3  ;;  %v472_v22 = vpop.f32.mrb[2].mxu0  ;;  %v585_v31 = vpop.f32.mrb[2].mxu1  ;;  %v730_v43 = vmul.f32 0.5, %v6352_v19 }
 0x111   :  { %6863 = vtanh.f32 %v658_v24  ;;  %v6337_v32 = vadd.f32 %v472_v22, %v7970_v59  ;;  %v474_v35 = vpop.f32.mrb[3].mxu0  ;;  %v587_v38 = vpop.f32.mrb[3].mxu1  ;;  %v6353_v56 = vadd.f32 %v585_v31, %v7976_v46 }
 0x112   :  { %6865 = vtanh.f32 %v690_v21  ;;  %v6338_v42 = vadd.f32 %v474_v35, %v7972_v52  ;;  %v6354_v50 = vadd.f32 %v587_v38, %v7974_v6 }
 0x113   :  { %v659_v49 = vmul.f32 0.5, %v6337_v32  ;;  %6867 = vtanh.f32 %v6351_v20 }
 0x114   :  { %v691_v39 = vmul.f32 0.5, %v6338_v42  ;;  %v478_v23 = vpop.f32.mrb[4].mxu0  ;;  %v591_v60 = vpop.f32.mrb[4].mxu1  ;;  %v731_v24 = vmul.f32 0.5, %v6354_v50 }
 0x115   :  { %6869 = vtanh.f32 %v659_v49  ;;  %v6339_v61 = vadd.f32 %v478_v23, %v7970_v59  ;;  %v480_v62 = vpop.f32.mrb[5].mxu0  ;;  %v593_v63 = vpop.f32.mrb[5].mxu1  ;;  %v6355_v21 = vadd.f32 %v591_v60, %v7976_v46 }
 0x116   :  { %6871 = vtanh.f32 %v691_v39  ;;  %v6340_v3 = vadd.f32 %v480_v62, %v7972_v52  ;;  %v6356_v32 = vadd.f32 %v593_v63, %v7974_v6 }
 0x117   :  { %6873 = vtanh.f32 %v730_v43  ;;  %v660_v19 = vmul.f32 0.5, %v6339_v61 }
 0x118   :  { %6875 = vtanh.f32 %v6353_v56  ;;  %v692_v20 = vmul.f32 0.5, %v6340_v3  ;;  %v484_v22 = vpop.f32.mrb[6].mxu0  ;;  %v597_v31 = vpop.f32.mrb[6].mxu1  ;;  %v732_v63 = vmul.f32 0.5, %v6356_v32 }
 0x119   :  { %6877 = vtanh.f32 %v660_v19  ;;  %v6341_v35 = vadd.f32 %v484_v22, %v7970_v59  ;;  %v486_v38 = vpop.f32.mrb[7].mxu0  ;;  %v599_v42 = vpop.f32.mrb[7].mxu1  ;;  %v6357_v50 = vadd.f32 %v597_v31, %v7976_v46 }
 0x11a   :  { %6879 = vtanh.f32 %v692_v20  ;;  %v6342_v49 = vadd.f32 %v486_v38, %v7972_v52 }
 0x11b   :  { %v6864_v39 = vpop.eup %6863  ;;  %6881 = vtanh.f32 %v731_v24  ;;  %v661_v43 = vmul.f32 0.5, %v6341_v35  ;;  %v6358_v24 = vadd.f32 %v599_v42, %v7974_v6 }
 0x11c   :  { %v6866_v56 = vpop.eup %6865  ;;  %v674_v23 = vadd.f32 1.0, %v6864_v39  ;;  %6883 = vtanh.f32 %v6355_v21  ;;  %v693_v60 = vmul.f32 0.5, %v6342_v49  ;;  %v490_v61 = vpop.f32.mrb[8].mxu0 }
 0x11d   :  { %v603_v62 = vpop.f32.mrb[8].mxu1  ;;  %v706_v3 = vadd.f32 1.0, %v6866_v56  ;;  %6885 = vtanh.f32 %v661_v43  ;;  %v6343_v19 = vadd.f32 %v490_v61, %v7970_v59  ;;  %v492_v22 = vpop.f32.mrb[9].mxu0 }
 0x11e   :  { %v605_v20 = vpop.f32.mrb[9].mxu1  ;;  %v6868_v0 = vpop.eup %6867  ;;  %v682_v38 = vmul.f32 0.5, %v674_v23  ;;  %6887 = vtanh.f32 %v693_v60  ;;  %v6344_v31 = vadd.f32 %v492_v22, %v7972_v52  ;;  %v6359_v32 = vadd.f32 %v603_v62, %v7976_v46 }
 0x11f   :  { %v6870_v35 = vpop.eup %6869  ;;  %v714_v39 = vmul.f32 0.5, %v706_v3  ;;  %6889 = vtanh.f32 %v6357_v50  ;;  %v662_v21 = vmul.f32 0.5, %v6343_v19  ;;  %v6360_v43 = vadd.f32 %v605_v20, %v7974_v6 }
 0x120   :  { %v6872_v49 = vpop.eup %6871  ;;  %v770_v37 = vmul.f32 %v6868_v0, %v682_v38  ;;  %v675_v56 = vadd.f32 1.0, %v6870_v35  ;;  %v496_v61 = vpop.f32.mrb[10].mxu0  ;;  %v694_v42 = vmul.f32 0.5, %v6344_v31  ;;  %v733_v19 = vmul.f32 0.5, %v6358_v24 }
 0x121   :  { %v609_v36 = vpop.f32.mrb[10].mxu1  ;;  %v6874_v5 = vpop.eup %6873  ;;  %v762_v23 = vmul.f32 0.0, %v714_v39  ;;  %v707_v60 = vadd.f32 1.0, %v6872_v49  ;;  %6891 = vtanh.f32 %v662_v21  ;;  %v6345_v0 = vadd.f32 %v496_v61, %v7970_v59 }
 0x122   :  { %v498_v4 = vpop.f32.mrb[11].mxu0  ;;  %v7998_v22 = vpop.f32.mrb[11].mxu1  ;;  %v683_v50 = vmul.f32 0.5, %v675_v56  ;;  %6893 = vtanh.f32 %v732_v63  ;;  %v734_v21 = vmul.f32 0.5, %v6360_v43 }
 0x123   :  { %v6876_v3 = vpop.eup %6875  ;;  %v8001_v62 = vadd.f32 %v770_v37, %v762_v23  ;;  %v715_v20 = vmul.f32 0.5, %v707_v60  ;;  %6895 = vtanh.f32 %v694_v42  ;;  %v663_v24 = vmul.f32 0.5, %v6345_v0 }
 0x124   :  { %v6878_v38 = vpop.eup %6877  ;;  %v771_v18 = vmul.f32 %v6876_v3, %v683_v50  ;;  %6897 = vtanh.f32 %v6359_v32  ;;  %v502_v31 = vpop.f32.mrb[12].mxu0  ;;  %v746_v23 = vadd.f32 1.0, %v6874_v5  ;;  %v6346_v42 = vadd.f32 %v498_v4, %v7972_v52 }
 0x125   :  { %9254 = vst [vmem:[#allocation21_spill] sm:$0xff] %v8001_v62  ;;  %v6880_v35 = vpop.eup %6879  ;;  %v676_v39 = vadd.f32 1.0, %v6878_v38  ;;  %v615_v49 = vpop.f32.mrb[12].mxu1  ;;  %6899 = vtanh.f32 %v8001_v62  ;;  %v763_v56 = vmul.f32 0.0, %v715_v20  ;;  %v6361_v50 = vadd.f32 %v609_v36, %v7976_v46 }
 0x126   :  { %v6882_v16 = vpop.eup %6881  ;;  %v708_v63 = vadd.f32 1.0, %v6880_v35  ;;  %v504_v11 = vpop.f32.mrb[13].mxu0  ;;  %6901 = vtanh.f32 %v733_v19  ;;  %v695_v0 = vmul.f32 0.5, %v6346_v42 }
 0x127   :  { %v8004_v61 = vpop.f32.mrb[13].mxu1  ;;  %v6884_v37 = vpop.eup %6883  ;;  %v684_v60 = vmul.f32 0.5, %v676_v39  ;;  %v8007_v32 = vadd.f32 %v771_v18, %v763_v56  ;;  %6903 = vtanh.f32 %v663_v24  ;;  %v6347_v56 = vadd.f32 %v502_v31, %v7970_v59 }
 0x128   :  { %v6886_v3 = vpop.eup %6885  ;;  %v716_v43 = vmul.f32 0.5, %v708_v63  ;;  %6905 = vtanh.f32 %v734_v21  ;;  %v508_v62 = vpop.f32.mrb[14].mxu0  ;;  %v754_v63 = vmul.f32 0.5, %v746_v23  ;;  %v6348_v31 = vadd.f32 %v504_v11, %v7972_v52 }
 0x129   :  { %9255 = vst [vmem:[#allocation22_spill] sm:$0xff] %v8007_v32  ;;  %v6888_v38 = vpop.eup %6887  ;;  %v772_v20 = vmul.f32 %v6884_v37, %v684_v60  ;;  %v677_v35 = vadd.f32 1.0, %v6886_v3  ;;  %v621_v10 = vpop.f32.mrb[14].mxu1  ;;  %6907 = vtanh.f32 %v8007_v32  ;;  %v664_v3 = vmul.f32 0.5, %v6347_v56 }
 0x12a   :  { %v6890_v55 = vpop.eup %6889  ;;  %v764_v5 = vmul.f32 0.0, %v716_v43  ;;  %v709_v19 = vadd.f32 1.0, %v6888_v38  ;;  %v510_v4 = vpop.f32.mrb[15].mxu0  ;;  %6909 = vtanh.f32 %v695_v0  ;;  %v6363_v43 = vadd.f32 %v615_v49, %v7976_v46 }
 0x12b   :  { %v8011_v39 = vpop.f32.mrb[15].mxu1  ;;  %v685_v18 = vmul.f32 0.5, %v677_v35  ;;  %v6892_v36 = vpop.eup %6891  ;;  %6911 = vtanh.f32 %v6361_v50  ;;  %v6362_v35 = vadd.f32 %v7998_v22, %v7974_v6  ;;  %v6349_v50 = vadd.f32 %v508_v62, %v7970_v59 }
 0x12c   :  { %v8014_v24 = vadd.f32 %v772_v20, %v764_v5  ;;  %v717_v21 = vmul.f32 0.5, %v709_v19  ;;  %v6894_v37 = vpop.eup %6893  ;;  %v678_v42 = vadd.f32 1.0, %v6892_v36  ;;  %v747_v5 = vadd.f32 1.0, %v6882_v16 }
 0x12d   :  { %v773_v60 = vmul.f32 %v6890_v55, %v685_v18  ;;  %v6896_v38 = vpop.eup %6895  ;;  %v696_v49 = vmul.f32 0.5, %v6348_v31  ;;  %v748_v22 = vadd.f32 1.0, %v6894_v37  ;;  %v735_v11 = vmul.f32 0.5, %v6362_v35 }
 0x12e   :  { %9256 = vst [vmem:[#allocation23_spill] sm:$0xff] %v8014_v24  ;;  %6913 = vtanh.f32 %v8014_v24  ;;  %v765_v32 = vmul.f32 0.0, %v717_v21  ;;  %v6898_v23 = vpop.eup %6897  ;;  %v686_v20 = vmul.f32 0.5, %v678_v42  ;;  %v710_v0 = vadd.f32 1.0, %v6896_v38 }
 0x12f   :  { %6915 = vtanh.f32 %v664_v3  ;;  %v6900_v55 = vpop.eup %6899  ;;  %v665_v42 = vmul.f32 0.5, %v6349_v50  ;;  %v6350_v16 = vadd.f32 %v510_v4, %v7972_v52  ;;  %v9257_v37 = vmov 0.0  }
 0x130   :  { %v8022_v19 = vadd.f32 %v773_v60, %v765_v32  ;;  %v6902_v18 = vpop.eup %6901  ;;  %v794_v56 = vmul.f32 %v6900_v55, %v754_v63  ;;  %v718_v36 = vmul.f32 0.5, %v710_v0  ;;  %v774_v21 = vmul.f32 %v6898_v23, %v686_v20 }
 0x131   :  { %6917 = vtanh.f32 %v6363_v43  ;;  %v6904_v24 = vpop.eup %6903  ;;  %v755_v32 = vmul.f32 0.5, %v747_v5  ;;  %v6364_v63 = vadd.f32 %v8004_v61, %v7974_v6  ;;  %v6365_v60 = vadd.f32 %v621_v10, %v7976_v46 }
 0x132   :  { %6919 = vtanh.f32 %v8022_v19  ;;  %v6906_v38 = vpop.eup %6905  ;;  %v766_v3 = vmul.f32 0.0, %v718_v36  ;;  %v679_v51 = vadd.f32 1.0, %v6904_v24  ;;  %1141 = vmatmul.mubr.f32.vlgmr.msra.gmra.mrb[16].mxu0 %v794_v56  ;;  %1254 = vmatmul.mubr.f32.vlgmr.msra.gmra.mrb[16].mxu1 %v794_v56  ;;  %v697_v31 = vmul.f32 0.5, %v6350_v16 }
 0x133   :  { %6921 = vtanh.f32 %v696_v49  ;;  %v6908_v62 = vpop.eup %6907  ;;  %1146 = vmatprep.mubr.f32.mxu0 %v9257_v37  ;;  %1259 = vmatprep.mubr.f32.mxu1 %v9257_v37  ;;  %v756_v23 = vmul.f32 0.5, %v748_v22  ;;  %v749_v20 = vadd.f32 1.0, %v6902_v18  ;;  %v6366_v36 = vadd.f32 %v8011_v39, %v7974_v6 }
 0x134   :  { %v6910_v43 = vpop.eup %6909  ;;  %v8031_v35 = vadd.f32 %v774_v21, %v766_v3  ;;  %v687_v24 = vmul.f32 0.5, %v679_v51  ;;  %6923 = vtanh.f32 %v665_v42  ;;  %5664 = vmatpush1.msk.msra.mxu0 %vm165_vm0, %v7623_v1  ;;  %5674 = vmatpush1.msk.msra.mxu1 %vm165_vm0, %v7628_v2  ;;  %v795_v10 = vmul.f32 %v6908_v62, %v755_v32 }
 0x135   :  { %v6912_v4 = vpop.eup %6911  ;;  %v711_v61 = vadd.f32 1.0, %v6910_v43  ;;  %6925 = vtanh.f32 %v735_v11  ;;  %5940 = vmatprep.subr.bf16.mxu0 %v7642_v9  ;;  %5972 = vmatprep.subr.bf16.mxu1 %v7648_v13  ;;  %v736_v2 = vmul.f32 0.5, %v6364_v63  ;;  %v757_v18 = vmul.f32 0.5, %v749_v20 }
 0x136   :  { %6927 = vtanh.f32 %v8031_v35  ;;  %v775_v51 = vmul.f32 %v6912_v4, %v687_v24  ;;  %1147 = vmatmul.mubr.f32.gmra.mrb[18].mxu0 %v795_v10  ;;  %1260 = vmatmul.mubr.f32.gmra.mrb[18].mxu1 %v795_v10  ;;  %v750_v22 = vadd.f32 1.0, %v6906_v38  ;;  %v737_v39 = vmul.f32 0.5, %v6366_v36 }
 0x137   :  { %v719_v50 = vmul.f32 0.5, %v711_v61  ;;  %6929 = vtanh.f32 %v697_v31  ;;  %1152 = vmatprep.mubr.f32.mxu0 %v9257_v37  ;;  %1265 = vmatprep.mubr.f32.mxu1 %v9257_v37 }
 0x138   :  { %v6914_v0 = vpop.eup %6913  ;;  %6931 = vtanh.f32 %v6365_v60  ;;  %v758_v38 = vmul.f32 0.5, %v750_v22 }
 0x139   :  { %v6916_v1 = vpop.eup %6915  ;;  %v796_v55 = vmul.f32 %v6914_v0, %v756_v23  ;;  %v767_v5 = vmul.f32 0.0, %v719_v50  ;;  %6933 = vtanh.f32 %v736_v2 }
 0x13a   :  { %v680_v49 = vadd.f32 1.0, %v6916_v1 }
 0x13b   :  { %v6918_v56 = vpop.eup %6917  ;;  %v8044_v11 = vadd.f32 %v775_v51, %v767_v5  ;;  %1153 = vmatmul.mubr.f32.gmra.mrb[20].mxu0 %v796_v55  ;;  %1266 = vmatmul.mubr.f32.gmra.mrb[20].mxu1 %v796_v55 }
 0x13c   :  { %v6920_v21 = vpop.eup %6919  ;;  %v688_v42 = vmul.f32 0.5, %v680_v49  ;;  %1158 = vmatprep.mubr.f32.mxu0 %v9257_v37  ;;  %1271 = vmatprep.mubr.f32.mxu1 %v9257_v37 }
 0x13d   :  { %v6922_v3 = vpop.eup %6921  ;;  %v797_v16 = vmul.f32 %v6920_v21, %v757_v18  ;;  %6935 = vtanh.f32 %v8044_v11 }
 0x13e   :  { %v712_v62 = vadd.f32 1.0, %v6922_v3  ;;  %v776_v32 = vmul.f32 %v6918_v56, %v688_v42  ;;  %v6924_v63 = vpop.eup %6923  ;;  %6937 = vtanh.f32 %v737_v39 }
 0x13f   :  { %v6926_v60 = vpop.eup %6925  ;;  %v681_v24 = vadd.f32 1.0, %v6924_v63  ;;  %1159 = vmatmul.mubr.f32.gmra.mrb[22].mxu0 %v797_v16  ;;  %1272 = vmatmul.mubr.f32.gmra.mrb[22].mxu1 %v797_v16 }
 0x140   :  { %v720_v43 = vmul.f32 0.5, %v712_v62  ;;  %v6928_v31 = vpop.eup %6927  ;;  %1164 = vmatprep.mubr.f32.mxu0 %v9257_v37  ;;  %1277 = vmatprep.mubr.f32.mxu1 %v9257_v37  ;;  %v751_v51 = vadd.f32 1.0, %v6926_v60  ;;  %v1495_v60 = vpop.permute.xlu0 %1494 }
 0x141   :  { %v6930_v4 = vpop.eup %6929  ;;  %v689_v10 = vmul.f32 0.5, %v681_v24  ;;  %v798_v23 = vmul.f32 %v6928_v31, %v758_v38  ;;  %v1497_v38 = vpop.permute.xlu1 %1496 }
 0x142   :  { %v768_v61 = vmul.f32 0.0, %v720_v43  ;;  %v6932_v20 = vpop.eup %6931  ;;  %v713_v0 = vadd.f32 1.0, %v6930_v4  ;;  %v759_v5 = vmul.f32 0.5, %v751_v51  ;;  %v9261_v51 = vld [vmem:[#allocation16_spill] sm:$0xff] }
 0x143   :  { %v777_v1 = vmul.f32 %v6932_v20, %v689_v10  ;;  %1165 = vmatmul.mubr.f32.gmra.mrb[24].mxu0 %v798_v23  ;;  %1278 = vmatmul.mubr.f32.gmra.mrb[24].mxu1 %v798_v23  ;;  %v6934_v55 = vpop.eup %6933  ;;  %v9259_v10 = vld [vmem:[#allocation14_spill] sm:$0xff]  ;;  %v9260_v20 = vld [vmem:[#allocation15_spill] sm:$0xff] }
 0x144   :  { %v8051_v50 = vadd.f32 %v776_v32, %v768_v61  ;;  %v721_v2 = vmul.f32 0.5, %v713_v0  ;;  %1170 = vmatprep.mubr.f32.mxu0 %v9257_v37  ;;  %1283 = vmatprep.mubr.f32.mxu1 %v9257_v37  ;;  %v752_v21 = vadd.f32 1.0, %v6934_v55  ;;  %v1499_v43 = vpop.permute.xlu0 %1498  ;;  %v9258_v61 = vld [vmem:[#allocation13_spill] sm:$0xff] }
 0x145   :  { %v1501_v24 = vpop.permute.xlu1 %1500  ;;  %v9262_v0 = vld [vmem:[#allocation17_spill] sm:$0xff] }
 0x146   :  { %6939 = vtanh.f32 %v8051_v50  ;;  %v769_v49 = vmul.f32 0.0, %v721_v2  ;;  %v760_v42 = vmul.f32 0.5, %v752_v21  ;;  %v9264_v55 = vld [vmem:[#allocation9_spill] sm:$0xff]  ;;  %v8141_v21 = vld [vmem:[%s9184_s0 + $0x18] sm:$0xff] }
 0x147   :  { %v6936_v56 = vpop.eup %6935 }
 0x148   :  { %v8056_v18 = vadd.f32 %v777_v1, %v769_v49  ;;  %v799_v36 = vmul.f32 %v6936_v56, %v759_v5  ;;  %v6938_v22 = vpop.eup %6937  ;;  %v1503_v31 = vpop.permute.xlu0 %1502  ;;  %v9263_v1 = vld [vmem:[#allocation18_spill] sm:$0xff]  ;;  %v9266_v49 = vld [vmem:[#allocation19_spill] sm:$0xff]  ;;  %v9267_v56 = vld [vmem:[#allocation20_spill] sm:$0xff] }
 0x149   :  { %v753_v16 = vadd.f32 1.0, %v6938_v22  ;;  %v1505_v4 = vpop.permute.xlu1 %1504  ;;  %v9265_v5 = vld [vmem:[#allocation10_spill] sm:$0xff]  ;;  %2170 = vrot.lane.b32.xlu0 %v9266_v49, %s7563_s3  ;;  %2172 = vrot.lane.b32.xlu1 %v9267_v56, %s7563_s3  ;;  %9269 = vst [vmem:[#allocation20_spill] sm:$0xff] %v8141_v21  ;;  %v8148_v22 = vld [vmem:[%s9184_s0 + $0x20] sm:$0xff] }
 0x14a   :  { %6941 = vtanh.f32 %v8056_v18  ;;  %1171 = vmatmul.mubr.f32.gmra.mrb[26].mxu0 %v799_v36  ;;  %1284 = vmatmul.mubr.f32.gmra.mrb[26].mxu1 %v799_v36  ;;  %v8136_v36 = vld [vmem:[%s9184_s0 + $0x10] sm:$0xff]  ;;  %9270 = vst [vmem:[#allocation24_spill] sm:$0xff] %v8148_v22 }
 0x14b   :  { %1176 = vmatprep.mubr.f32.mxu0 %v9257_v37  ;;  %1289 = vmatprep.mubr.f32.mxu1 %v9257_v37  ;;  %v761_v32 = vmul.f32 0.5, %v753_v16  ;;  %9268 = vst [vmem:[#allocation19_spill] sm:$0xff] %v8136_v36  ;;  %v8165_v16 = vld [vmem:[%s9184_s0 + $0x38] sm:$0xff] }
 0x14c   :  { %v1507_v23 = vpop.permute.xlu0 %1506  ;;  %9273 = vst [vmem:[#allocation27_spill] sm:$0xff] %v8165_v16 }
 0x14d   :  { %v1509_v2 = vpop.permute.xlu1 %1508  ;;  %2174 = vrot.lane.b32.xlu0 %v8136_v36, %s7563_s3  ;;  %2176 = vrot.lane.b32.xlu1 %v8141_v21, %s7563_s3 }
 0x150   :  { %v6940_v3 = vpop.eup %6939 }
 0x151   :  { %v800_v62 = vmul.f32 %v6940_v3, %v760_v42  ;;  %v8153_v42 = vld [vmem:[%s9184_s0 + $0x28] sm:$0xff]  ;;  %2178 = vrot.lane.b32.xlu0 %v8148_v22, %s7563_s3  ;;  %v8160_v3 = vld [vmem:[%s9184_s0 + $0x30] sm:$0xff] }
 0x152   :  { %9271 = vst [vmem:[#allocation25_spill] sm:$0xff] %v8153_v42  ;;  %2180 = vrot.lane.b32.xlu1 %v8153_v42, %s7563_s3  ;;  %9272 = vst [vmem:[#allocation26_spill] sm:$0xff] %v8160_v3 }
 0x153   :  { %1177 = vmatmul.mubr.f32.gmra.mrb[28].mxu0 %v800_v62  ;;  %1290 = vmatmul.mubr.f32.gmra.mrb[28].mxu1 %v800_v62 }
 0x154   :  { %1182 = vmatprep.mubr.f32.mxu0 %v9257_v37  ;;  %1295 = vmatprep.mubr.f32.mxu1 %v9257_v37  ;;  %v6942_v63 = vpop.eup %6941 }
 0x155   :  { %v801_v39 = vmul.f32 %v6942_v63, %v761_v32  ;;  %2182 = vrot.lane.b32.xlu0 %v8160_v3, %s7563_s3 }
 0x156   :  { %2184 = vrot.lane.b32.xlu1 %v8165_v16, %s7563_s3 }
 0x157   :  { %1183 = vmatmul.mubr.f32.gmra.mrb[30].mxu0 %v801_v39  ;;  %1296 = vmatmul.mubr.f32.gmra.mrb[30].mxu1 %v801_v39 }
 0x158   :  { %1590 = vmatprep.mubr.f32.mxu0 %v9257_v37  ;;  %1703 = vmatprep.mubr.f32.mxu1 %v9257_v37 }
 0x15b   :  { %5665 = vmatmul.mubr.msk.f32.vlgmr.msra.gmra.mrb[32].mxu0 %vm140_vm1, %v1495_v60  ;;  %5675 = vmatmul.mubr.msk.f32.vlgmr.msra.gmra.mrb[32].mxu1 %vm140_vm1, %v1495_v60 }
 0x15c   :  { %5942 = vmatpush1.bf16.msra.mxu0 %v7650_v14  ;;  %5974 = vmatpush1.bf16.msra.mxu1 %v7656_v17 }
 0x15d   :  { %1596 = vmatprep.mubr.f32.mxu0 %v9257_v37  ;;  %1709 = vmatprep.mubr.f32.mxu1 %v9257_v37 }
 0x15e   :  { %5944 = vmatprep.subr.bf16.mxu0 %v7667_v25  ;;  %5976 = vmatprep.subr.bf16.mxu1 %v7669_v26 }
 0x15f   :  { %5666 = vmatmul.mubr.msk.f32.gmra.mrb[34].mxu0 %vm140_vm1, %v1497_v38  ;;  %5676 = vmatmul.mubr.msk.f32.gmra.mrb[34].mxu1 %vm140_vm1, %v1497_v38 }
 0x160   :  { %5946 = vmatpush1.bf16.msra.mxu0 %v7673_v29  ;;  %5978 = vmatpush1.bf16.msra.mxu1 %v7675_v30 }
 0x161   :  { %1602 = vmatprep.mubr.f32.mxu0 %v9257_v37  ;;  %1715 = vmatprep.mubr.f32.mxu1 %v9257_v37 }
 0x162   :  { %5948 = vmatprep.subr.bf16.mxu0 %v7690_v40  ;;  %5980 = vmatprep.subr.bf16.mxu1 %v7692_v41 }
 0x163   :  { %5667 = vmatmul.mubr.msk.f32.gmra.mrb[36].mxu0 %vm140_vm1, %v1499_v43  ;;  %5677 = vmatmul.mubr.msk.f32.gmra.mrb[36].mxu1 %vm140_vm1, %v1499_v43 }
 0x164   :  { %5950 = vmatpush1.bf16.msra.mxu0 %v7696_v44  ;;  %5982 = vmatpush1.bf16.msra.mxu1 %v7698_v45 }
 0x165   :  { %1608 = vmatprep.mubr.f32.mxu0 %v9257_v37  ;;  %1721 = vmatprep.mubr.f32.mxu1 %v9257_v37 }
 0x166   :  { %5952 = vmatprep.subr.bf16.mxu0 %v7713_v53  ;;  %5984 = vmatprep.subr.bf16.mxu1 %v7715_v54 }
 0x167   :  { %5668 = vmatmul.mubr.msk.f32.gmra.mrb[38].mxu0 %vm140_vm1, %v1501_v24  ;;  %5678 = vmatmul.mubr.msk.f32.gmra.mrb[38].mxu1 %vm140_vm1, %v1501_v24 }
 0x168   :  { %5954 = vmatpush1.bf16.msra.mxu0 %v7719_v57  ;;  %5986 = vmatpush1.bf16.msra.mxu1 %v7721_v58 }
 0x169   :  { %1614 = vmatprep.mubr.f32.mxu0 %v9257_v37  ;;  %1727 = vmatprep.mubr.f32.mxu1 %v9257_v37 }
 0x16a   :  { %5956 = vmatprep.subr.bf16.mxu0 %v7736_v7  ;;  %5988 = vmatprep.subr.bf16.mxu1 %v7738_v8 }
 0x16b   :  { %5669 = vmatmul.mubr.msk.f32.gmra.mrb[40].mxu0 %vm140_vm1, %v1503_v31  ;;  %5679 = vmatmul.mubr.msk.f32.gmra.mrb[40].mxu1 %vm140_vm1, %v1503_v31 }
 0x16c   :  { %5958 = vmatpush1.bf16.msra.mxu0 %v7742_v12  ;;  %5990 = vmatpush1.bf16.msra.mxu1 %v7744_v15 }
 0x16d   :  { %1620 = vmatprep.mubr.f32.mxu0 %v9257_v37  ;;  %1733 = vmatprep.mubr.f32.mxu1 %v9257_v37 }
 0x16e   :  { %5960 = vmatprep.subr.bf16.mxu0 %v7759_v27  ;;  %5992 = vmatprep.subr.bf16.mxu1 %v7761_v28 }
 0x16f   :  { %5670 = vmatmul.mubr.msk.f32.gmra.mrb[42].mxu0 %vm140_vm1, %v1505_v4  ;;  %5680 = vmatmul.mubr.msk.f32.gmra.mrb[42].mxu1 %vm140_vm1, %v1505_v4 }
 0x170   :  { %5962 = vmatpush1.bf16.msra.mxu0 %v7765_v33  ;;  %5994 = vmatpush1.bf16.msra.mxu1 %v7767_v34 }
 0x171   :  { %1626 = vmatprep.mubr.f32.mxu0 %v9257_v37  ;;  %1739 = vmatprep.mubr.f32.mxu1 %v9257_v37 }
 0x172   :  { %5964 = vmatprep.subr.bf16.mxu0 %v7782_v47  ;;  %5996 = vmatprep.subr.bf16.mxu1 %v7784_v48 }
 0x173   :  { %5671 = vmatmul.mubr.msk.f32.gmra.mrb[44].mxu0 %vm140_vm1, %v1507_v23  ;;  %5681 = vmatmul.mubr.msk.f32.gmra.mrb[44].mxu1 %vm140_vm1, %v1507_v23 }
 0x174   :  { %5966 = vmatpush1.bf16.msra.mxu0 %v9258_v61  ;;  %5998 = vmatpush1.bf16.msra.mxu1 %v9259_v10 }
 0x175   :  { %5968 = vmatprep.subr.bf16.mxu0 %v9260_v20  ;;  %6000 = vmatprep.subr.bf16.mxu1 %v9261_v51 }
 0x176   :  { %1632 = vmatprep.mubr.f32.mxu0 %v9257_v37  ;;  %1745 = vmatprep.mubr.f32.mxu1 %v9257_v37 }
 0x177   :  { %5672 = vmatmul.mubr.msk.f32.gmra.mrb[46].mxu0 %vm140_vm1, %v1509_v2  ;;  %5682 = vmatmul.mubr.msk.f32.gmra.mrb[46].mxu1 %vm140_vm1, %v1509_v2 }
 0x178   :  { %5970 = vmatpush1.bf16.msra.mxu0 %v9262_v0  ;;  %6002 = vmatpush1.bf16.msra.mxu1 %v9263_v1 }
 0x179   :  { %5683 = vmatprep.subr.msk.mxu0 %vm165_vm0, %v9264_v55  ;;  %5693 = vmatprep.subr.msk.mxu1 %vm165_vm0, %v9265_v5 }
 0x17a   :  { %1816 = vmatprep.mubr.f32.mxu0 %v9257_v37  ;;  %1929 = vmatprep.mubr.f32.mxu1 %v9257_v37 }
 0x205   :  { %v1142_v62 = vpop.f32.mrb[16].mxu0  ;;  %v1255_v32 = vpop.f32.mrb[16].mxu1 }
 0x206   :  { %v6367_v63 = vadd.f32 %v1142_v62, %v7970_v59  ;;  %v1144_v39 = vpop.f32.mrb[17].mxu0  ;;  %v1257_v60 = vpop.f32.mrb[17].mxu1  ;;  %v6383_v4 = vadd.f32 %v1255_v32, %v7976_v46 }
 0x207   :  { %v6368_v38 = vadd.f32 %v1144_v39, %v7972_v52  ;;  %v6384_v31 = vadd.f32 %v1257_v60, %v7974_v6 }
 0x208   :  { %v1334_v43 = vmul.f32 0.5, %v6367_v63 }
 0x209   :  { %v1366_v24 = vmul.f32 0.5, %v6368_v38  ;;  %v1148_v23 = vpop.f32.mrb[18].mxu0  ;;  %v1261_v2 = vpop.f32.mrb[18].mxu1  ;;  %v1406_v3 = vmul.f32 0.5, %v6384_v31 }
 0x20a   :  { %6943 = vtanh.f32 %v1334_v43  ;;  %v6369_v49 = vadd.f32 %v1148_v23, %v7970_v59  ;;  %v1150_v56 = vpop.f32.mrb[19].mxu0  ;;  %v1263_v16 = vpop.f32.mrb[19].mxu1  ;;  %v6385_v63 = vadd.f32 %v1261_v2, %v7976_v46 }
 0x20b   :  { %6945 = vtanh.f32 %v1366_v24  ;;  %v6370_v62 = vadd.f32 %v1150_v56, %v7972_v52  ;;  %v6386_v39 = vadd.f32 %v1263_v16, %v7974_v6 }
 0x20c   :  { %v1335_v42 = vmul.f32 0.5, %v6369_v49  ;;  %6947 = vtanh.f32 %v6383_v4 }
 0x20d   :  { %v1367_v60 = vmul.f32 0.5, %v6370_v62  ;;  %v1407_v56 = vmul.f32 0.5, %v6386_v39 }
 0x20e   :  { %v1154_v38 = vpop.f32.mrb[20].mxu0  ;;  %v1267_v43 = vpop.f32.mrb[20].mxu1  ;;  %6949 = vtanh.f32 %v1335_v42 }
 0x20f   :  { %v6371_v32 = vadd.f32 %v1154_v38, %v7970_v59  ;;  %v1156_v24 = vpop.f32.mrb[21].mxu0  ;;  %v1269_v22 = vpop.f32.mrb[21].mxu1  ;;  %6951 = vtanh.f32 %v1367_v60  ;;  %v6387_v16 = vadd.f32 %v1267_v43, %v7976_v46 }
 0x210   :  { %v6372_v23 = vadd.f32 %v1156_v24, %v7972_v52  ;;  %6953 = vtanh.f32 %v1406_v3  ;;  %v6388_v3 = vadd.f32 %v1269_v22, %v7974_v6 }
 0x211   :  { %v1336_v31 = vmul.f32 0.5, %v6371_v32  ;;  %6955 = vtanh.f32 %v6385_v63 }
 0x212   :  { %v1368_v4 = vmul.f32 0.5, %v6372_v23  ;;  %v1160_v49 = vpop.f32.mrb[22].mxu0  ;;  %v1273_v2 = vpop.f32.mrb[22].mxu1 }
 0x213   :  { %6957 = vtanh.f32 %v1336_v31  ;;  %v6373_v62 = vadd.f32 %v1160_v49, %v7970_v59  ;;  %v1162_v42 = vpop.f32.mrb[23].mxu0  ;;  %v1275_v21 = vpop.f32.mrb[23].mxu1  ;;  %v6389_v43 = vadd.f32 %v1273_v2, %v7976_v46 }
 0x214   :  { %v6944_v38 = vpop.eup %6943  ;;  %6959 = vtanh.f32 %v1368_v4  ;;  %v6374_v60 = vadd.f32 %v1162_v42, %v7972_v52 }
 0x215   :  { %v6946_v36 = vpop.eup %6945  ;;  %v1350_v24 = vadd.f32 1.0, %v6944_v38  ;;  %6961 = vtanh.f32 %v1407_v56  ;;  %v1337_v39 = vmul.f32 0.5, %v6373_v62 }
 0x216   :  { %v1382_v63 = vadd.f32 1.0, %v6946_v36  ;;  %6963 = vtanh.f32 %v6387_v16  ;;  %v1369_v32 = vmul.f32 0.5, %v6374_v60  ;;  %v1166_v23 = vpop.f32.mrb[24].mxu0  ;;  %v1279_v31 = vpop.f32.mrb[24].mxu1  ;;  %v1408_v36 = vmul.f32 0.5, %v6388_v3  ;;  %v9274_v60 = vld [vmem:[#allocation21_spill] sm:$0xff] }
 0x217   :  { %v1358_v49 = vmul.f32 0.5, %v1350_v24  ;;  %6965 = vtanh.f32 %v1337_v39  ;;  %v6375_v5 = vadd.f32 %v1166_v23, %v7970_v59  ;;  %v1168_v4 = vpop.f32.mrb[25].mxu0  ;;  %v1281_v55 = vpop.f32.mrb[25].mxu1  ;;  %v6390_v16 = vadd.f32 %v1275_v21, %v7974_v6 }
 0x218   :  { %v6948_v42 = vpop.eup %6947  ;;  %v1390_v1 = vmul.f32 0.5, %v1382_v63  ;;  %6967 = vtanh.f32 %v1369_v32  ;;  %v6376_v56 = vadd.f32 %v1168_v4, %v7972_v52  ;;  %v6391_v63 = vadd.f32 %v1279_v31, %v7976_v46 }
 0x219   :  { %v6950_v22 = vpop.eup %6949  ;;  %v1446_v62 = vmul.f32 %v6948_v42, %v1358_v49  ;;  %v1338_v2 = vmul.f32 0.5, %v6375_v5  ;;  %6969 = vtanh.f32 %v6389_v43  ;;  %v1409_v5 = vmul.f32 0.5, %v6390_v16 }
 0x21a   :  { %v6952_v38 = vpop.eup %6951  ;;  %v1438_v0 = vmul.f32 %v1390_v1, %v9274_v60  ;;  %v1351_v24 = vadd.f32 1.0, %v6950_v22  ;;  %v1370_v39 = vmul.f32 0.5, %v6376_v56  ;;  %v6392_v22 = vadd.f32 %v1281_v55, %v7974_v6 }
 0x21b   :  { %v6954_v23 = vpop.eup %6953  ;;  %v1383_v51 = vadd.f32 1.0, %v6952_v38  ;;  %6971 = vtanh.f32 %v1338_v2 }
 0x21c   :  { %v6956_v32 = vpop.eup %6955  ;;  %v8189_v20 = vadd.f32 %v1446_v62, %v1438_v0  ;;  %v1359_v4 = vmul.f32 0.5, %v1351_v24  ;;  %6973 = vtanh.f32 %v1370_v39  ;;  %v9276_v0 = vld [vmem:[#allocation22_spill] sm:$0xff]  ;;  %v1422_v16 = vadd.f32 1.0, %v6954_v23 }
 0x21d   :  { %v6958_v3 = vpop.eup %6957  ;;  %v1391_v49 = vmul.f32 0.5, %v1383_v51  ;;  %6975 = vtanh.f32 %v1408_v36  ;;  %v1172_v21 = vpop.f32.mrb[26].mxu0  ;;  %v1410_v48 = vmul.f32 0.5, %v6392_v22 }
 0x21e   :  { %9275 = vst [vmem:[#allocation21_spill] sm:$0xff] %v8189_v20  ;;  %v1285_v42 = vpop.f32.mrb[26].mxu1  ;;  %v6960_v1 = vpop.eup %6959  ;;  %6977 = vtanh.f32 %v8189_v20  ;;  %v1447_v43 = vmul.f32 %v6956_v32, %v1359_v4  ;;  %v1352_v56 = vadd.f32 1.0, %v6958_v3  ;;  %v6377_v51 = vadd.f32 %v1172_v21, %v7970_v59 }
 0x21f   :  { %v1174_v2 = vpop.f32.mrb[27].mxu0  ;;  %v1287_v31 = vpop.f32.mrb[27].mxu1  ;;  %v1439_v62 = vmul.f32 %v1391_v49, %v9276_v0  ;;  %v1384_v60 = vadd.f32 1.0, %v6960_v1  ;;  %6979 = vtanh.f32 %v6391_v63  ;;  %v9277_v63 = vld [vmem:[#allocation23_spill] sm:$0xff] }
 0x220   :  { %v6962_v38 = vpop.eup %6961  ;;  %v1360_v24 = vmul.f32 0.5, %v1352_v56  ;;  %v6378_v39 = vadd.f32 %v1174_v2, %v7972_v52  ;;  %6981 = vtanh.f32 %v1409_v5  ;;  %v1339_v55 = vmul.f32 0.5, %v6377_v51 }
 0x221   :  { %v6964_v36 = vpop.eup %6963  ;;  %v8196_v20 = vadd.f32 %v1447_v43, %v1439_v62  ;;  %v1392_v32 = vmul.f32 0.5, %v1384_v60  ;;  %v6394_v49 = vadd.f32 %v1287_v31, %v7974_v6  ;;  %v6393_v43 = vadd.f32 %v1285_v42, %v7976_v46 }
 0x222   :  { %v6966_v10 = vpop.eup %6965  ;;  %v1448_v3 = vmul.f32 %v6964_v36, %v1360_v24  ;;  %v1371_v1 = vmul.f32 0.5, %v6378_v39  ;;  %v1430_v5 = vmul.f32 0.5, %v1422_v16 }
 0x223   :  { %v6968_v4 = vpop.eup %6967  ;;  %v1353_v61 = vadd.f32 1.0, %v6966_v10  ;;  %6983 = vtanh.f32 %v8196_v20  ;;  %v1440_v21 = vmul.f32 %v1392_v32, %v9277_v63  ;;  %v1411_v24 = vmul.f32 0.5, %v6394_v49 }
 0x224   :  { %v1385_v23 = vadd.f32 1.0, %v6968_v4  ;;  %v6970_v56 = vpop.eup %6969  ;;  %6985 = vtanh.f32 %v1339_v55 }
 0x225   :  { %v1361_v2 = vmul.f32 0.5, %v1353_v61  ;;  %v6972_v0 = vpop.eup %6971  ;;  %v8202_v62 = vadd.f32 %v1448_v3, %v1440_v21  ;;  %6987 = vtanh.f32 %v1371_v1  ;;  %v1423_v3 = vadd.f32 1.0, %v6962_v38 }
 0x226   :  { %v1393_v60 = vmul.f32 0.5, %v1385_v23  ;;  %v1178_v10 = vpop.f32.mrb[28].mxu0  ;;  %v1291_v22 = vpop.f32.mrb[28].mxu1  ;;  %v1354_v36 = vadd.f32 1.0, %v6972_v0  ;;  %6989 = vtanh.f32 %v1410_v48 }
 0x227   :  { %9278 = vst [vmem:[#allocation22_spill] sm:$0xff] %v8202_v62  ;;  %v6974_v31 = vpop.eup %6973  ;;  %v1449_v51 = vmul.f32 %v6970_v56, %v1361_v2  ;;  %v1180_v32 = vpop.f32.mrb[29].mxu0  ;;  %6991 = vtanh.f32 %v8202_v62  ;;  %v6379_v16 = vadd.f32 %v1178_v10, %v7970_v59  ;;  %v6395_v0 = vadd.f32 %v1291_v22, %v7976_v46 }
 0x228   :  { %v1293_v39 = vpop.f32.mrb[29].mxu1  ;;  %v6976_v4 = vpop.eup %6975  ;;  %v1441_v61 = vmul.f32 %v1393_v60, %v8022_v19  ;;  %v1386_v42 = vadd.f32 1.0, %v6974_v31  ;;  %v1362_v63 = vmul.f32 0.5, %v1354_v36  ;;  %6993 = vtanh.f32 %v6393_v43 }
 0x229   :  { %v6978_v55 = vpop.eup %6977  ;;  %v6380_v21 = vadd.f32 %v1180_v32, %v7972_v52  ;;  %v1340_v56 = vmul.f32 0.5, %v6379_v16  ;;  %6995 = vtanh.f32 %v1411_v24  ;;  %v1424_v62 = vadd.f32 1.0, %v6976_v4 }
 0x22a   :  { %v6980_v23 = vpop.eup %6979  ;;  %v1470_v1 = vmul.f32 %v6978_v55, %v1430_v5  ;;  %v8208_v48 = vadd.f32 %v1449_v51, %v1441_v61  ;;  %v1394_v49 = vmul.f32 0.5, %v1386_v42  ;;  %v1184_v60 = vpop.f32.mrb[30].mxu0  ;;  %v1431_v36 = vmul.f32 0.5, %v1423_v3  ;;  %v8229_v61 = vld [vmem:[%s9185_s1 + $0x8] sm:$0xff] }
 0x22b   :  { %v1450_v2 = vmul.f32 %v6980_v23, %v1362_v63  ;;  %v1372_v19 = vmul.f32 0.5, %v6380_v21  ;;  %v1297_v31 = vpop.f32.mrb[30].mxu1  ;;  %v6982_v10 = vpop.eup %6981  ;;  %v6381_v43 = vadd.f32 %v1184_v60, %v7970_v59  ;;  %v1432_v63 = vmul.f32 0.5, %v1424_v62 }
 0x22c   :  { %6997 = vtanh.f32 %v8208_v48  ;;  %v1442_v38 = vmul.f32 %v1394_v49, %v8031_v35  ;;  %v1186_v5 = vpop.f32.mrb[31].mxu0  ;;  %v1299_v51 = vpop.f32.mrb[31].mxu1  ;;  %1817 = vmatmul.mubr.f32.vlgmr.msra.gmra.mrb[32].mxu0 %v1470_v1  ;;  %1930 = vmatmul.mubr.f32.vlgmr.msra.gmra.mrb[32].mxu1 %v1470_v1  ;;  %v8222_v35 = vld [vmem:[%s9185_s1] sm:$0xff]  ;;  %v6396_v23 = vadd.f32 %v1293_v39, %v7974_v6  ;;  %v1425_v49 = vadd.f32 1.0, %v6982_v10 }
 0x22d   :  { %6999 = vtanh.f32 %v1340_v56  ;;  %v6382_v24 = vadd.f32 %v1186_v5, %v7972_v52  ;;  %1822 = vmatprep.mubr.f32.mxu0 %v9257_v37  ;;  %1935 = vmatprep.mubr.f32.mxu1 %v9257_v37  ;;  %v6984_v22 = vpop.eup %6983  ;;  %v1341_v4 = vmul.f32 0.5, %v6381_v43 }
 0x22e   :  { %v8217_v32 = vadd.f32 %v1450_v2, %v1442_v38  ;;  %7001 = vtanh.f32 %v1372_v19  ;;  %5684 = vmatpush1.msk.msra.mxu0 %vm165_vm0, %v8222_v35  ;;  %5694 = vmatpush1.msk.msra.mxu1 %vm165_vm0, %v8229_v61  ;;  %v6986_v42 = vpop.eup %6985  ;;  %v1471_v55 = vmul.f32 %v6984_v22, %v1431_v36  ;;  %v6397_v2 = vadd.f32 %v1297_v31, %v7976_v46 }
 0x22f   :  { %7003 = vtanh.f32 %v6395_v0  ;;  %v1373_v16 = vmul.f32 0.5, %v6382_v24  ;;  %6004 = vmatprep.subr.bf16.mxu0 %v7642_v9  ;;  %6036 = vmatprep.subr.bf16.mxu1 %v7648_v13  ;;  %v6988_v3 = vpop.eup %6987  ;;  %v1355_v21 = vadd.f32 1.0, %v6986_v42  ;;  %v1412_v39 = vmul.f32 0.5, %v6396_v23 }
 0x230   :  { %7005 = vtanh.f32 %v8217_v32  ;;  %v6990_v1 = vpop.eup %6989  ;;  %v1387_v56 = vadd.f32 1.0, %v6988_v3  ;;  %1823 = vmatmul.mubr.f32.gmra.mrb[34].mxu0 %v1471_v55  ;;  %1936 = vmatmul.mubr.f32.gmra.mrb[34].mxu1 %v1471_v55  ;;  %v1433_v10 = vmul.f32 0.5, %v1425_v49  ;;  %v6398_v22 = vadd.f32 %v1299_v51, %v7974_v6 }
 0x231   :  { %7007 = vtanh.f32 %v1341_v4  ;;  %v6992_v0 = vpop.eup %6991  ;;  %v1363_v19 = vmul.f32 0.5, %v1355_v21  ;;  %1828 = vmatprep.mubr.f32.mxu0 %v9257_v37  ;;  %1941 = vmatprep.mubr.f32.mxu1 %v9257_v37  ;;  %v1426_v36 = vadd.f32 1.0, %v6990_v1 }
 0x232   :  { %v6994_v62 = vpop.eup %6993  ;;  %v1395_v60 = vmul.f32 0.5, %v1387_v56  ;;  %7009 = vtanh.f32 %v1373_v16  ;;  %v1472_v38 = vmul.f32 %v6992_v0, %v1432_v63  ;;  %v1413_v1 = vmul.f32 0.5, %v6398_v22 }
 0x233   :  { %v1451_v43 = vmul.f32 %v6994_v62, %v1363_v19  ;;  %v6996_v5 = vpop.eup %6995  ;;  %7011 = vtanh.f32 %v6397_v2  ;;  %v1434_v21 = vmul.f32 0.5, %v1426_v36 }
 0x234   :  { %v1443_v24 = vmul.f32 %v1395_v60, %v8044_v11  ;;  %1829 = vmatmul.mubr.f32.gmra.mrb[36].mxu0 %v1472_v38  ;;  %1942 = vmatmul.mubr.f32.gmra.mrb[36].mxu1 %v1472_v38  ;;  %7013 = vtanh.f32 %v1412_v39  ;;  %v1427_v38 = vadd.f32 1.0, %v6996_v5 }
 0x235   :  { %1834 = vmatprep.mubr.f32.mxu0 %v9257_v37  ;;  %1947 = vmatprep.mubr.f32.mxu1 %v9257_v37 }
 0x236   :  { %v6998_v31 = vpop.eup %6997  ;;  %v8244_v42 = vadd.f32 %v1451_v43, %v1443_v24 }
 0x237   :  { %v7000_v4 = vpop.eup %6999  ;;  %v1473_v16 = vmul.f32 %v6998_v31, %v1433_v10 }
 0x238   :  { %v7002_v55 = vpop.eup %7001  ;;  %v1356_v3 = vadd.f32 1.0, %v7000_v4  ;;  %7015 = vtanh.f32 %v8244_v42  ;;  %v1435_v4 = vmul.f32 0.5, %v1427_v38  ;;  %v9279_v38 = vld [vmem:[#allocation12_spill] sm:$0xff] }
 0x239   :  { %v7004_v63 = vpop.eup %7003  ;;  %v1388_v11 = vadd.f32 1.0, %v7002_v55  ;;  %1835 = vmatmul.mubr.f32.gmra.mrb[38].mxu0 %v1473_v16  ;;  %1948 = vmatmul.mubr.f32.gmra.mrb[38].mxu1 %v1473_v16  ;;  %7017 = vtanh.f32 %v1413_v1 }
 0x23a   :  { %v7006_v23 = vpop.eup %7005  ;;  %v1364_v51 = vmul.f32 0.5, %v1356_v3  ;;  %1840 = vmatprep.mubr.f32.mxu0 %v9257_v37  ;;  %1953 = vmatprep.mubr.f32.mxu1 %v9257_v37 }
 0x23b   :  { %v7008_v49 = vpop.eup %7007  ;;  %v1396_v56 = vmul.f32 0.5, %v1388_v11  ;;  %v1474_v2 = vmul.f32 %v7006_v23, %v1434_v21 }
 0x23c   :  { %v1452_v0 = vmul.f32 %v7004_v63, %v1364_v51  ;;  %v1357_v19 = vadd.f32 1.0, %v7008_v49  ;;  %v7010_v62 = vpop.eup %7009 }
 0x23d   :  { %v1444_v60 = vmul.f32 %v1396_v56, %v8051_v50  ;;  %1841 = vmatmul.mubr.f32.gmra.mrb[40].mxu0 %v1474_v2  ;;  %1954 = vmatmul.mubr.f32.gmra.mrb[40].mxu1 %v1474_v2  ;;  %v1389_v39 = vadd.f32 1.0, %v7010_v62  ;;  %v7012_v10 = vpop.eup %7011  ;;  %v2171_v56 = vpop.permute.xlu0 %2170 }
 0x23e   :  { %v1365_v43 = vmul.f32 0.5, %v1357_v19  ;;  %1846 = vmatprep.mubr.f32.mxu0 %v9257_v37  ;;  %1959 = vmatprep.mubr.f32.mxu1 %v9257_v37  ;;  %v7014_v22 = vpop.eup %7013  ;;  %v2173_v2 = vpop.permute.xlu1 %2172 }
 0x23f   :  { %v8252_v36 = vadd.f32 %v1452_v0, %v1444_v60  ;;  %v1397_v24 = vmul.f32 0.5, %v1389_v39  ;;  %v1428_v3 = vadd.f32 1.0, %v7014_v22  ;;  %v9280_v39 = vld [vmem:[#allocation13_spill] sm:$0xff]  ;;  %v9283_v22 = vld [vmem:[#allocation16_spill] sm:$0xff] }
 0x240   :  { %v1453_v31 = vmul.f32 %v7012_v10, %v1365_v43  ;;  %v9281_v10 = vld [vmem:[#allocation14_spill] sm:$0xff] }
 0x241   :  { %7019 = vtanh.f32 %v8252_v36  ;;  %v1445_v50 = vmul.f32 %v1397_v24, %v8056_v18  ;;  %v1436_v21 = vmul.f32 0.5, %v1428_v3  ;;  %v2175_v0 = vpop.permute.xlu0 %2174  ;;  %v8334_v3 = vld [vmem:[%s9184_s0] sm:$0xff] }
 0x242   :  { %v7016_v16 = vpop.eup %7015  ;;  %v2177_v19 = vpop.permute.xlu1 %2176  ;;  %9288 = vst [vmem:[#allocation23_spill] sm:$0xff] %v8334_v3  ;;  %2846 = vrot.lane.b32.xlu0 %v8334_v3, %s7564_s9 }
 0x243   :  { %v8256_v5 = vadd.f32 %v1453_v31, %v1445_v50  ;;  %v1475_v55 = vmul.f32 %v7016_v16, %v1435_v4  ;;  %v7018_v63 = vpop.eup %7017  ;;  %v9282_v31 = vld [vmem:[#allocation15_spill] sm:$0xff]  ;;  %v9284_v4 = vld [vmem:[#allocation17_spill] sm:$0xff]  ;;  %v9285_v50 = vld [vmem:[#allocation18_spill] sm:$0xff] }
 0x244   :  { %v1429_v23 = vadd.f32 1.0, %v7018_v63  ;;  %v9286_v16 = vld [vmem:[#allocation9_spill] sm:$0xff] }
 0x245   :  { %7021 = vtanh.f32 %v8256_v5  ;;  %1847 = vmatmul.mubr.f32.gmra.mrb[42].mxu0 %v1475_v55  ;;  %1960 = vmatmul.mubr.f32.gmra.mrb[42].mxu1 %v1475_v55  ;;  %v2179_v62 = vpop.permute.xlu0 %2178  ;;  %v9287_v55 = vld [vmem:[#allocation10_spill] sm:$0xff] }
 0x246   :  { %1852 = vmatprep.mubr.f32.mxu0 %v9257_v37  ;;  %1965 = vmatprep.mubr.f32.mxu1 %v9257_v37  ;;  %v1437_v18 = vmul.f32 0.5, %v1429_v23  ;;  %v2181_v60 = vpop.permute.xlu1 %2180  ;;  %v8339_v63 = vld [vmem:[%s9184_s0 + $0x8] sm:$0xff]  ;;  %v9292_v23 = vld [vmem:[#allocation24_spill] sm:$0xff] }
 0x247   :  { %9289 = vst [vmem:[#allocation28_spill] sm:$0xff] %v8339_v63  ;;  %2848 = vrot.lane.b32.xlu1 %v8339_v63, %s7564_s9 }
 0x249   :  { %v2183_v43 = vpop.permute.xlu0 %2182 }
 0x24a   :  { %v2185_v24 = vpop.permute.xlu1 %2184 }
 0x24b   :  { %v7020_v11 = vpop.eup %7019 }
 0x24c   :  { %v1476_v51 = vmul.f32 %v7020_v11, %v1436_v21  ;;  %v9290_v21 = vld [vmem:[#allocation19_spill] sm:$0xff]  ;;  %v9291_v11 = vld [vmem:[#allocation20_spill] sm:$0xff] }
 0x24d   :  { %2850 = vrot.lane.b32.xlu0 %v9290_v21, %s7564_s9  ;;  %2852 = vrot.lane.b32.xlu1 %v9291_v11, %s7564_s9 }
 0x24e   :  { %1853 = vmatmul.mubr.f32.gmra.mrb[44].mxu0 %v1476_v51  ;;  %1966 = vmatmul.mubr.f32.gmra.mrb[44].mxu1 %v1476_v51  ;;  %v9293_v51 = vld [vmem:[#allocation25_spill] sm:$0xff] }
 0x24f   :  { %1858 = vmatprep.mubr.f32.mxu0 %v9257_v37  ;;  %1971 = vmatprep.mubr.f32.mxu1 %v9257_v37  ;;  %v7022_v1 = vpop.eup %7021 }
 0x250   :  { %v1477_v49 = vmul.f32 %v7022_v1, %v1437_v18  ;;  %v9294_v18 = vld [vmem:[#allocation26_spill] sm:$0xff]  ;;  %v9295_v1 = vld [vmem:[#allocation27_spill] sm:$0xff] }
 0x251   :  { %2854 = vrot.lane.b32.xlu0 %v9292_v23, %s7564_s9  ;;  %2856 = vrot.lane.b32.xlu1 %v9293_v51, %s7564_s9 }
 0x252   :  { %1859 = vmatmul.mubr.f32.gmra.mrb[46].mxu0 %v1477_v49  ;;  %1972 = vmatmul.mubr.f32.gmra.mrb[46].mxu1 %v1477_v49 }
 0x253   :  { %2266 = vmatprep.mubr.f32.mxu0 %v9257_v37  ;;  %2379 = vmatprep.mubr.f32.mxu1 %v9257_v37 }
 0x255   :  { %2858 = vrot.lane.b32.xlu0 %v9294_v18, %s7564_s9  ;;  %2860 = vrot.lane.b32.xlu1 %v9295_v1, %s7564_s9 }
 0x256   :  { %5685 = vmatmul.mubr.msk.f32.vlgmr.msra.gmra.mrb[48].mxu0 %vm140_vm1, %v2171_v56  ;;  %5695 = vmatmul.mubr.msk.f32.vlgmr.msra.gmra.mrb[48].mxu1 %vm140_vm1, %v2171_v56 }
 0x257   :  { %6006 = vmatpush1.bf16.msra.mxu0 %v7650_v14  ;;  %6038 = vmatpush1.bf16.msra.mxu1 %v7656_v17 }
 0x258   :  { %2272 = vmatprep.mubr.f32.mxu0 %v9257_v37  ;;  %2385 = vmatprep.mubr.f32.mxu1 %v9257_v37 }
 0x259   :  { %6008 = vmatprep.subr.bf16.mxu0 %v7667_v25  ;;  %6040 = vmatprep.subr.bf16.mxu1 %v7669_v26 }
 0x25a   :  { %5686 = vmatmul.mubr.msk.f32.gmra.mrb[50].mxu0 %vm140_vm1, %v2173_v2  ;;  %5696 = vmatmul.mubr.msk.f32.gmra.mrb[50].mxu1 %vm140_vm1, %v2173_v2 }
 0x25b   :  { %6010 = vmatpush1.bf16.msra.mxu0 %v7673_v29  ;;  %6042 = vmatpush1.bf16.msra.mxu1 %v7675_v30 }
 0x25c   :  { %2278 = vmatprep.mubr.f32.mxu0 %v9257_v37  ;;  %2391 = vmatprep.mubr.f32.mxu1 %v9257_v37 }
 0x25d   :  { %6012 = vmatprep.subr.bf16.mxu0 %v7690_v40  ;;  %6044 = vmatprep.subr.bf16.mxu1 %v7692_v41 }
 0x25e   :  { %5687 = vmatmul.mubr.msk.f32.gmra.mrb[52].mxu0 %vm140_vm1, %v2175_v0  ;;  %5697 = vmatmul.mubr.msk.f32.gmra.mrb[52].mxu1 %vm140_vm1, %v2175_v0 }
 0x25f   :  { %6014 = vmatpush1.bf16.msra.mxu0 %v7696_v44  ;;  %6046 = vmatpush1.bf16.msra.mxu1 %v7698_v45 }
 0x260   :  { %2284 = vmatprep.mubr.f32.mxu0 %v9257_v37  ;;  %2397 = vmatprep.mubr.f32.mxu1 %v9257_v37 }
 0x261   :  { %6016 = vmatprep.subr.bf16.mxu0 %v7713_v53  ;;  %6048 = vmatprep.subr.bf16.mxu1 %v7715_v54 }
 0x262   :  { %5688 = vmatmul.mubr.msk.f32.gmra.mrb[54].mxu0 %vm140_vm1, %v2177_v19  ;;  %5698 = vmatmul.mubr.msk.f32.gmra.mrb[54].mxu1 %vm140_vm1, %v2177_v19 }
 0x263   :  { %6018 = vmatpush1.bf16.msra.mxu0 %v7719_v57  ;;  %6050 = vmatpush1.bf16.msra.mxu1 %v7721_v58 }
 0x264   :  { %2290 = vmatprep.mubr.f32.mxu0 %v9257_v37  ;;  %2403 = vmatprep.mubr.f32.mxu1 %v9257_v37 }
 0x265   :  { %6020 = vmatprep.subr.bf16.mxu0 %v7736_v7  ;;  %6052 = vmatprep.subr.bf16.mxu1 %v7738_v8 }
 0x266   :  { %5689 = vmatmul.mubr.msk.f32.gmra.mrb[56].mxu0 %vm140_vm1, %v2179_v62  ;;  %5699 = vmatmul.mubr.msk.f32.gmra.mrb[56].mxu1 %vm140_vm1, %v2179_v62 }
 0x267   :  { %6022 = vmatpush1.bf16.msra.mxu0 %v7742_v12  ;;  %6054 = vmatpush1.bf16.msra.mxu1 %v7744_v15 }
 0x268   :  { %2296 = vmatprep.mubr.f32.mxu0 %v9257_v37  ;;  %2409 = vmatprep.mubr.f32.mxu1 %v9257_v37 }
 0x269   :  { %6024 = vmatprep.subr.bf16.mxu0 %v7759_v27  ;;  %6056 = vmatprep.subr.bf16.mxu1 %v7761_v28 }
 0x26a   :  { %5690 = vmatmul.mubr.msk.f32.gmra.mrb[58].mxu0 %vm140_vm1, %v2181_v60  ;;  %5700 = vmatmul.mubr.msk.f32.gmra.mrb[58].mxu1 %vm140_vm1, %v2181_v60 }
 0x26b   :  { %6026 = vmatpush1.bf16.msra.mxu0 %v7765_v33  ;;  %6058 = vmatpush1.bf16.msra.mxu1 %v7767_v34 }
 0x26c   :  { %2302 = vmatprep.mubr.f32.mxu0 %v9257_v37  ;;  %2415 = vmatprep.mubr.f32.mxu1 %v9257_v37 }
 0x26d   :  { %6028 = vmatprep.subr.bf16.mxu0 %v7782_v47  ;;  %6060 = vmatprep.subr.bf16.mxu1 %v9279_v38 }
 0x26e   :  { %5691 = vmatmul.mubr.msk.f32.gmra.mrb[60].mxu0 %vm140_vm1, %v2183_v43  ;;  %5701 = vmatmul.mubr.msk.f32.gmra.mrb[60].mxu1 %vm140_vm1, %v2183_v43 }
 0x26f   :  { %6030 = vmatpush1.bf16.msra.mxu0 %v9280_v39  ;;  %6062 = vmatpush1.bf16.msra.mxu1 %v9281_v10 }
 0x270   :  { %2308 = vmatprep.mubr.f32.mxu0 %v9257_v37  ;;  %2421 = vmatprep.mubr.f32.mxu1 %v9257_v37 }
 0x271   :  { %6032 = vmatprep.subr.bf16.mxu0 %v9282_v31  ;;  %6064 = vmatprep.subr.bf16.mxu1 %v9283_v22 }
 0x272   :  { %5692 = vmatmul.mubr.msk.f32.gmra.mrb[62].mxu0 %vm140_vm1, %v2185_v24  ;;  %5702 = vmatmul.mubr.msk.f32.gmra.mrb[62].mxu1 %vm140_vm1, %v2185_v24 }
 0x273   :  { %6034 = vmatpush1.bf16.msra.mxu0 %v9284_v4  ;;  %6066 = vmatpush1.bf16.msra.mxu1 %v9285_v50 }
 0x274   :  { %2492 = vmatprep.mubr.f32.mxu0 %v9257_v37  ;;  %2605 = vmatprep.mubr.f32.mxu1 %v9257_v37 }
 0x275   :  { %5703 = vmatprep.subr.msk.mxu0 %vm165_vm0, %v9286_v16  ;;  %5713 = vmatprep.subr.msk.mxu1 %vm165_vm0, %v9287_v55 }
 0x2ff   :  { %v1818_v49 = vpop.f32.mrb[32].mxu0  ;;  %v1931_v56 = vpop.f32.mrb[32].mxu1 }
 0x300   :  { %v6399_v2 = vadd.f32 %v1818_v49, %v7970_v59  ;;  %v1820_v0 = vpop.f32.mrb[33].mxu0  ;;  %v1933_v19 = vpop.f32.mrb[33].mxu1  ;;  %v6415_v21 = vadd.f32 %v1931_v56, %v7976_v46 }
 0x301   :  { %v6400_v62 = vadd.f32 %v1820_v0, %v7972_v52  ;;  %v6416_v24 = vadd.f32 %v1933_v19, %v7974_v6 }
 0x302   :  { %v2010_v60 = vmul.f32 0.5, %v6399_v2 }
 0x303   :  { %v2042_v43 = vmul.f32 0.5, %v6400_v62  ;;  %v1824_v11 = vpop.f32.mrb[34].mxu0  ;;  %v1937_v23 = vpop.f32.mrb[34].mxu1  ;;  %v2082_v63 = vmul.f32 0.5, %v6416_v24 }
 0x304   :  { %7023 = vtanh.f32 %v2010_v60  ;;  %v6401_v51 = vadd.f32 %v1824_v11, %v7970_v59  ;;  %v1826_v18 = vpop.f32.mrb[35].mxu0  ;;  %v1939_v1 = vpop.f32.mrb[35].mxu1  ;;  %v6417_v2 = vadd.f32 %v1937_v23, %v7976_v46 }
 0x305   :  { %7025 = vtanh.f32 %v2042_v43  ;;  %v6402_v49 = vadd.f32 %v1826_v18, %v7972_v52  ;;  %v6418_v0 = vadd.f32 %v1939_v1, %v7974_v6 }
 0x306   :  { %v2011_v3 = vmul.f32 0.5, %v6401_v51  ;;  %7027 = vtanh.f32 %v6415_v21 }
 0x307   :  { %v2043_v19 = vmul.f32 0.5, %v6402_v49  ;;  %v1830_v62 = vpop.f32.mrb[36].mxu0  ;;  %v1943_v60 = vpop.f32.mrb[36].mxu1  ;;  %v2083_v18 = vmul.f32 0.5, %v6418_v0 }
 0x308   :  { %7029 = vtanh.f32 %v2011_v3  ;;  %v6403_v56 = vadd.f32 %v1830_v62, %v7970_v59  ;;  %v1832_v43 = vpop.f32.mrb[37].mxu0  ;;  %v1945_v55 = vpop.f32.mrb[37].mxu1  ;;  %v6419_v51 = vadd.f32 %v1943_v60, %v7976_v46 }
 0x309   :  { %7031 = vtanh.f32 %v2043_v19  ;;  %v6404_v11 = vadd.f32 %v1832_v43, %v7972_v52 }
 0x30a   :  { %7033 = vtanh.f32 %v2082_v63  ;;  %v2012_v24 = vmul.f32 0.5, %v6403_v56  ;;  %v6420_v63 = vadd.f32 %v1945_v55, %v7974_v6 }
 0x30b   :  { %7035 = vtanh.f32 %v6417_v2  ;;  %v2044_v21 = vmul.f32 0.5, %v6404_v11 }
 0x30c   :  { %v1836_v1 = vpop.f32.mrb[38].mxu0  ;;  %v1949_v23 = vpop.f32.mrb[38].mxu1  ;;  %7037 = vtanh.f32 %v2012_v24 }
 0x30d   :  { %v6405_v49 = vadd.f32 %v1836_v1, %v7970_v59  ;;  %v1838_v3 = vpop.f32.mrb[39].mxu0  ;;  %v1951_v16 = vpop.f32.mrb[39].mxu1  ;;  %7039 = vtanh.f32 %v2044_v21  ;;  %v6421_v60 = vadd.f32 %v1949_v23, %v7976_v46 }
 0x30e   :  { %v7024_v62 = vpop.eup %7023  ;;  %v6406_v19 = vadd.f32 %v1838_v3, %v7972_v52  ;;  %7041 = vtanh.f32 %v2083_v18 }
 0x30f   :  { %v7026_v50 = vpop.eup %7025  ;;  %v2026_v43 = vadd.f32 1.0, %v7024_v62  ;;  %v2013_v0 = vmul.f32 0.5, %v6405_v49  ;;  %7043 = vtanh.f32 %v6419_v51  ;;  %v6422_v51 = vadd.f32 %v1951_v16, %v7974_v6 }
 0x310   :  { %v2058_v2 = vadd.f32 1.0, %v7026_v50  ;;  %v2045_v56 = vmul.f32 0.5, %v6406_v19  ;;  %v1842_v11 = vpop.f32.mrb[40].mxu0  ;;  %v1955_v24 = vpop.f32.mrb[40].mxu1  ;;  %v2084_v50 = vmul.f32 0.5, %v6420_v63  ;;  %v9296_v19 = vld [vmem:[#allocation21_spill] sm:$0xff] }
 0x311   :  { %v2034_v1 = vmul.f32 0.5, %v2026_v43  ;;  %7045 = vtanh.f32 %v2013_v0  ;;  %v6407_v4 = vadd.f32 %v1842_v11, %v7970_v59  ;;  %v1844_v21 = vpop.f32.mrb[41].mxu0  ;;  %v1957_v22 = vpop.f32.mrb[41].mxu1 }
 0x312   :  { %v7028_v3 = vpop.eup %7027  ;;  %v2066_v31 = vmul.f32 0.5, %v2058_v2  ;;  %7047 = vtanh.f32 %v2045_v56  ;;  %v6408_v18 = vadd.f32 %v1844_v21, %v7972_v52  ;;  %v6423_v2 = vadd.f32 %v1955_v24, %v7976_v46 }
 0x313   :  { %v7030_v55 = vpop.eup %7029  ;;  %v2122_v49 = vmul.f32 %v7028_v3, %v2034_v1  ;;  %v2014_v23 = vmul.f32 0.5, %v6407_v4  ;;  %7049 = vtanh.f32 %v6421_v60  ;;  %v6424_v4 = vadd.f32 %v1957_v22, %v7974_v6 }
 0x314   :  { %v7032_v62 = vpop.eup %7031  ;;  %v2114_v10 = vmul.f32 %v2066_v31, %v9296_v19  ;;  %v2027_v43 = vadd.f32 1.0, %v7030_v55  ;;  %v2046_v0 = vmul.f32 0.5, %v6408_v18  ;;  %v2085_v3 = vmul.f32 0.5, %v6422_v51 }
 0x315   :  { %v7034_v11 = vpop.eup %7033  ;;  %v2059_v39 = vadd.f32 1.0, %v7032_v62  ;;  %7051 = vtanh.f32 %v2014_v23 }
 0x316   :  { %v7036_v56 = vpop.eup %7035  ;;  %v8369_v38 = vadd.f32 %v2122_v49, %v2114_v10  ;;  %v2035_v21 = vmul.f32 0.5, %v2027_v43  ;;  %7053 = vtanh.f32 %v2046_v0  ;;  %v2098_v62 = vadd.f32 1.0, %v7034_v11  ;;  %v9298_v11 = vld [vmem:[#allocation22_spill] sm:$0xff] }
 0x317   :  { %v7038_v63 = vpop.eup %7037  ;;  %v2067_v1 = vmul.f32 0.5, %v2059_v39  ;;  %7055 = vtanh.f32 %v2084_v50 }
 0x318   :  { %9297 = vst [vmem:[#allocation19_spill] sm:$0xff] %v8369_v38  ;;  %v7040_v16 = vpop.eup %7039  ;;  %7057 = vtanh.f32 %v8369_v38  ;;  %v2123_v31 = vmul.f32 %v7036_v56, %v2035_v21  ;;  %v2028_v60 = vadd.f32 1.0, %v7038_v63  ;;  %v1848_v10 = vpop.f32.mrb[42].mxu0  ;;  %v2086_v21 = vmul.f32 0.5, %v6424_v4 }
 0x319   :  { %v7042_v18 = vpop.eup %7041  ;;  %v2115_v55 = vmul.f32 %v2067_v1, %v8196_v20  ;;  %v2060_v24 = vadd.f32 1.0, %v7040_v16  ;;  %7059 = vtanh.f32 %v6423_v2  ;;  %v1961_v49 = vpop.f32.mrb[42].mxu1  ;;  %v6409_v39 = vadd.f32 %v1848_v10, %v7970_v59 }
 0x31a   :  { %v7044_v23 = vpop.eup %7043  ;;  %v2036_v19 = vmul.f32 0.5, %v2028_v60  ;;  %v1850_v50 = vpop.f32.mrb[43].mxu0  ;;  %7061 = vtanh.f32 %v2085_v3 }
 0x31b   :  { %v1963_v22 = vpop.f32.mrb[43].mxu1  ;;  %v7046_v43 = vpop.eup %7045  ;;  %v8375_v0 = vadd.f32 %v2123_v31, %v2115_v55  ;;  %v2068_v56 = vmul.f32 0.5, %v2060_v24  ;;  %v6410_v51 = vadd.f32 %v1850_v50, %v7972_v52  ;;  %v2015_v2 = vmul.f32 0.5, %v6409_v39 }
 0x31c   :  { %v7048_v63 = vpop.eup %7047  ;;  %v2124_v20 = vmul.f32 %v7044_v23, %v2036_v19  ;;  %v2029_v1 = vadd.f32 1.0, %v7046_v43  ;;  %v6425_v31 = vadd.f32 %v1961_v49, %v7976_v46  ;;  %v6426_v39 = vadd.f32 %v1963_v22, %v7974_v6 }
 0x31d   :  { %7063 = vtanh.f32 %v8375_v0  ;;  %v2116_v16 = vmul.f32 %v2068_v56, %v9298_v11  ;;  %v2061_v60 = vadd.f32 1.0, %v7048_v63  ;;  %v2047_v10 = vmul.f32 0.5, %v6410_v51  ;;  %v7050_v38 = vpop.eup %7049 }
 0x31e   :  { %v2037_v47 = vmul.f32 0.5, %v2029_v1  ;;  %7065 = vtanh.f32 %v2015_v2  ;;  %v2106_v43 = vmul.f32 0.5, %v2098_v62 }
 0x31f   :  { %v7052_v55 = vpop.eup %7051  ;;  %v8381_v4 = vadd.f32 %v2124_v20, %v2116_v16  ;;  %v2069_v24 = vmul.f32 0.5, %v2061_v60  ;;  %7067 = vtanh.f32 %v2086_v21  ;;  %v2099_v20 = vadd.f32 1.0, %v7042_v18 }
 0x320   :  { %v7054_v23 = vpop.eup %7053  ;;  %v2125_v19 = vmul.f32 %v7050_v38, %v2037_v47  ;;  %v2030_v3 = vadd.f32 1.0, %v7052_v55  ;;  %7069 = vtanh.f32 %v2047_v10 }
 0x321   :  { %v7056_v50 = vpop.eup %7055  ;;  %7071 = vtanh.f32 %v8381_v4  ;;  %v2117_v56 = vmul.f32 %v2069_v24, %v8208_v48  ;;  %v2062_v51 = vadd.f32 1.0, %v7054_v23  ;;  %v1854_v63 = vpop.f32.mrb[44].mxu0  ;;  %v2087_v48 = vmul.f32 0.5, %v6426_v39 }
 0x322   :  { %v1967_v49 = vpop.f32.mrb[44].mxu1  ;;  %v7058_v1 = vpop.eup %7057  ;;  %v2038_v2 = vmul.f32 0.5, %v2030_v3  ;;  %7073 = vtanh.f32 %v6425_v31  ;;  %v6411_v21 = vadd.f32 %v1854_v63, %v7970_v59  ;;  %v2100_v24 = vadd.f32 1.0, %v7056_v50 }
 0x323   :  { %v1856_v47 = vpop.f32.mrb[45].mxu0  ;;  %v1969_v38 = vpop.f32.mrb[45].mxu1  ;;  %v2146_v16 = vmul.f32 %v7058_v1, %v2106_v43  ;;  %v8387_v22 = vadd.f32 %v2125_v19, %v2117_v56  ;;  %v2070_v62 = vmul.f32 0.5, %v2062_v51  ;;  %v2107_v3 = vmul.f32 0.5, %v2099_v20 }
 0x324   :  { %v7060_v11 = vpop.eup %7059  ;;  %v6412_v60 = vadd.f32 %v1856_v47, %v7972_v52  ;;  %v2016_v55 = vmul.f32 0.5, %v6411_v21  ;;  %v6427_v19 = vadd.f32 %v1967_v49, %v7976_v46  ;;  %v2108_v21 = vmul.f32 0.5, %v2100_v24 }
 0x325   :  { %v2126_v10 = vmul.f32 %v7060_v11, %v2038_v2  ;;  %7075 = vtanh.f32 %v8387_v22  ;;  %v2118_v18 = vmul.f32 %v2070_v62, %v8217_v32  ;;  %2493 = vmatmul.mubr.f32.vlgmr.msra.gmra.mrb[48].mxu0 %v2146_v16  ;;  %2606 = vmatmul.mubr.f32.vlgmr.msra.gmra.mrb[48].mxu1 %v2146_v16  ;;  %v7062_v23 = vpop.eup %7061  ;;  %v1860_v43 = vpop.f32.mrb[46].mxu0 }
 0x326   :  { %v2048_v31 = vmul.f32 0.5, %v6412_v60  ;;  %7077 = vtanh.f32 %v2016_v55  ;;  %v1973_v56 = vpop.f32.mrb[46].mxu1  ;;  %2498 = vmatprep.mubr.f32.mxu0 %v9257_v37  ;;  %2611 = vmatprep.mubr.f32.mxu1 %v9257_v37  ;;  %v6413_v32 = vadd.f32 %v1860_v43, %v7970_v59  ;;  %v1862_v51 = vpop.f32.mrb[47].mxu0 }
 0x327   :  { %v7064_v39 = vpop.eup %7063  ;;  %v8395_v50 = vadd.f32 %v2126_v10, %v2118_v18  ;;  %v1975_v63 = vpop.f32.mrb[47].mxu1  ;;  %5704 = vmatpush1.msk.msra.mxu0 %vm165_vm0, %v8222_v35  ;;  %5714 = vmatpush1.msk.msra.mxu1 %vm165_vm0, %v8229_v61  ;;  %v6414_v1 = vadd.f32 %v1862_v51, %v7972_v52  ;;  %v2101_v35 = vadd.f32 1.0, %v7062_v23  ;;  %v6428_v61 = vadd.f32 %v1969_v38, %v7974_v6 }
 0x328   :  { %7079 = vtanh.f32 %v2048_v31  ;;  %v7066_v49 = vpop.eup %7065  ;;  %v2147_v20 = vmul.f32 %v7064_v39, %v2107_v3  ;;  %6068 = vmatprep.subr.bf16.mxu0 %v7642_v9  ;;  %v2017_v11 = vmul.f32 0.5, %v6413_v32  ;;  %6100 = vmatprep.subr.bf16.mxu1 %v7648_v13  ;;  %v6429_v55 = vadd.f32 %v1973_v56, %v7976_v46 }
 0x329   :  { %7081 = vtanh.f32 %v2087_v48  ;;  %v7068_v2 = vpop.eup %7067  ;;  %v2031_v47 = vadd.f32 1.0, %v7066_v49  ;;  %v2049_v62 = vmul.f32 0.5, %v6414_v1  ;;  %v2109_v3 = vmul.f32 0.5, %v2101_v35 }
 0x32a   :  { %7083 = vtanh.f32 %v8395_v50  ;;  %v7070_v16 = vpop.eup %7069  ;;  %2499 = vmatmul.mubr.f32.gmra.mrb[50].mxu0 %v2147_v20  ;;  %2612 = vmatmul.mubr.f32.gmra.mrb[50].mxu1 %v2147_v20  ;;  %v2102_v38 = vadd.f32 1.0, %v7068_v2  ;;  %v6430_v32 = vadd.f32 %v1975_v63, %v7974_v6 }
 0x32b   :  { %7085 = vtanh.f32 %v6427_v19  ;;  %v7072_v60 = vpop.eup %7071  ;;  %v2039_v10 = vmul.f32 0.5, %v2031_v47  ;;  %v2063_v48 = vadd.f32 1.0, %v7070_v16  ;;  %2504 = vmatprep.mubr.f32.mxu0 %v9257_v37  ;;  %2617 = vmatprep.mubr.f32.mxu1 %v9257_v37  ;;  %v2088_v19 = vmul.f32 0.5, %v6428_v61 }
 0x32c   :  { %7087 = vtanh.f32 %v2017_v11  ;;  %v7074_v24 = vpop.eup %7073  ;;  %v2148_v18 = vmul.f32 %v7072_v60, %v2108_v21  ;;  %v2110_v21 = vmul.f32 0.5, %v2102_v38  ;;  %v2089_v35 = vmul.f32 0.5, %v6430_v32 }
 0x32d   :  { %v2071_v31 = vmul.f32 0.5, %v2063_v48  ;;  %v2127_v23 = vmul.f32 %v7074_v24, %v2039_v10  ;;  %7089 = vtanh.f32 %v2049_v62 }
 0x32e   :  { %2505 = vmatmul.mubr.f32.gmra.mrb[52].mxu0 %v2148_v18  ;;  %2618 = vmatmul.mubr.f32.gmra.mrb[52].mxu1 %v2148_v18  ;;  %7091 = vtanh.f32 %v6429_v55 }
 0x32f   :  { %v7076_v43 = vpop.eup %7075  ;;  %v2119_v39 = vmul.f32 %v2071_v31, %v8244_v42  ;;  %2510 = vmatprep.mubr.f32.mxu0 %v9257_v37  ;;  %2623 = vmatprep.mubr.f32.mxu1 %v9257_v37  ;;  %7093 = vtanh.f32 %v2088_v19 }
 0x330   :  { %v7078_v56 = vpop.eup %7077  ;;  %v2149_v51 = vmul.f32 %v7076_v43, %v2109_v3 }
 0x331   :  { %v8414_v1 = vadd.f32 %v2127_v23, %v2119_v39  ;;  %v2032_v20 = vadd.f32 1.0, %v7078_v56 }
 0x332   :  { %v7080_v49 = vpop.eup %7079  ;;  %2511 = vmatmul.mubr.f32.gmra.mrb[54].mxu0 %v2149_v51  ;;  %2624 = vmatmul.mubr.f32.gmra.mrb[54].mxu1 %v2149_v51 }
 0x333   :  { %v7082_v2 = vpop.eup %7081  ;;  %v2064_v47 = vadd.f32 1.0, %v7080_v49  ;;  %7095 = vtanh.f32 %v8414_v1  ;;  %v2040_v11 = vmul.f32 0.5, %v2032_v20  ;;  %2516 = vmatprep.mubr.f32.mxu0 %v9257_v37  ;;  %2629 = vmatprep.mubr.f32.mxu1 %v9257_v37 }
 0x334   :  { %v7084_v42 = vpop.eup %7083  ;;  %v2103_v24 = vadd.f32 1.0, %v7082_v2  ;;  %7097 = vtanh.f32 %v2089_v35  ;;  %v2849_v35 = vpop.permute.xlu1 %2848 }
 0x335   :  { %v7086_v63 = vpop.eup %7085  ;;  %v2072_v16 = vmul.f32 0.5, %v2064_v47  ;;  %v2150_v61 = vmul.f32 %v7084_v42, %v2110_v21 }
 0x336   :  { %v7088_v62 = vpop.eup %7087  ;;  %v2128_v60 = vmul.f32 %v7086_v63, %v2040_v11  ;;  %v2111_v43 = vmul.f32 0.5, %v2103_v24 }
 0x337   :  { %v2120_v10 = vmul.f32 %v2072_v16, %v8252_v36  ;;  %v2033_v48 = vadd.f32 1.0, %v7088_v62  ;;  %2517 = vmatmul.mubr.f32.gmra.mrb[56].mxu0 %v2150_v61  ;;  %2630 = vmatmul.mubr.f32.gmra.mrb[56].mxu1 %v2150_v61  ;;  %v7090_v55 = vpop.eup %7089  ;;  %v2847_v16 = vpop.permute.xlu0 %2846 }
 0x338   :  { %2522 = vmatprep.mubr.f32.mxu0 %v9257_v37  ;;  %2635 = vmatprep.mubr.f32.mxu1 %v9257_v37  ;;  %v2065_v23 = vadd.f32 1.0, %v7090_v55  ;;  %v7092_v3 = vpop.eup %7091  ;;  %v2853_v62 = vpop.permute.xlu1 %2852  ;;  %v9300_v55 = vld [vmem:[#allocation12_spill] sm:$0xff] }
 0x339   :  { %v8422_v18 = vadd.f32 %v2128_v60, %v2120_v10  ;;  %v2041_v31 = vmul.f32 0.5, %v2033_v48  ;;  %v7094_v36 = vpop.eup %7093  ;;  %v9299_v48 = vld [vmem:[#allocation11_spill] sm:$0xff] }
 0x33a   :  { %v2073_v38 = vmul.f32 0.5, %v2065_v23  ;;  %v2104_v49 = vadd.f32 1.0, %v7094_v36  ;;  %v9302_v23 = vld [vmem:[#allocation14_spill] sm:$0xff]  ;;  %v9305_v36 = vld [vmem:[#allocation17_spill] sm:$0xff] }
 0x33b   :  { %7099 = vtanh.f32 %v8422_v18  ;;  %v2129_v19 = vmul.f32 %v7092_v3, %v2041_v31  ;;  %v2851_v61 = vpop.permute.xlu0 %2850  ;;  %v9301_v31 = vld [vmem:[#allocation13_spill] sm:$0xff] }
 0x33c   :  { %v2121_v39 = vmul.f32 %v2073_v38, %v8256_v5  ;;  %v2112_v2 = vmul.f32 0.5, %v2104_v49  ;;  %v2857_v10 = vpop.permute.xlu1 %2856  ;;  %v9303_v38 = vld [vmem:[#allocation15_spill] sm:$0xff]  ;;  %v9310_v49 = vld [vmem:[#allocation28_spill] sm:$0xff] }
 0x33d   :  { %v7096_v56 = vpop.eup %7095  ;;  %3524 = vrot.lane.b32.xlu1 %v9310_v49, %s7565_s10 }
 0x33e   :  { %v8426_v32 = vadd.f32 %v2129_v19, %v2121_v39  ;;  %v2151_v51 = vmul.f32 %v7096_v56, %v2111_v43  ;;  %v7098_v20 = vpop.eup %7097  ;;  %v9304_v19 = vld [vmem:[#allocation16_spill] sm:$0xff]  ;;  %v9306_v43 = vld [vmem:[#allocation18_spill] sm:$0xff]  ;;  %v9307_v39 = vld [vmem:[#allocation9_spill] sm:$0xff] }
 0x33f   :  { %v2105_v47 = vadd.f32 1.0, %v7098_v20  ;;  %v2855_v60 = vpop.permute.xlu0 %2854  ;;  %v9308_v56 = vld [vmem:[#allocation10_spill] sm:$0xff] }
 0x340   :  { %7101 = vtanh.f32 %v8426_v32  ;;  %2523 = vmatmul.mubr.f32.gmra.mrb[58].mxu0 %v2151_v51  ;;  %2636 = vmatmul.mubr.f32.gmra.mrb[58].mxu1 %v2151_v51  ;;  %v2861_v3 = vpop.permute.xlu1 %2860  ;;  %v9309_v51 = vld [vmem:[#allocation23_spill] sm:$0xff] }
 0x341   :  { %2528 = vmatprep.mubr.f32.mxu0 %v9257_v37  ;;  %2641 = vmatprep.mubr.f32.mxu1 %v9257_v37  ;;  %v2113_v5 = vmul.f32 0.5, %v2105_v47  ;;  %v8506_v20 = vld [vmem:[%s9184_s0 + $0x10] sm:$0xff]  ;;  %v8523_v47 = vld [vmem:[%s9184_s0 + $0x28] sm:$0xff] }
 0x342   :  { %3522 = vrot.lane.b32.xlu0 %v9309_v51, %s7565_s10  ;;  %9311 = vst [vmem:[#allocation20_spill] sm:$0xff] %v8506_v20  ;;  %9314 = vst [vmem:[#allocation26_spill] sm:$0xff] %v8523_v47 }
 0x343   :  { %v2859_v24 = vpop.permute.xlu0 %2858 }
 0x345   :  { %v7100_v21 = vpop.eup %7099 }
 0x346   :  { %v2152_v42 = vmul.f32 %v7100_v21, %v2112_v2  ;;  %v8511_v2 = vld [vmem:[%s9184_s0 + $0x18] sm:$0xff]  ;;  %3526 = vrot.lane.b32.xlu0 %v8506_v20, %s7565_s10  ;;  %v8518_v21 = vld [vmem:[%s9184_s0 + $0x20] sm:$0xff] }
 0x347   :  { %9312 = vst [vmem:[#allocation24_spill] sm:$0xff] %v8511_v2  ;;  %3528 = vrot.lane.b32.xlu1 %v8511_v2, %s7565_s10  ;;  %9313 = vst [vmem:[#allocation25_spill] sm:$0xff] %v8518_v21 }
 0x348   :  { %2529 = vmatmul.mubr.f32.gmra.mrb[60].mxu0 %v2152_v42  ;;  %2642 = vmatmul.mubr.f32.gmra.mrb[60].mxu1 %v2152_v42  ;;  %v8530_v42 = vld [vmem:[%s9184_s0 + $0x30] sm:$0xff] }
 0x349   :  { %2534 = vmatprep.mubr.f32.mxu0 %v9257_v37  ;;  %2647 = vmatprep.mubr.f32.mxu1 %v9257_v37  ;;  %9315 = vst [vmem:[#allocation27_spill] sm:$0xff] %v8530_v42 }
 0x34a   :  { %v7102_v11 = vpop.eup %7101  ;;  %3530 = vrot.lane.b32.xlu0 %v8518_v21, %s7565_s10 }
 0x34b   :  { %v2153_v63 = vmul.f32 %v7102_v11, %v2113_v5  ;;  %3532 = vrot.lane.b32.xlu1 %v8523_v47, %s7565_s10  ;;  %v8535_v5 = vld [vmem:[%s9184_s0 + $0x38] sm:$0xff] }
 0x34c   :  { %9316 = vst [vmem:[#allocation21_spill] sm:$0xff] %v8535_v5 }
 0x34d   :  { %2535 = vmatmul.mubr.f32.gmra.mrb[62].mxu0 %v2153_v63  ;;  %2648 = vmatmul.mubr.f32.gmra.mrb[62].mxu1 %v2153_v63 }
 0x34e   :  { %2942 = vmatprep.mubr.f32.mxu0 %v9257_v37  ;;  %3055 = vmatprep.mubr.f32.mxu1 %v9257_v37 }
 0x34f   :  { %3534 = vrot.lane.b32.xlu0 %v8530_v42, %s7565_s10  ;;  %3536 = vrot.lane.b32.xlu1 %v8535_v5, %s7565_s10 }
 0x351   :  { %5705 = vmatmul.mubr.msk.f32.vlgmr.msra.gmra.mrb[64].mxu0 %vm140_vm1, %v2847_v16  ;;  %5715 = vmatmul.mubr.msk.f32.vlgmr.msra.gmra.mrb[64].mxu1 %vm140_vm1, %v2847_v16 }
 0x352   :  { %6070 = vmatpush1.bf16.msra.mxu0 %v7650_v14  ;;  %6102 = vmatpush1.bf16.msra.mxu1 %v7656_v17 }
 0x353   :  { %2948 = vmatprep.mubr.f32.mxu0 %v9257_v37  ;;  %3061 = vmatprep.mubr.f32.mxu1 %v9257_v37 }
 0x354   :  { %6072 = vmatprep.subr.bf16.mxu0 %v7667_v25  ;;  %6104 = vmatprep.subr.bf16.mxu1 %v7669_v26 }
 0x355   :  { %5706 = vmatmul.mubr.msk.f32.gmra.mrb[66].mxu0 %vm140_vm1, %v2849_v35  ;;  %5716 = vmatmul.mubr.msk.f32.gmra.mrb[66].mxu1 %vm140_vm1, %v2849_v35 }
 0x356   :  { %6074 = vmatpush1.bf16.msra.mxu0 %v7673_v29  ;;  %6106 = vmatpush1.bf16.msra.mxu1 %v7675_v30 }
 0x357   :  { %2954 = vmatprep.mubr.f32.mxu0 %v9257_v37  ;;  %3067 = vmatprep.mubr.f32.mxu1 %v9257_v37 }
 0x358   :  { %6076 = vmatprep.subr.bf16.mxu0 %v7690_v40  ;;  %6108 = vmatprep.subr.bf16.mxu1 %v7692_v41 }
 0x359   :  { %5707 = vmatmul.mubr.msk.f32.gmra.mrb[68].mxu0 %vm140_vm1, %v2851_v61  ;;  %5717 = vmatmul.mubr.msk.f32.gmra.mrb[68].mxu1 %vm140_vm1, %v2851_v61 }
 0x35a   :  { %6078 = vmatpush1.bf16.msra.mxu0 %v7696_v44  ;;  %6110 = vmatpush1.bf16.msra.mxu1 %v7698_v45 }
 0x35b   :  { %2960 = vmatprep.mubr.f32.mxu0 %v9257_v37  ;;  %3073 = vmatprep.mubr.f32.mxu1 %v9257_v37 }
 0x35c   :  { %6080 = vmatprep.subr.bf16.mxu0 %v7713_v53  ;;  %6112 = vmatprep.subr.bf16.mxu1 %v7715_v54 }
 0x35d   :  { %5708 = vmatmul.mubr.msk.f32.gmra.mrb[70].mxu0 %vm140_vm1, %v2853_v62  ;;  %5718 = vmatmul.mubr.msk.f32.gmra.mrb[70].mxu1 %vm140_vm1, %v2853_v62 }
 0x35e   :  { %6082 = vmatpush1.bf16.msra.mxu0 %v7719_v57  ;;  %6114 = vmatpush1.bf16.msra.mxu1 %v7721_v58 }
 0x35f   :  { %2966 = vmatprep.mubr.f32.mxu0 %v9257_v37  ;;  %3079 = vmatprep.mubr.f32.mxu1 %v9257_v37 }
 0x360   :  { %6084 = vmatprep.subr.bf16.mxu0 %v7736_v7  ;;  %6116 = vmatprep.subr.bf16.mxu1 %v7738_v8 }
 0x361   :  { %5709 = vmatmul.mubr.msk.f32.gmra.mrb[72].mxu0 %vm140_vm1, %v2855_v60  ;;  %5719 = vmatmul.mubr.msk.f32.gmra.mrb[72].mxu1 %vm140_vm1, %v2855_v60 }
 0x362   :  { %6086 = vmatpush1.bf16.msra.mxu0 %v7742_v12  ;;  %6118 = vmatpush1.bf16.msra.mxu1 %v7744_v15 }
 0x363   :  { %2972 = vmatprep.mubr.f32.mxu0 %v9257_v37  ;;  %3085 = vmatprep.mubr.f32.mxu1 %v9257_v37 }
 0x364   :  { %6088 = vmatprep.subr.bf16.mxu0 %v7759_v27  ;;  %6120 = vmatprep.subr.bf16.mxu1 %v7761_v28 }
 0x365   :  { %5710 = vmatmul.mubr.msk.f32.gmra.mrb[74].mxu0 %vm140_vm1, %v2857_v10  ;;  %5720 = vmatmul.mubr.msk.f32.gmra.mrb[74].mxu1 %vm140_vm1, %v2857_v10 }
 0x366   :  { %6090 = vmatpush1.bf16.msra.mxu0 %v7765_v33  ;;  %6122 = vmatpush1.bf16.msra.mxu1 %v7767_v34 }
 0x367   :  { %2978 = vmatprep.mubr.f32.mxu0 %v9257_v37  ;;  %3091 = vmatprep.mubr.f32.mxu1 %v9257_v37 }
 0x368   :  { %6092 = vmatprep.subr.bf16.mxu0 %v9299_v48  ;;  %6124 = vmatprep.subr.bf16.mxu1 %v9300_v55 }
 0x369   :  { %5711 = vmatmul.mubr.msk.f32.gmra.mrb[76].mxu0 %vm140_vm1, %v2859_v24  ;;  %5721 = vmatmul.mubr.msk.f32.gmra.mrb[76].mxu1 %vm140_vm1, %v2859_v24 }
 0x36a   :  { %6094 = vmatpush1.bf16.msra.mxu0 %v9301_v31  ;;  %6126 = vmatpush1.bf16.msra.mxu1 %v9302_v23 }
 0x36b   :  { %2984 = vmatprep.mubr.f32.mxu0 %v9257_v37  ;;  %3097 = vmatprep.mubr.f32.mxu1 %v9257_v37 }
 0x36c   :  { %6096 = vmatprep.subr.bf16.mxu0 %v9303_v38  ;;  %6128 = vmatprep.subr.bf16.mxu1 %v9304_v19 }
 0x36d   :  { %5712 = vmatmul.mubr.msk.f32.gmra.mrb[78].mxu0 %vm140_vm1, %v2861_v3  ;;  %5722 = vmatmul.mubr.msk.f32.gmra.mrb[78].mxu1 %vm140_vm1, %v2861_v3 }
 0x36e   :  { %6098 = vmatpush1.bf16.msra.mxu0 %v9305_v36  ;;  %6130 = vmatpush1.bf16.msra.mxu1 %v9306_v43 }
 0x36f   :  { %3168 = vmatprep.mubr.f32.mxu0 %v9257_v37  ;;  %3281 = vmatprep.mubr.f32.mxu1 %v9257_v37 }
 0x370   :  { %5723 = vmatprep.subr.msk.mxu0 %vm165_vm0, %v9307_v39  ;;  %5733 = vmatprep.subr.msk.mxu1 %vm165_vm0, %v9308_v56 }
 0x3f8   :  { %v2494_v11 = vpop.f32.mrb[48].mxu0  ;;  %v2607_v63 = vpop.f32.mrb[48].mxu1 }
 0x3f9   :  { %v6431_v16 = vadd.f32 %v2494_v11, %v7970_v59  ;;  %v2496_v35 = vpop.f32.mrb[49].mxu0  ;;  %v2609_v61 = vpop.f32.mrb[49].mxu1  ;;  %v6447_v3 = vadd.f32 %v2607_v63, %v7976_v46 }
 0x3fa   :  { %v6432_v62 = vadd.f32 %v2496_v35, %v7972_v52  ;;  %v6448_v24 = vadd.f32 %v2609_v61, %v7974_v6 }
 0x3fb   :  { %v2686_v60 = vmul.f32 0.5, %v6431_v16 }
 0x3fc   :  { %v2718_v10 = vmul.f32 0.5, %v6432_v62  ;;  %v2758_v21 = vmul.f32 0.5, %v6448_v24 }
 0x3fd   :  { %7103 = vtanh.f32 %v2686_v60  ;;  %v2500_v51 = vpop.f32.mrb[50].mxu0  ;;  %v2613_v49 = vpop.f32.mrb[50].mxu1 }
 0x3fe   :  { %7105 = vtanh.f32 %v2718_v10  ;;  %v6433_v5 = vadd.f32 %v2500_v51, %v7970_v59  ;;  %v2502_v42 = vpop.f32.mrb[51].mxu0  ;;  %v2615_v47 = vpop.f32.mrb[51].mxu1  ;;  %v6449_v16 = vadd.f32 %v2613_v49, %v7976_v46 }
 0x3ff   :  { %v6434_v11 = vadd.f32 %v2502_v42, %v7972_v52  ;;  %v6450_v35 = vadd.f32 %v2615_v47, %v7974_v6  ;;  %7107 = vtanh.f32 %v6447_v3 }
 0x400   :  { %v2687_v2 = vmul.f32 0.5, %v6433_v5 }
 0x401   :  { %v2719_v61 = vmul.f32 0.5, %v6434_v11  ;;  %v2506_v62 = vpop.f32.mrb[52].mxu0  ;;  %v2619_v60 = vpop.f32.mrb[52].mxu1  ;;  %v2759_v42 = vmul.f32 0.5, %v6450_v35 }
 0x402   :  { %7109 = vtanh.f32 %v2687_v2  ;;  %v6435_v63 = vadd.f32 %v2506_v62, %v7970_v59  ;;  %v2508_v10 = vpop.f32.mrb[53].mxu0  ;;  %v2621_v20 = vpop.f32.mrb[53].mxu1  ;;  %v6451_v47 = vadd.f32 %v2619_v60, %v7976_v46 }
 0x403   :  { %7111 = vtanh.f32 %v2719_v61  ;;  %v6436_v51 = vadd.f32 %v2508_v10, %v7972_v52 }
 0x404   :  { %7113 = vtanh.f32 %v2758_v21  ;;  %v2688_v24 = vmul.f32 0.5, %v6435_v63  ;;  %v6452_v21 = vadd.f32 %v2621_v20, %v7974_v6 }
 0x405   :  { %7115 = vtanh.f32 %v6449_v16  ;;  %v2720_v5 = vmul.f32 0.5, %v6436_v51  ;;  %v2512_v3 = vpop.f32.mrb[54].mxu0  ;;  %v2625_v49 = vpop.f32.mrb[54].mxu1 }
 0x406   :  { %7117 = vtanh.f32 %v2688_v24  ;;  %v6437_v11 = vadd.f32 %v2512_v3, %v7970_v59  ;;  %v2514_v2 = vpop.f32.mrb[55].mxu0  ;;  %v2627_v56 = vpop.f32.mrb[55].mxu1  ;;  %v6453_v60 = vadd.f32 %v2625_v49, %v7976_v46 }
 0x407   :  { %v7104_v62 = vpop.eup %7103  ;;  %7119 = vtanh.f32 %v2720_v5  ;;  %v6438_v61 = vadd.f32 %v2514_v2, %v7972_v52 }
 0x408   :  { %v7106_v39 = vpop.eup %7105  ;;  %v2702_v10 = vadd.f32 1.0, %v7104_v62  ;;  %7121 = vtanh.f32 %v2759_v42  ;;  %v2689_v35 = vmul.f32 0.5, %v6437_v11 }
 0x409   :  { %v2734_v16 = vadd.f32 1.0, %v7106_v39  ;;  %7123 = vtanh.f32 %v6451_v47  ;;  %v2721_v63 = vmul.f32 0.5, %v6438_v61  ;;  %v7108_v2 = vpop.eup %7107  ;;  %v2760_v39 = vmul.f32 0.5, %v6452_v21  ;;  %v9317_v61 = vld [vmem:[#allocation19_spill] sm:$0xff] }
 0x40a   :  { %v2518_v51 = vpop.f32.mrb[56].mxu0  ;;  %v2631_v24 = vpop.f32.mrb[56].mxu1  ;;  %v2710_v3 = vmul.f32 0.5, %v2702_v10  ;;  %7125 = vtanh.f32 %v2689_v35  ;;  %v6454_v47 = vadd.f32 %v2627_v56, %v7974_v6 }
 0x40b   :  { %v6439_v43 = vadd.f32 %v2518_v51, %v7970_v59  ;;  %v2520_v5 = vpop.f32.mrb[57].mxu0  ;;  %v2633_v36 = vpop.f32.mrb[57].mxu1  ;;  %v2742_v19 = vmul.f32 0.5, %v2734_v16  ;;  %7127 = vtanh.f32 %v2721_v63  ;;  %v6455_v16 = vadd.f32 %v2631_v24, %v7976_v46 }
 0x40c   :  { %v6440_v42 = vadd.f32 %v2520_v5, %v7972_v52  ;;  %v7110_v20 = vpop.eup %7109  ;;  %v2798_v11 = vmul.f32 %v7108_v2, %v2710_v3  ;;  %7129 = vtanh.f32 %v6453_v60  ;;  %v6456_v21 = vadd.f32 %v2633_v36, %v7974_v6 }
 0x40d   :  { %v2690_v49 = vmul.f32 0.5, %v6439_v43  ;;  %v7112_v62 = vpop.eup %7111  ;;  %v2790_v38 = vmul.f32 %v2742_v19, %v9317_v61  ;;  %v2703_v10 = vadd.f32 1.0, %v7110_v20  ;;  %v2761_v2 = vmul.f32 0.5, %v6454_v47 }
 0x40e   :  { %v2722_v35 = vmul.f32 0.5, %v6440_v42  ;;  %v7114_v51 = vpop.eup %7113  ;;  %v2735_v23 = vadd.f32 1.0, %v7112_v62 }
 0x40f   :  { %7131 = vtanh.f32 %v2690_v49  ;;  %v7116_v63 = vpop.eup %7115  ;;  %v8559_v31 = vadd.f32 %v2798_v11, %v2790_v38  ;;  %v2711_v5 = vmul.f32 0.5, %v2703_v10  ;;  %v2762_v49 = vmul.f32 0.5, %v6456_v21 }
 0x410   :  { %7133 = vtanh.f32 %v2722_v35  ;;  %v7118_v56 = vpop.eup %7117  ;;  %v2743_v43 = vmul.f32 0.5, %v2735_v23  ;;  %v2774_v10 = vadd.f32 1.0, %v7114_v51 }
 0x411   :  { %9318 = vst [vmem:[#allocation22_spill] sm:$0xff] %v8559_v31  ;;  %7135 = vtanh.f32 %v2760_v39  ;;  %v7120_v3 = vpop.eup %7119  ;;  %v2799_v19 = vmul.f32 %v7116_v63, %v2711_v5  ;;  %v2704_v60 = vadd.f32 1.0, %v7118_v56 }
 0x412   :  { %7137 = vtanh.f32 %v8559_v31  ;;  %v7122_v42 = vpop.eup %7121  ;;  %v2791_v20 = vmul.f32 %v2743_v43, %v8375_v0  ;;  %v2736_v24 = vadd.f32 1.0, %v7120_v3 }
 0x413   :  { %7139 = vtanh.f32 %v6455_v16  ;;  %v7124_v38 = vpop.eup %7123  ;;  %v2712_v11 = vmul.f32 0.5, %v2704_v60  ;;  %v2524_v62 = vpop.f32.mrb[58].mxu0 }
 0x414   :  { %v2637_v61 = vpop.f32.mrb[58].mxu1  ;;  %v7126_v36 = vpop.eup %7125  ;;  %v8564_v23 = vadd.f32 %v2799_v19, %v2791_v20  ;;  %v2744_v39 = vmul.f32 0.5, %v2736_v24  ;;  %v6441_v35 = vadd.f32 %v2524_v62, %v7970_v59  ;;  %7141 = vtanh.f32 %v2761_v2 }
 0x415   :  { %v2526_v63 = vpop.f32.mrb[59].mxu0  ;;  %v2639_v5 = vpop.f32.mrb[59].mxu1  ;;  %v2800_v56 = vmul.f32 %v7124_v38, %v2712_v11  ;;  %v2705_v31 = vadd.f32 1.0, %v7126_v36  ;;  %v6457_v19 = vadd.f32 %v2637_v61, %v7976_v46 }
 0x416   :  { %v7128_v47 = vpop.eup %7127  ;;  %v6442_v0 = vadd.f32 %v2526_v63, %v7972_v52  ;;  %7143 = vtanh.f32 %v8564_v23  ;;  %v2792_v16 = vmul.f32 %v2744_v39, %v8381_v4  ;;  %v2691_v43 = vmul.f32 0.5, %v6441_v35 }
 0x417   :  { %v2737_v21 = vadd.f32 1.0, %v7128_v47  ;;  %v7130_v51 = vpop.eup %7129  ;;  %v2713_v3 = vmul.f32 0.5, %v2705_v31  ;;  %7145 = vtanh.f32 %v2762_v49  ;;  %v2782_v63 = vmul.f32 0.5, %v2774_v10 }
 0x418   :  { %v2723_v60 = vmul.f32 0.5, %v6442_v0  ;;  %v8571_v24 = vadd.f32 %v2800_v56, %v2792_v16  ;;  %7147 = vtanh.f32 %v2691_v43  ;;  %v2775_v35 = vadd.f32 1.0, %v7122_v42 }
 0x419   :  { %v7132_v20 = vpop.eup %7131  ;;  %v2745_v38 = vmul.f32 0.5, %v2737_v21  ;;  %v2801_v11 = vmul.f32 %v7130_v51, %v2713_v3  ;;  %v6458_v3 = vadd.f32 %v2639_v5, %v7974_v6 }
 0x41a   :  { %v7134_v2 = vpop.eup %7133  ;;  %v2706_v62 = vadd.f32 1.0, %v7132_v20  ;;  %7149 = vtanh.f32 %v2723_v60 }
 0x41b   :  { %v7136_v36 = vpop.eup %7135  ;;  %7151 = vtanh.f32 %v8571_v24  ;;  %v2793_v4 = vmul.f32 %v2745_v38, %v8387_v22  ;;  %v2738_v31 = vadd.f32 1.0, %v7134_v2  ;;  %v2530_v49 = vpop.f32.mrb[60].mxu0 }
 0x41c   :  { %v2643_v39 = vpop.f32.mrb[60].mxu1  ;;  %v7138_v61 = vpop.eup %7137  ;;  %v2714_v47 = vmul.f32 0.5, %v2706_v62  ;;  %7153 = vtanh.f32 %v6457_v19  ;;  %v6443_v56 = vadd.f32 %v2530_v49, %v7970_v59  ;;  %v2776_v38 = vadd.f32 1.0, %v7136_v36  ;;  %v8597_v49 = vld [vmem:[%s9185_s1 + $0x8] sm:$0xff] }
 0x41d   :  { %v2532_v0 = vpop.f32.mrb[61].mxu0  ;;  %v2645_v16 = vpop.f32.mrb[61].mxu1  ;;  %v2822_v43 = vmul.f32 %v7138_v61, %v2782_v63  ;;  %v8576_v51 = vadd.f32 %v2801_v11, %v2793_v4  ;;  %v2746_v10 = vmul.f32 0.5, %v2738_v31  ;;  %v6459_v20 = vadd.f32 %v2643_v39, %v7976_v46 }
 0x41e   :  { %v7140_v21 = vpop.eup %7139  ;;  %v2692_v22 = vmul.f32 0.5, %v6443_v56  ;;  %v6444_v19 = vadd.f32 %v2532_v0, %v7972_v52  ;;  %v2783_v62 = vmul.f32 0.5, %v2775_v35  ;;  %v2763_v63 = vmul.f32 0.5, %v6458_v3 }
 0x41f   :  { %v2802_v60 = vmul.f32 %v7140_v21, %v2714_v47  ;;  %7155 = vtanh.f32 %v8576_v51  ;;  %v2794_v42 = vmul.f32 %v2746_v10, %v8395_v50  ;;  %3169 = vmatmul.mubr.f32.vlgmr.msra.gmra.mrb[64].mxu0 %v2822_v43  ;;  %3282 = vmatmul.mubr.f32.vlgmr.msra.gmra.mrb[64].mxu1 %v2822_v43  ;;  %v7142_v2 = vpop.eup %7141  ;;  %v8590_v50 = vld [vmem:[%s9185_s1] sm:$0xff]  ;;  %v2784_v21 = vmul.f32 0.5, %v2776_v38 }
 0x420   :  { %7157 = vtanh.f32 %v2692_v22  ;;  %3174 = vmatprep.mubr.f32.mxu0 %v9257_v37  ;;  %3287 = vmatprep.mubr.f32.mxu1 %v9257_v37  ;;  %v7144_v5 = vpop.eup %7143  ;;  %v2724_v36 = vmul.f32 0.5, %v6444_v19  ;;  %v2536_v4 = vpop.f32.mrb[62].mxu0  ;;  %v2777_v3 = vadd.f32 1.0, %v7142_v2 }
 0x421   :  { %v8585_v11 = vadd.f32 %v2802_v60, %v2794_v42  ;;  %v2649_v31 = vpop.f32.mrb[62].mxu1  ;;  %5724 = vmatpush1.msk.msra.mxu0 %vm165_vm0, %v8590_v50  ;;  %5734 = vmatpush1.msk.msra.mxu1 %vm165_vm0, %v8597_v49  ;;  %v7146_v39 = vpop.eup %7145  ;;  %7159 = vtanh.f32 %v6459_v20  ;;  %v6445_v61 = vadd.f32 %v2536_v4, %v7970_v59  ;;  %v2823_v56 = vmul.f32 %v7144_v5, %v2783_v62 }
 0x422   :  { %v2538_v35 = vpop.f32.mrb[63].mxu0  ;;  %v2651_v47 = vpop.f32.mrb[63].mxu1  ;;  %6132 = vmatprep.subr.bf16.mxu0 %v7642_v9  ;;  %6164 = vmatprep.subr.bf16.mxu1 %v7648_v13  ;;  %v6461_v5 = vadd.f32 %v2649_v31, %v7976_v46 }
 0x423   :  { %v7148_v0 = vpop.eup %7147  ;;  %7161 = vtanh.f32 %v8585_v11  ;;  %v6446_v43 = vadd.f32 %v2538_v35, %v7972_v52  ;;  %v2693_v22 = vmul.f32 0.5, %v6445_v61  ;;  %3175 = vmatmul.mubr.f32.gmra.mrb[66].mxu0 %v2823_v56  ;;  %3288 = vmatmul.mubr.f32.gmra.mrb[66].mxu1 %v2823_v56  ;;  %v2785_v61 = vmul.f32 0.5, %v2777_v3 }
 0x424   :  { %v7150_v10 = vpop.eup %7149  ;;  %v2707_v60 = vadd.f32 1.0, %v7148_v0  ;;  %7163 = vtanh.f32 %v2724_v36  ;;  %3180 = vmatprep.mubr.f32.mxu0 %v9257_v37  ;;  %3293 = vmatprep.mubr.f32.mxu1 %v9257_v37  ;;  %v6460_v36 = vadd.f32 %v2645_v16, %v7974_v6  ;;  %v2778_v35 = vadd.f32 1.0, %v7146_v39 }
 0x425   :  { %v7152_v20 = vpop.eup %7151  ;;  %v2739_v42 = vadd.f32 1.0, %v7150_v10  ;;  %7165 = vtanh.f32 %v2763_v63  ;;  %v2725_v19 = vmul.f32 0.5, %v6446_v43  ;;  %v6462_v39 = vadd.f32 %v2651_v47, %v7974_v6 }
 0x426   :  { %v7154_v38 = vpop.eup %7153  ;;  %v2715_v62 = vmul.f32 0.5, %v2707_v60  ;;  %7167 = vtanh.f32 %v2693_v22  ;;  %v2824_v4 = vmul.f32 %v7152_v20, %v2784_v21  ;;  %v2764_v16 = vmul.f32 0.5, %v6460_v36 }
 0x427   :  { %v2747_v2 = vmul.f32 0.5, %v2739_v42  ;;  %7169 = vtanh.f32 %v2725_v19  ;;  %v2786_v60 = vmul.f32 0.5, %v2778_v35 }
 0x428   :  { %v2803_v56 = vmul.f32 %v7154_v38, %v2715_v62  ;;  %3181 = vmatmul.mubr.f32.gmra.mrb[68].mxu0 %v2824_v4  ;;  %3294 = vmatmul.mubr.f32.gmra.mrb[68].mxu1 %v2824_v4  ;;  %7171 = vtanh.f32 %v6461_v5  ;;  %v2765_v5 = vmul.f32 0.5, %v6462_v39 }
 0x429   :  { %v7156_v63 = vpop.eup %7155  ;;  %v2795_v0 = vmul.f32 %v2747_v2, %v8414_v1  ;;  %3186 = vmatprep.mubr.f32.mxu0 %v9257_v37  ;;  %3299 = vmatprep.mubr.f32.mxu1 %v9257_v37 }
 0x42a   :  { %v7158_v43 = vpop.eup %7157  ;;  %v2825_v31 = vmul.f32 %v7156_v63, %v2785_v61 }
 0x42b   :  { %v8613_v21 = vadd.f32 %v2803_v56, %v2795_v0  ;;  %v2708_v10 = vadd.f32 1.0, %v7158_v43  ;;  %v7160_v3 = vpop.eup %7159 }
 0x42c   :  { %3187 = vmatmul.mubr.f32.gmra.mrb[70].mxu0 %v2825_v31  ;;  %3300 = vmatmul.mubr.f32.gmra.mrb[70].mxu1 %v2825_v31 }
 0x42d   :  { %v7162_v22 = vpop.eup %7161  ;;  %7173 = vtanh.f32 %v8613_v21  ;;  %v2716_v1 = vmul.f32 0.5, %v2708_v10  ;;  %3192 = vmatprep.mubr.f32.mxu0 %v9257_v37  ;;  %3305 = vmatprep.mubr.f32.mxu1 %v9257_v37 }
 0x42e   :  { %v7164_v20 = vpop.eup %7163  ;;  %v2826_v42 = vmul.f32 %v7162_v22, %v2786_v60  ;;  %7175 = vtanh.f32 %v2764_v16 }
 0x42f   :  { %v7166_v19 = vpop.eup %7165  ;;  %v2740_v38 = vadd.f32 1.0, %v7164_v20  ;;  %v2804_v62 = vmul.f32 %v7160_v3, %v2716_v1  ;;  %7177 = vtanh.f32 %v2765_v5 }
 0x430   :  { %v7168_v47 = vpop.eup %7167  ;;  %3193 = vmatmul.mubr.f32.gmra.mrb[72].mxu0 %v2826_v42  ;;  %3306 = vmatmul.mubr.f32.gmra.mrb[72].mxu1 %v2826_v42  ;;  %v2779_v61 = vadd.f32 1.0, %v7166_v19 }
 0x431   :  { %v2748_v4 = vmul.f32 0.5, %v2740_v38  ;;  %v2709_v2 = vadd.f32 1.0, %v7168_v47  ;;  %3198 = vmatprep.mubr.f32.mxu0 %v9257_v37  ;;  %3311 = vmatprep.mubr.f32.mxu1 %v9257_v37  ;;  %v7170_v36 = vpop.eup %7169 }
 0x432   :  { %v2741_v63 = vadd.f32 1.0, %v7170_v36  ;;  %v7172_v0 = vpop.eup %7171  ;;  %v2787_v16 = vmul.f32 0.5, %v2779_v61 }
 0x433   :  { %v2796_v35 = vmul.f32 %v2748_v4, %v8422_v18  ;;  %v2717_v56 = vmul.f32 0.5, %v2709_v2  ;;  %v3523_v4 = vpop.permute.xlu0 %3522  ;;  %v3525_v2 = vpop.permute.xlu1 %3524 }
 0x434   :  { %v2749_v31 = vmul.f32 0.5, %v2741_v63 }
 0x435   :  { %v8622_v43 = vadd.f32 %v2804_v62, %v2796_v35  ;;  %v2805_v10 = vmul.f32 %v7172_v0, %v2717_v56  ;;  %v9319_v0 = vld [vmem:[#allocation13_spill] sm:$0xff] }
 0x436   :  { %v2797_v3 = vmul.f32 %v2749_v31, %v8426_v32  ;;  %v9320_v31 = vld [vmem:[#allocation14_spill] sm:$0xff] }
 0x437   :  { %v7174_v39 = vpop.eup %7173  ;;  %7179 = vtanh.f32 %v8622_v43  ;;  %v3527_v36 = vpop.permute.xlu0 %3526 }
 0x438   :  { %v2827_v60 = vmul.f32 %v7174_v39, %v2787_v16  ;;  %v7176_v22 = vpop.eup %7175  ;;  %v8626_v1 = vadd.f32 %v2805_v10, %v2797_v3  ;;  %v3529_v61 = vpop.permute.xlu1 %3528  ;;  %v9321_v16 = vld [vmem:[#allocation15_spill] sm:$0xff]  ;;  %v9322_v39 = vld [vmem:[#allocation16_spill] sm:$0xff]  ;;  %v9323_v3 = vld [vmem:[#allocation17_spill] sm:$0xff] }
 0x439   :  { %v2780_v18 = vadd.f32 1.0, %v7176_v22  ;;  %v7178_v20 = vpop.eup %7177  ;;  %v9325_v22 = vld [vmem:[#allocation9_spill] sm:$0xff] }
 0x43a   :  { %3199 = vmatmul.mubr.f32.gmra.mrb[74].mxu0 %v2827_v60  ;;  %3312 = vmatmul.mubr.f32.gmra.mrb[74].mxu1 %v2827_v60  ;;  %7181 = vtanh.f32 %v8626_v1  ;;  %v2781_v19 = vadd.f32 1.0, %v7178_v20  ;;  %v9324_v60 = vld [vmem:[#allocation18_spill] sm:$0xff]  ;;  %v8704_v20 = vld [vmem:[%s9184_s0] sm:$0xff] }
 0x43b   :  { %3204 = vmatprep.mubr.f32.mxu0 %v9257_v37  ;;  %3317 = vmatprep.mubr.f32.mxu1 %v9257_v37  ;;  %v2788_v42 = vmul.f32 0.5, %v2780_v18  ;;  %v3531_v35 = vpop.permute.xlu0 %3530  ;;  %v9326_v18 = vld [vmem:[#allocation10_spill] sm:$0xff]  ;;  %9327 = vst [vmem:[#allocation23_spill] sm:$0xff] %v8704_v20 }
 0x43c   :  { %v2789_v5 = vmul.f32 0.5, %v2781_v19  ;;  %v3533_v56 = vpop.permute.xlu1 %3532  ;;  %4198 = vrot.lane.b32.xlu0 %v8704_v20, %s7566_s29  ;;  %v9329_v19 = vld [vmem:[#allocation20_spill] sm:$0xff] }
 0x43f   :  { %v3535_v63 = vpop.permute.xlu0 %3534 }
 0x440   :  { %v3537_v10 = vpop.permute.xlu1 %3536  ;;  %4202 = vrot.lane.b32.xlu0 %v9329_v19, %s7566_s29 }
 0x441   :  { %v7180_v38 = vpop.eup %7179 }
 0x442   :  { %v2828_v62 = vmul.f32 %v7180_v38, %v2788_v42  ;;  %v8709_v42 = vld [vmem:[%s9184_s0 + $0x8] sm:$0xff]  ;;  %v9330_v38 = vld [vmem:[#allocation24_spill] sm:$0xff] }
 0x443   :  { %9328 = vst [vmem:[#allocation28_spill] sm:$0xff] %v8709_v42  ;;  %4200 = vrot.lane.b32.xlu1 %v8709_v42, %s7566_s29 }
 0x444   :  { %3205 = vmatmul.mubr.f32.gmra.mrb[76].mxu0 %v2828_v62  ;;  %3318 = vmatmul.mubr.f32.gmra.mrb[76].mxu1 %v2828_v62  ;;  %v7182_v32 = vpop.eup %7181  ;;  %v9331_v62 = vld [vmem:[#allocation25_spill] sm:$0xff] }
 0x445   :  { %3210 = vmatprep.mubr.f32.mxu0 %v9257_v37  ;;  %3323 = vmatprep.mubr.f32.mxu1 %v9257_v37  ;;  %v2829_v47 = vmul.f32 %v7182_v32, %v2789_v5  ;;  %v9332_v5 = vld [vmem:[#allocation26_spill] sm:$0xff]  ;;  %v9333_v32 = vld [vmem:[#allocation27_spill] sm:$0xff] }
 0x446   :  { %4206 = vrot.lane.b32.xlu0 %v9331_v62, %s7566_s29 }
 0x447   :  { %4204 = vrot.lane.b32.xlu1 %v9330_v38, %s7566_s29 }
 0x448   :  { %3211 = vmatmul.mubr.f32.gmra.mrb[78].mxu0 %v2829_v47  ;;  %3324 = vmatmul.mubr.f32.gmra.mrb[78].mxu1 %v2829_v47  ;;  %v9334_v47 = vld [vmem:[#allocation21_spill] sm:$0xff] }
 0x449   :  { %3618 = vmatprep.mubr.f32.mxu0 %v9257_v37  ;;  %3731 = vmatprep.mubr.f32.mxu1 %v9257_v37 }
 0x44a   :  { %4210 = vrot.lane.b32.xlu0 %v9333_v32, %s7566_s29 }
 0x44b   :  { %4208 = vrot.lane.b32.xlu1 %v9332_v5, %s7566_s29 }
 0x44c   :  { %5725 = vmatmul.mubr.msk.f32.vlgmr.msra.gmra.mrb[80].mxu0 %vm140_vm1, %v3523_v4  ;;  %5735 = vmatmul.mubr.msk.f32.vlgmr.msra.gmra.mrb[80].mxu1 %vm140_vm1, %v3523_v4 }
 0x44d   :  { %6134 = vmatpush1.bf16.msra.mxu0 %v7650_v14  ;;  %6166 = vmatpush1.bf16.msra.mxu1 %v7656_v17 }
 0x44e   :  { %3624 = vmatprep.mubr.f32.mxu0 %v9257_v37  ;;  %3737 = vmatprep.mubr.f32.mxu1 %v9257_v37 }
 0x44f   :  { %6136 = vmatprep.subr.bf16.mxu0 %v7667_v25  ;;  %6168 = vmatprep.subr.bf16.mxu1 %v7669_v26 }
 0x450   :  { %5726 = vmatmul.mubr.msk.f32.gmra.mrb[82].mxu0 %vm140_vm1, %v3525_v2  ;;  %5736 = vmatmul.mubr.msk.f32.gmra.mrb[82].mxu1 %vm140_vm1, %v3525_v2 }
 0x451   :  { %6138 = vmatpush1.bf16.msra.mxu0 %v7673_v29  ;;  %6170 = vmatpush1.bf16.msra.mxu1 %v7675_v30 }
 0x452   :  { %3630 = vmatprep.mubr.f32.mxu0 %v9257_v37  ;;  %3743 = vmatprep.mubr.f32.mxu1 %v9257_v37 }
 0x453   :  { %6140 = vmatprep.subr.bf16.mxu0 %v7690_v40  ;;  %6172 = vmatprep.subr.bf16.mxu1 %v7692_v41 }
 0x454   :  { %5727 = vmatmul.mubr.msk.f32.gmra.mrb[84].mxu0 %vm140_vm1, %v3527_v36  ;;  %5737 = vmatmul.mubr.msk.f32.gmra.mrb[84].mxu1 %vm140_vm1, %v3527_v36 }
 0x455   :  { %6142 = vmatpush1.bf16.msra.mxu0 %v7696_v44  ;;  %6174 = vmatpush1.bf16.msra.mxu1 %v7698_v45 }
 0x456   :  { %3636 = vmatprep.mubr.f32.mxu0 %v9257_v37  ;;  %3749 = vmatprep.mubr.f32.mxu1 %v9257_v37 }
 0x457   :  { %6144 = vmatprep.subr.bf16.mxu0 %v7713_v53  ;;  %6176 = vmatprep.subr.bf16.mxu1 %v7715_v54 }
 0x458   :  { %5728 = vmatmul.mubr.msk.f32.gmra.mrb[86].mxu0 %vm140_vm1, %v3529_v61  ;;  %5738 = vmatmul.mubr.msk.f32.gmra.mrb[86].mxu1 %vm140_vm1, %v3529_v61 }
 0x459   :  { %6146 = vmatpush1.bf16.msra.mxu0 %v7719_v57  ;;  %6178 = vmatpush1.bf16.msra.mxu1 %v7721_v58 }
 0x45a   :  { %3642 = vmatprep.mubr.f32.mxu0 %v9257_v37  ;;  %3755 = vmatprep.mubr.f32.mxu1 %v9257_v37 }
 0x45b   :  { %6148 = vmatprep.subr.bf16.mxu0 %v7736_v7  ;;  %6180 = vmatprep.subr.bf16.mxu1 %v7738_v8 }
 0x45c   :  { %5729 = vmatmul.mubr.msk.f32.gmra.mrb[88].mxu0 %vm140_vm1, %v3531_v35  ;;  %5739 = vmatmul.mubr.msk.f32.gmra.mrb[88].mxu1 %vm140_vm1, %v3531_v35 }
 0x45d   :  { %6150 = vmatpush1.bf16.msra.mxu0 %v7742_v12  ;;  %6182 = vmatpush1.bf16.msra.mxu1 %v7744_v15 }
 0x45e   :  { %3648 = vmatprep.mubr.f32.mxu0 %v9257_v37  ;;  %3761 = vmatprep.mubr.f32.mxu1 %v9257_v37 }
 0x45f   :  { %6152 = vmatprep.subr.bf16.mxu0 %v7759_v27  ;;  %6184 = vmatprep.subr.bf16.mxu1 %v7761_v28 }
 0x460   :  { %5730 = vmatmul.mubr.msk.f32.gmra.mrb[90].mxu0 %vm140_vm1, %v3533_v56  ;;  %5740 = vmatmul.mubr.msk.f32.gmra.mrb[90].mxu1 %vm140_vm1, %v3533_v56 }
 0x461   :  { %6154 = vmatpush1.bf16.msra.mxu0 %v7765_v33  ;;  %6186 = vmatpush1.bf16.msra.mxu1 %v7767_v34 }
 0x462   :  { %3654 = vmatprep.mubr.f32.mxu0 %v9257_v37  ;;  %3767 = vmatprep.mubr.f32.mxu1 %v9257_v37 }
 0x463   :  { %6156 = vmatprep.subr.bf16.mxu0 %v9299_v48  ;;  %6188 = vmatprep.subr.bf16.mxu1 %v9300_v55 }
 0x464   :  { %5731 = vmatmul.mubr.msk.f32.gmra.mrb[92].mxu0 %vm140_vm1, %v3535_v63  ;;  %5741 = vmatmul.mubr.msk.f32.gmra.mrb[92].mxu1 %vm140_vm1, %v3535_v63 }
 0x465   :  { %6158 = vmatpush1.bf16.msra.mxu0 %v9319_v0  ;;  %6190 = vmatpush1.bf16.msra.mxu1 %v9320_v31 }
 0x466   :  { %3660 = vmatprep.mubr.f32.mxu0 %v9257_v37  ;;  %3773 = vmatprep.mubr.f32.mxu1 %v9257_v37 }
 0x467   :  { %6160 = vmatprep.subr.bf16.mxu0 %v9321_v16  ;;  %6192 = vmatprep.subr.bf16.mxu1 %v9322_v39 }
 0x468   :  { %5732 = vmatmul.mubr.msk.f32.gmra.mrb[94].mxu0 %vm140_vm1, %v3537_v10  ;;  %5742 = vmatmul.mubr.msk.f32.gmra.mrb[94].mxu1 %vm140_vm1, %v3537_v10 }
 0x469   :  { %6162 = vmatpush1.bf16.msra.mxu0 %v9323_v3  ;;  %6194 = vmatpush1.bf16.msra.mxu1 %v9324_v60 }
 0x46a   :  { %3844 = vmatprep.mubr.f32.mxu0 %v9257_v37  ;;  %3957 = vmatprep.mubr.f32.mxu1 %v9257_v37 }
 0x46b   :  { %5743 = vmatprep.subr.msk.mxu0 %vm165_vm0, %v9325_v22  ;;  %5753 = vmatprep.subr.msk.mxu1 %vm165_vm0, %v9326_v18 }
 0x46c   :  { %4212 = vrot.lane.b32.xlu1 %v9334_v47, %s7566_s29 }
 0x4f2   :  { %v3170_v4 = vpop.f32.mrb[64].mxu0  ;;  %v3283_v2 = vpop.f32.mrb[64].mxu1 }
 0x4f3   :  { %v6463_v36 = vadd.f32 %v3170_v4, %v7970_v59  ;;  %v3172_v61 = vpop.f32.mrb[65].mxu0  ;;  %v3285_v35 = vpop.f32.mrb[65].mxu1  ;;  %v6479_v19 = vadd.f32 %v3283_v2, %v7976_v46 }
 0x4f4   :  { %v6464_v56 = vadd.f32 %v3172_v61, %v7972_v52  ;;  %v6480_v4 = vadd.f32 %v3285_v35, %v7974_v6 }
 0x4f5   :  { %v3362_v63 = vmul.f32 0.5, %v6463_v36 }
 0x4f6   :  { %v3394_v10 = vmul.f32 0.5, %v6464_v56  ;;  %v3176_v38 = vpop.f32.mrb[66].mxu0  ;;  %v3289_v62 = vpop.f32.mrb[66].mxu1  ;;  %v3434_v22 = vmul.f32 0.5, %v6480_v4 }
 0x4f7   :  { %7183 = vtanh.f32 %v3362_v63  ;;  %v6465_v5 = vadd.f32 %v3176_v38, %v7970_v59  ;;  %v3178_v32 = vpop.f32.mrb[67].mxu0  ;;  %v3291_v47 = vpop.f32.mrb[67].mxu1  ;;  %v6481_v61 = vadd.f32 %v3289_v62, %v7976_v46 }
 0x4f8   :  { %7185 = vtanh.f32 %v3394_v10  ;;  %v6466_v42 = vadd.f32 %v3178_v32, %v7972_v52  ;;  %v6482_v32 = vadd.f32 %v3291_v47, %v7974_v6 }
 0x4f9   :  { %v3363_v20 = vmul.f32 0.5, %v6465_v5  ;;  %7187 = vtanh.f32 %v6479_v19 }
 0x4fa   :  { %v3395_v36 = vmul.f32 0.5, %v6466_v42  ;;  %v3435_v47 = vmul.f32 0.5, %v6482_v32 }
 0x4fb   :  { %v3182_v56 = vpop.f32.mrb[68].mxu0  ;;  %v3295_v63 = vpop.f32.mrb[68].mxu1  ;;  %7189 = vtanh.f32 %v3363_v20 }
 0x4fc   :  { %v6467_v2 = vadd.f32 %v3182_v56, %v7970_v59  ;;  %v3184_v18 = vpop.f32.mrb[69].mxu0  ;;  %v3297_v10 = vpop.f32.mrb[69].mxu1  ;;  %7191 = vtanh.f32 %v3395_v36  ;;  %v6483_v35 = vadd.f32 %v3295_v63, %v7976_v46 }
 0x4fd   :  { %v6468_v38 = vadd.f32 %v3184_v18, %v7972_v52  ;;  %7193 = vtanh.f32 %v6481_v61 }
 0x4fe   :  { %v3364_v60 = vmul.f32 0.5, %v6467_v2 }
 0x4ff   :  { %v3396_v19 = vmul.f32 0.5, %v6468_v38  ;;  %v3188_v62 = vpop.f32.mrb[70].mxu0  ;;  %v3301_v42 = vpop.f32.mrb[70].mxu1 }
 0x500   :  { %7195 = vtanh.f32 %v3364_v60  ;;  %v6469_v20 = vadd.f32 %v3188_v62, %v7970_v59  ;;  %v3190_v5 = vpop.f32.mrb[71].mxu0  ;;  %v3303_v56 = vpop.f32.mrb[71].mxu1  ;;  %v6485_v63 = vadd.f32 %v3301_v42, %v7976_v46  ;;  %v6484_v62 = vadd.f32 %v3297_v10, %v7974_v6 }
 0x501   :  { %v7184_v3 = vpop.eup %7183  ;;  %7197 = vtanh.f32 %v3396_v19  ;;  %v6470_v36 = vadd.f32 %v3190_v5, %v7972_v52  ;;  %v6486_v42 = vadd.f32 %v3303_v56, %v7974_v6 }
 0x502   :  { %v7186_v18 = vpop.eup %7185  ;;  %v3378_v4 = vadd.f32 1.0, %v7184_v3  ;;  %7199 = vtanh.f32 %v3434_v22  ;;  %v3365_v2 = vmul.f32 0.5, %v6469_v20  ;;  %v3436_v55 = vmul.f32 0.5, %v6484_v62 }
 0x503   :  { %v3410_v61 = vadd.f32 1.0, %v7186_v18  ;;  %7201 = vtanh.f32 %v6483_v35  ;;  %v3397_v38 = vmul.f32 0.5, %v6470_v36  ;;  %v3194_v39 = vpop.f32.mrb[72].mxu0  ;;  %v3307_v60 = vpop.f32.mrb[72].mxu1  ;;  %v9335_v18 = vld [vmem:[#allocation22_spill] sm:$0xff] }
 0x504   :  { %v3386_v16 = vmul.f32 0.5, %v3378_v4  ;;  %7203 = vtanh.f32 %v3365_v2  ;;  %v6471_v19 = vadd.f32 %v3194_v39, %v7970_v59  ;;  %v3196_v31 = vpop.f32.mrb[73].mxu0  ;;  %v3309_v5 = vpop.f32.mrb[73].mxu1 }
 0x505   :  { %v7188_v0 = vpop.eup %7187  ;;  %v3418_v3 = vmul.f32 0.5, %v3410_v61  ;;  %7205 = vtanh.f32 %v3397_v38  ;;  %v6472_v22 = vadd.f32 %v3196_v31, %v7972_v52  ;;  %v6487_v61 = vadd.f32 %v3307_v60, %v7976_v46 }
 0x506   :  { %v7190_v32 = vpop.eup %7189  ;;  %v3474_v35 = vmul.f32 %v7188_v0, %v3386_v16  ;;  %7207 = vtanh.f32 %v3435_v47  ;;  %v3366_v20 = vmul.f32 0.5, %v6471_v19  ;;  %v6488_v0 = vadd.f32 %v3309_v5, %v7974_v6 }
 0x507   :  { %v7192_v36 = vpop.eup %7191  ;;  %v3466_v4 = vmul.f32 %v3418_v3, %v9335_v18  ;;  %v3379_v10 = vadd.f32 1.0, %v7190_v32  ;;  %7209 = vtanh.f32 %v6485_v63  ;;  %v3398_v2 = vmul.f32 0.5, %v6472_v22 }
 0x508   :  { %v3411_v39 = vadd.f32 1.0, %v7192_v36  ;;  %7211 = vtanh.f32 %v3366_v20  ;;  %v7194_v38 = vpop.eup %7193  ;;  %v3437_v47 = vmul.f32 0.5, %v6486_v42  ;;  %v3438_v20 = vmul.f32 0.5, %v6488_v0 }
 0x509   :  { %v8739_v48 = vadd.f32 %v3474_v35, %v3466_v4  ;;  %v3387_v31 = vmul.f32 0.5, %v3379_v10  ;;  %7213 = vtanh.f32 %v3398_v2 }
 0x50a   :  { %v7196_v16 = vpop.eup %7195  ;;  %v3419_v56 = vmul.f32 0.5, %v3411_v39 }
 0x50b   :  { %v7198_v19 = vpop.eup %7197  ;;  %7215 = vtanh.f32 %v8739_v48  ;;  %v3475_v63 = vmul.f32 %v7194_v38, %v3387_v31  ;;  %v3380_v3 = vadd.f32 1.0, %v7196_v16 }
 0x50c   :  { %v7200_v22 = vpop.eup %7199  ;;  %v3467_v62 = vmul.f32 %v3419_v56, %v8564_v23  ;;  %v3412_v32 = vadd.f32 1.0, %v7198_v19  ;;  %7217 = vtanh.f32 %v6487_v61 }
 0x50d   :  { %v7202_v60 = vpop.eup %7201  ;;  %v3388_v35 = vmul.f32 0.5, %v3380_v3  ;;  %7219 = vtanh.f32 %v3436_v55  ;;  %v3200_v36 = vpop.f32.mrb[74].mxu0  ;;  %v3450_v31 = vadd.f32 1.0, %v7200_v22 }
 0x50e   :  { %v3313_v18 = vpop.f32.mrb[74].mxu1  ;;  %v7204_v5 = vpop.eup %7203  ;;  %v8744_v4 = vadd.f32 %v3475_v63, %v3467_v62  ;;  %v3420_v42 = vmul.f32 0.5, %v3412_v32  ;;  %7221 = vtanh.f32 %v3437_v47  ;;  %v6473_v10 = vadd.f32 %v3200_v36, %v7970_v59 }
 0x50f   :  { %v3202_v2 = vpop.f32.mrb[75].mxu0  ;;  %v3315_v39 = vpop.f32.mrb[75].mxu1  ;;  %v3476_v23 = vmul.f32 %v7202_v60, %v3388_v35  ;;  %v3381_v16 = vadd.f32 1.0, %v7204_v5  ;;  %v6489_v22 = vadd.f32 %v3313_v18, %v7976_v46 }
 0x510   :  { %v7206_v38 = vpop.eup %7205  ;;  %v6474_v61 = vadd.f32 %v3202_v2, %v7972_v52  ;;  %7223 = vtanh.f32 %v8744_v4  ;;  %v3468_v55 = vmul.f32 %v3420_v42, %v8571_v24  ;;  %v3367_v19 = vmul.f32 0.5, %v6473_v10 }
 0x511   :  { %v7208_v56 = vpop.eup %7207  ;;  %v3413_v0 = vadd.f32 1.0, %v7206_v38  ;;  %v3389_v3 = vmul.f32 0.5, %v3381_v16  ;;  %7225 = vtanh.f32 %v3438_v20  ;;  %v6490_v2 = vadd.f32 %v3315_v39, %v7974_v6 }
 0x512   :  { %v7210_v63 = vpop.eup %7209  ;;  %v3399_v47 = vmul.f32 0.5, %v6474_v61  ;;  %v8750_v32 = vadd.f32 %v3476_v23, %v3468_v55  ;;  %7227 = vtanh.f32 %v3367_v19  ;;  %v3458_v24 = vmul.f32 0.5, %v3450_v31 }
 0x513   :  { %v7212_v62 = vpop.eup %7211  ;;  %v3421_v36 = vmul.f32 0.5, %v3413_v0  ;;  %v3477_v35 = vmul.f32 %v7210_v63, %v3389_v3  ;;  %v3451_v38 = vadd.f32 1.0, %v7208_v56  ;;  %v3439_v63 = vmul.f32 0.5, %v6490_v2 }
 0x514   :  { %v7214_v60 = vpop.eup %7213  ;;  %v3382_v5 = vadd.f32 1.0, %v7212_v62  ;;  %7229 = vtanh.f32 %v3399_v47 }
 0x515   :  { %7231 = vtanh.f32 %v8750_v32  ;;  %v3469_v42 = vmul.f32 %v3421_v36, %v8576_v51  ;;  %v3414_v20 = vadd.f32 1.0, %v7214_v60  ;;  %v7216_v10 = vpop.eup %7215  ;;  %v3459_v36 = vmul.f32 0.5, %v3451_v38 }
 0x516   :  { %v3390_v23 = vmul.f32 0.5, %v3382_v5  ;;  %v7218_v16 = vpop.eup %7217  ;;  %v3498_v61 = vmul.f32 %v7216_v10, %v3458_v24  ;;  %7233 = vtanh.f32 %v6489_v22 }
 0x517   :  { %v8756_v55 = vadd.f32 %v3477_v35, %v3469_v42  ;;  %v3422_v18 = vmul.f32 0.5, %v3414_v20  ;;  %v7220_v0 = vpop.eup %7219  ;;  %v3206_v3 = vpop.f32.mrb[76].mxu0 }
 0x518   :  { %v3478_v19 = vmul.f32 %v7218_v16, %v3390_v23  ;;  %v3319_v39 = vpop.f32.mrb[76].mxu1  ;;  %v7222_v31 = vpop.eup %7221  ;;  %v6475_v47 = vadd.f32 %v3206_v3, %v7970_v59  ;;  %3845 = vmatmul.mubr.f32.vlgmr.msra.gmra.mrb[80].mxu0 %v3498_v61  ;;  %3958 = vmatmul.mubr.f32.vlgmr.msra.gmra.mrb[80].mxu1 %v3498_v61  ;;  %v3452_v35 = vadd.f32 1.0, %v7220_v0 }
 0x519   :  { %7235 = vtanh.f32 %v8756_v55  ;;  %v3470_v51 = vmul.f32 %v3422_v18, %v8585_v11  ;;  %v3208_v56 = vpop.f32.mrb[77].mxu0  ;;  %v3321_v62 = vpop.f32.mrb[77].mxu1  ;;  %3850 = vmatprep.mubr.f32.mxu0 %v9257_v37  ;;  %3963 = vmatprep.mubr.f32.mxu1 %v9257_v37  ;;  %v3453_v24 = vadd.f32 1.0, %v7222_v31  ;;  %v6491_v0 = vadd.f32 %v3319_v39, %v7976_v46 }
 0x51a   :  { %v6476_v60 = vadd.f32 %v3208_v56, %v7972_v52  ;;  %v7224_v22 = vpop.eup %7223  ;;  %v3368_v2 = vmul.f32 0.5, %v6475_v47  ;;  %5744 = vmatpush1.msk.msra.mxu0 %vm165_vm0, %v8590_v50  ;;  %5754 = vmatpush1.msk.msra.mxu1 %vm165_vm0, %v8597_v49  ;;  %7237 = vtanh.f32 %v3439_v63  ;;  %v3460_v3 = vmul.f32 0.5, %v3452_v35 }
 0x51b   :  { %v8764_v5 = vadd.f32 %v3478_v19, %v3470_v51  ;;  %v7226_v11 = vpop.eup %7225  ;;  %v3212_v20 = vpop.f32.mrb[78].mxu0  ;;  %v3499_v38 = vmul.f32 %v7224_v22, %v3459_v36  ;;  %6196 = vmatprep.subr.bf16.mxu0 %v7642_v9  ;;  %6228 = vmatprep.subr.bf16.mxu1 %v7648_v13  ;;  %v3461_v47 = vmul.f32 0.5, %v3453_v24  ;;  %v6492_v35 = vadd.f32 %v3321_v62, %v7974_v6 }
 0x51c   :  { %v3400_v42 = vmul.f32 0.5, %v6476_v60  ;;  %v3325_v10 = vpop.f32.mrb[78].mxu1  ;;  %v7228_v23 = vpop.eup %7227  ;;  %v6477_v16 = vadd.f32 %v3212_v20, %v7970_v59  ;;  %v3454_v20 = vadd.f32 1.0, %v7226_v11 }
 0x51d   :  { %7239 = vtanh.f32 %v8764_v5  ;;  %v3214_v50 = vpop.f32.mrb[79].mxu0  ;;  %v3327_v61 = vpop.f32.mrb[79].mxu1  ;;  %v3383_v49 = vadd.f32 1.0, %v7228_v23  ;;  %3851 = vmatmul.mubr.f32.gmra.mrb[82].mxu0 %v3499_v38  ;;  %3964 = vmatmul.mubr.f32.gmra.mrb[82].mxu1 %v3499_v38  ;;  %v6493_v39 = vadd.f32 %v3325_v10, %v7976_v46 }
 0x51e   :  { %v7230_v18 = vpop.eup %7229  ;;  %7241 = vtanh.f32 %v3368_v2  ;;  %v6478_v19 = vadd.f32 %v3214_v50, %v7972_v52  ;;  %v3369_v51 = vmul.f32 0.5, %v6477_v16  ;;  %3856 = vmatprep.mubr.f32.mxu0 %v9257_v37  ;;  %3969 = vmatprep.mubr.f32.mxu1 %v9257_v37  ;;  %v3462_v11 = vmul.f32 0.5, %v3454_v20 }
 0x51f   :  { %v7232_v63 = vpop.eup %7231  ;;  %v3415_v31 = vadd.f32 1.0, %v7230_v18  ;;  %7243 = vtanh.f32 %v3400_v42  ;;  %v3391_v56 = vmul.f32 0.5, %v3383_v49  ;;  %v3440_v50 = vmul.f32 0.5, %v6492_v35 }
 0x520   :  { %v3401_v36 = vmul.f32 0.5, %v6478_v19  ;;  %v7234_v60 = vpop.eup %7233  ;;  %7245 = vtanh.f32 %v3369_v51  ;;  %v3500_v2 = vmul.f32 %v7232_v63, %v3460_v3  ;;  %v6494_v18 = vadd.f32 %v3327_v61, %v7974_v6 }
 0x521   :  { %v3423_v22 = vmul.f32 0.5, %v3415_v31  ;;  %v3479_v38 = vmul.f32 %v7234_v60, %v3391_v56  ;;  %7247 = vtanh.f32 %v6491_v0 }
 0x522   :  { %7249 = vtanh.f32 %v3401_v36  ;;  %3857 = vmatmul.mubr.f32.gmra.mrb[84].mxu0 %v3500_v2  ;;  %3970 = vmatmul.mubr.f32.gmra.mrb[84].mxu1 %v3500_v2  ;;  %v3441_v3 = vmul.f32 0.5, %v6494_v18 }
 0x523   :  { %v7236_v42 = vpop.eup %7235  ;;  %v3471_v23 = vmul.f32 %v3423_v22, %v8613_v21  ;;  %3862 = vmatprep.mubr.f32.mxu0 %v9257_v37  ;;  %3975 = vmatprep.mubr.f32.mxu1 %v9257_v37  ;;  %7251 = vtanh.f32 %v6493_v39 }
 0x524   :  { %v3501_v24 = vmul.f32 %v7236_v42, %v3461_v47  ;;  %v7238_v10 = vpop.eup %7237 }
 0x525   :  { %v8783_v16 = vadd.f32 %v3479_v38, %v3471_v23  ;;  %v3455_v47 = vadd.f32 1.0, %v7238_v10 }
 0x526   :  { %3863 = vmatmul.mubr.f32.gmra.mrb[86].mxu0 %v3501_v24  ;;  %3976 = vmatmul.mubr.f32.gmra.mrb[86].mxu1 %v3501_v24 }
 0x527   :  { %v7240_v62 = vpop.eup %7239  ;;  %7253 = vtanh.f32 %v8783_v16  ;;  %3868 = vmatprep.mubr.f32.mxu0 %v9257_v37  ;;  %3981 = vmatprep.mubr.f32.mxu1 %v9257_v37  ;;  %v3463_v35 = vmul.f32 0.5, %v3455_v47 }
 0x528   :  { %v7242_v21 = vpop.eup %7241  ;;  %v3502_v49 = vmul.f32 %v7240_v62, %v3462_v11  ;;  %7255 = vtanh.f32 %v3440_v50 }
 0x529   :  { %v7244_v0 = vpop.eup %7243  ;;  %v3384_v19 = vadd.f32 1.0, %v7242_v21  ;;  %7257 = vtanh.f32 %v3441_v3 }
 0x52a   :  { %v3416_v63 = vadd.f32 1.0, %v7244_v0  ;;  %v7246_v31 = vpop.eup %7245  ;;  %3869 = vmatmul.mubr.f32.gmra.mrb[88].mxu0 %v3502_v49  ;;  %3982 = vmatmul.mubr.f32.gmra.mrb[88].mxu1 %v3502_v49 }
 0x52b   :  { %v3392_v51 = vmul.f32 0.5, %v3384_v19  ;;  %v7248_v61 = vpop.eup %7247  ;;  %v3385_v36 = vadd.f32 1.0, %v7246_v31  ;;  %3874 = vmatprep.mubr.f32.mxu0 %v9257_v37  ;;  %3987 = vmatprep.mubr.f32.mxu1 %v9257_v37 }
 0x52c   :  { %v3424_v56 = vmul.f32 0.5, %v3416_v63  ;;  %v7250_v60 = vpop.eup %7249 }
 0x52d   :  { %v3480_v22 = vmul.f32 %v7248_v61, %v3392_v51  ;;  %v3393_v2 = vmul.f32 0.5, %v3385_v36  ;;  %v3417_v20 = vadd.f32 1.0, %v7250_v60  ;;  %v7252_v38 = vpop.eup %7251  ;;  %v4199_v51 = vpop.permute.xlu0 %4198 }
 0x52e   :  { %v3472_v39 = vmul.f32 %v3424_v56, %v8622_v43  ;;  %v4201_v61 = vpop.permute.xlu1 %4200 }
 0x52f   :  { %v3425_v23 = vmul.f32 0.5, %v3417_v20  ;;  %v3481_v24 = vmul.f32 %v7252_v38, %v3393_v2  ;;  %v9338_v20 = vld [vmem:[#allocation13_spill] sm:$0xff]  ;;  %v9339_v38 = vld [vmem:[#allocation14_spill] sm:$0xff] }
 0x530   :  { %v8792_v42 = vadd.f32 %v3480_v22, %v3472_v39  ;;  %v9336_v22 = vld [vmem:[#allocation11_spill] sm:$0xff]  ;;  %v9337_v39 = vld [vmem:[#allocation12_spill] sm:$0xff] }
 0x531   :  { %v7254_v10 = vpop.eup %7253  ;;  %v3473_v11 = vmul.f32 %v3425_v23, %v8626_v1  ;;  %v4203_v47 = vpop.permute.xlu0 %4202  ;;  %v9340_v23 = vld [vmem:[#allocation15_spill] sm:$0xff] }
 0x532   :  { %7259 = vtanh.f32 %v8792_v42  ;;  %v3503_v50 = vmul.f32 %v7254_v10, %v3463_v35  ;;  %v7256_v18 = vpop.eup %7255  ;;  %v4205_v56 = vpop.permute.xlu1 %4204  ;;  %v9342_v10 = vld [vmem:[#allocation17_spill] sm:$0xff] }
 0x533   :  { %v8796_v62 = vadd.f32 %v3481_v24, %v3473_v11  ;;  %v3456_v43 = vadd.f32 1.0, %v7256_v18  ;;  %v7258_v21 = vpop.eup %7257  ;;  %v9341_v24 = vld [vmem:[#allocation16_spill] sm:$0xff]  ;;  %v9343_v11 = vld [vmem:[#allocation18_spill] sm:$0xff] }
 0x534   :  { %3875 = vmatmul.mubr.f32.gmra.mrb[90].mxu0 %v3503_v50  ;;  %3988 = vmatmul.mubr.f32.gmra.mrb[90].mxu1 %v3503_v50  ;;  %v3457_v0 = vadd.f32 1.0, %v7258_v21  ;;  %v9344_v50 = vld [vmem:[#allocation9_spill] sm:$0xff]  ;;  %v9345_v18 = vld [vmem:[#allocation10_spill] sm:$0xff]  ;;  %v9347_v21 = vld [vmem:[#allocation28_spill] sm:$0xff] }
 0x535   :  { %3880 = vmatprep.mubr.f32.mxu0 %v9257_v37  ;;  %3993 = vmatprep.mubr.f32.mxu1 %v9257_v37  ;;  %7261 = vtanh.f32 %v8796_v62  ;;  %v3464_v49 = vmul.f32 0.5, %v3456_v43  ;;  %v4207_v36 = vpop.permute.xlu0 %4206  ;;  %v9346_v43 = vld [vmem:[#allocation23_spill] sm:$0xff] }
 0x536   :  { %v3465_v3 = vmul.f32 0.5, %v3457_v0  ;;  %v4209_v60 = vpop.permute.xlu1 %4208  ;;  %4874 = vrot.lane.b32.xlu0 %v9346_v43, %s7567_s30  ;;  %4876 = vrot.lane.b32.xlu1 %v9347_v21, %s7567_s30  ;;  %v4861_v0 = vld [vmem:[%s9184_s0 + $0x18] sm:$0xff] }
 0x539   :  { %v4211_v2 = vpop.permute.xlu0 %4210 }
 0x53a   :  { %v4213_v35 = vpop.permute.xlu1 %4212  ;;  %4880 = vrot.lane.b32.xlu1 %v4861_v0, %s7567_s30 }
 0x53c   :  { %v7260_v19 = vpop.eup %7259 }
 0x53d   :  { %v3504_v63 = vmul.f32 %v7260_v19, %v3464_v49  ;;  %v4860_v49 = vld [vmem:[%s9184_s0 + $0x10] sm:$0xff]  ;;  %v4862_v19 = vld [vmem:[%s9184_s0 + $0x20] sm:$0xff] }
 0x53e   :  { %4878 = vrot.lane.b32.xlu0 %v4860_v49, %s7567_s30 }
 0x53f   :  { %3881 = vmatmul.mubr.f32.gmra.mrb[92].mxu0 %v3504_v63  ;;  %3994 = vmatmul.mubr.f32.gmra.mrb[92].mxu1 %v3504_v63  ;;  %v7262_v1 = vpop.eup %7261  ;;  %v4863_v63 = vld [vmem:[%s9184_s0 + $0x28] sm:$0xff] }
 0x540   :  { %3886 = vmatprep.mubr.f32.mxu0 %v9257_v37  ;;  %3999 = vmatprep.mubr.f32.mxu1 %v9257_v37  ;;  %v3505_v31 = vmul.f32 %v7262_v1, %v3465_v3  ;;  %v4864_v3 = vld [vmem:[%s9184_s0 + $0x30] sm:$0xff]  ;;  %v4865_v1 = vld [vmem:[%s9184_s0 + $0x38] sm:$0xff] }
 0x541   :  { %4884 = vrot.lane.b32.xlu1 %v4863_v63, %s7567_s30 }
 0x542   :  { %4882 = vrot.lane.b32.xlu0 %v4862_v19, %s7567_s30 }
 0x543   :  { %3887 = vmatmul.mubr.f32.gmra.mrb[94].mxu0 %v3505_v31  ;;  %4000 = vmatmul.mubr.f32.gmra.mrb[94].mxu1 %v3505_v31 }
 0x544   :  { %4294 = vmatprep.mubr.f32.mxu0 %v9257_v37  ;;  %4407 = vmatprep.mubr.f32.mxu1 %v9257_v37 }
 0x545   :  { %4888 = vrot.lane.b32.xlu1 %v4865_v1, %s7567_s30 }
 0x546   :  { %4886 = vrot.lane.b32.xlu0 %v4864_v3, %s7567_s30 }
 0x547   :  { %5745 = vmatmul.mubr.msk.f32.vlgmr.msra.gmra.mrb[96].mxu0 %vm140_vm1, %v4199_v51  ;;  %5755 = vmatmul.mubr.msk.f32.vlgmr.msra.gmra.mrb[96].mxu1 %vm140_vm1, %v4199_v51 }
 0x548   :  { %6198 = vmatpush1.bf16.msra.mxu0 %v7650_v14  ;;  %6230 = vmatpush1.bf16.msra.mxu1 %v7656_v17 }
 0x549   :  { %4300 = vmatprep.mubr.f32.mxu0 %v9257_v37  ;;  %4413 = vmatprep.mubr.f32.mxu1 %v9257_v37 }
 0x54a   :  { %6200 = vmatprep.subr.bf16.mxu0 %v7667_v25  ;;  %6232 = vmatprep.subr.bf16.mxu1 %v7669_v26 }
 0x54b   :  { %5746 = vmatmul.mubr.msk.f32.gmra.mrb[98].mxu0 %vm140_vm1, %v4201_v61  ;;  %5756 = vmatmul.mubr.msk.f32.gmra.mrb[98].mxu1 %vm140_vm1, %v4201_v61 }
 0x54c   :  { %6202 = vmatpush1.bf16.msra.mxu0 %v7673_v29  ;;  %6234 = vmatpush1.bf16.msra.mxu1 %v7675_v30 }
 0x54d   :  { %4306 = vmatprep.mubr.f32.mxu0 %v9257_v37  ;;  %4419 = vmatprep.mubr.f32.mxu1 %v9257_v37 }
 0x54e   :  { %6204 = vmatprep.subr.bf16.mxu0 %v7690_v40  ;;  %6236 = vmatprep.subr.bf16.mxu1 %v7692_v41 }
 0x54f   :  { %5747 = vmatmul.mubr.msk.f32.gmra.mrb[100].mxu0 %vm140_vm1, %v4203_v47  ;;  %5757 = vmatmul.mubr.msk.f32.gmra.mrb[100].mxu1 %vm140_vm1, %v4203_v47 }
 0x550   :  { %6206 = vmatpush1.bf16.msra.mxu0 %v7696_v44  ;;  %6238 = vmatpush1.bf16.msra.mxu1 %v7698_v45 }
 0x551   :  { %4312 = vmatprep.mubr.f32.mxu0 %v9257_v37  ;;  %4425 = vmatprep.mubr.f32.mxu1 %v9257_v37 }
 0x552   :  { %6208 = vmatprep.subr.bf16.mxu0 %v7713_v53  ;;  %6240 = vmatprep.subr.bf16.mxu1 %v7715_v54 }
 0x553   :  { %5748 = vmatmul.mubr.msk.f32.gmra.mrb[102].mxu0 %vm140_vm1, %v4205_v56  ;;  %5758 = vmatmul.mubr.msk.f32.gmra.mrb[102].mxu1 %vm140_vm1, %v4205_v56 }
 0x554   :  { %6210 = vmatpush1.bf16.msra.mxu0 %v7719_v57  ;;  %6242 = vmatpush1.bf16.msra.mxu1 %v7721_v58 }
 0x555   :  { %4318 = vmatprep.mubr.f32.mxu0 %v9257_v37  ;;  %4431 = vmatprep.mubr.f32.mxu1 %v9257_v37 }
 0x556   :  { %6212 = vmatprep.subr.bf16.mxu0 %v7736_v7  ;;  %6244 = vmatprep.subr.bf16.mxu1 %v7738_v8 }
 0x557   :  { %5749 = vmatmul.mubr.msk.f32.gmra.mrb[104].mxu0 %vm140_vm1, %v4207_v36  ;;  %5759 = vmatmul.mubr.msk.f32.gmra.mrb[104].mxu1 %vm140_vm1, %v4207_v36 }
 0x558   :  { %6214 = vmatpush1.bf16.msra.mxu0 %v7742_v12  ;;  %6246 = vmatpush1.bf16.msra.mxu1 %v7744_v15 }
 0x559   :  { %4324 = vmatprep.mubr.f32.mxu0 %v9257_v37  ;;  %4437 = vmatprep.mubr.f32.mxu1 %v9257_v37 }
 0x55a   :  { %6216 = vmatprep.subr.bf16.mxu0 %v7759_v27  ;;  %6248 = vmatprep.subr.bf16.mxu1 %v7761_v28 }
 0x55b   :  { %5750 = vmatmul.mubr.msk.f32.gmra.mrb[106].mxu0 %vm140_vm1, %v4209_v60  ;;  %5760 = vmatmul.mubr.msk.f32.gmra.mrb[106].mxu1 %vm140_vm1, %v4209_v60 }
 0x55c   :  { %6218 = vmatpush1.bf16.msra.mxu0 %v7765_v33  ;;  %6250 = vmatpush1.bf16.msra.mxu1 %v7767_v34 }
 0x55d   :  { %4330 = vmatprep.mubr.f32.mxu0 %v9257_v37  ;;  %4443 = vmatprep.mubr.f32.mxu1 %v9257_v37 }
 0x55e   :  { %6220 = vmatprep.subr.bf16.mxu0 %v9336_v22  ;;  %6252 = vmatprep.subr.bf16.mxu1 %v9337_v39 }
 0x55f   :  { %5751 = vmatmul.mubr.msk.f32.gmra.mrb[108].mxu0 %vm140_vm1, %v4211_v2  ;;  %5761 = vmatmul.mubr.msk.f32.gmra.mrb[108].mxu1 %vm140_vm1, %v4211_v2 }
 0x560   :  { %6222 = vmatpush1.bf16.msra.mxu0 %v9338_v20  ;;  %6254 = vmatpush1.bf16.msra.mxu1 %v9339_v38 }
 0x561   :  { %4336 = vmatprep.mubr.f32.mxu0 %v9257_v37  ;;  %4449 = vmatprep.mubr.f32.mxu1 %v9257_v37 }
 0x562   :  { %6224 = vmatprep.subr.bf16.mxu0 %v9340_v23  ;;  %6256 = vmatprep.subr.bf16.mxu1 %v9341_v24 }
 0x563   :  { %5752 = vmatmul.mubr.msk.f32.gmra.mrb[110].mxu0 %vm140_vm1, %v4213_v35  ;;  %5762 = vmatmul.mubr.msk.f32.gmra.mrb[110].mxu1 %vm140_vm1, %v4213_v35 }
 0x564   :  { %6226 = vmatpush1.bf16.msra.mxu0 %v9342_v10  ;;  %6258 = vmatpush1.bf16.msra.mxu1 %v9343_v11 }
 0x565   :  { %4520 = vmatprep.mubr.f32.mxu0 %v9257_v37  ;;  %4633 = vmatprep.mubr.f32.mxu1 %v9257_v37 }
 0x566   :  { %5763 = vmatprep.subr.msk.mxu0 %vm165_vm0, %v9344_v50  ;;  %5773 = vmatprep.subr.msk.mxu1 %vm165_vm0, %v9345_v18 }
 0x5eb   :  { %v3846_v31 = vpop.f32.mrb[80].mxu0  ;;  %v3959_v51 = vpop.f32.mrb[80].mxu1 }
 0x5ec   :  { %v6495_v61 = vadd.f32 %v3846_v31, %v7970_v59  ;;  %v3848_v47 = vpop.f32.mrb[81].mxu0  ;;  %v3961_v56 = vpop.f32.mrb[81].mxu1  ;;  %v6511_v35 = vadd.f32 %v3959_v51, %v7976_v46 }
 0x5ed   :  { %v6496_v36 = vadd.f32 %v3848_v47, %v7972_v52  ;;  %v6512_v50 = vadd.f32 %v3961_v56, %v7974_v6 }
 0x5ee   :  { %v4038_v60 = vmul.f32 0.5, %v6495_v61 }
 0x5ef   :  { %v4070_v2 = vmul.f32 0.5, %v6496_v36  ;;  %v4110_v3 = vmul.f32 0.5, %v6512_v50 }
 0x5f0   :  { %7263 = vtanh.f32 %v4038_v60  ;;  %v3852_v18 = vpop.f32.mrb[82].mxu0  ;;  %v3965_v43 = vpop.f32.mrb[82].mxu1 }
 0x5f1   :  { %7265 = vtanh.f32 %v4070_v2  ;;  %v6497_v21 = vadd.f32 %v3852_v18, %v7970_v59  ;;  %v3854_v49 = vpop.f32.mrb[83].mxu0  ;;  %v3967_v0 = vpop.f32.mrb[83].mxu1  ;;  %v6513_v31 = vadd.f32 %v3965_v43, %v7976_v46 }
 0x5f2   :  { %v6498_v19 = vadd.f32 %v3854_v49, %v7972_v52  ;;  %7267 = vtanh.f32 %v6511_v35  ;;  %v6514_v2 = vadd.f32 %v3967_v0, %v7974_v6 }
 0x5f3   :  { %v4039_v63 = vmul.f32 0.5, %v6497_v21 }
 0x5f4   :  { %v4071_v1 = vmul.f32 0.5, %v6498_v19 }
 0x5f5   :  { %7269 = vtanh.f32 %v4039_v63  ;;  %v3858_v61 = vpop.f32.mrb[84].mxu0  ;;  %v3971_v51 = vpop.f32.mrb[84].mxu1 }
 0x5f6   :  { %7271 = vtanh.f32 %v4071_v1  ;;  %v6499_v47 = vadd.f32 %v3858_v61, %v7970_v59  ;;  %v3860_v56 = vpop.f32.mrb[85].mxu0  ;;  %v3973_v36 = vpop.f32.mrb[85].mxu1  ;;  %v6515_v35 = vadd.f32 %v3971_v51, %v7976_v46 }
 0x5f7   :  { %v6500_v60 = vadd.f32 %v3860_v56, %v7972_v52  ;;  %7273 = vtanh.f32 %v4110_v3  ;;  %v6516_v3 = vadd.f32 %v3973_v36, %v7974_v6 }
 0x5f8   :  { %v4040_v18 = vmul.f32 0.5, %v6499_v47  ;;  %7275 = vtanh.f32 %v6513_v31  ;;  %v4111_v31 = vmul.f32 0.5, %v6514_v2 }
 0x5f9   :  { %v4072_v50 = vmul.f32 0.5, %v6500_v60  ;;  %v3864_v21 = vpop.f32.mrb[86].mxu0  ;;  %v3977_v49 = vpop.f32.mrb[86].mxu1 }
 0x5fa   :  { %v7264_v43 = vpop.eup %7263  ;;  %7277 = vtanh.f32 %v4040_v18  ;;  %v6501_v19 = vadd.f32 %v3864_v21, %v7970_v59  ;;  %v3866_v63 = vpop.f32.mrb[87].mxu0  ;;  %v6517_v60 = vadd.f32 %v3977_v49, %v7976_v46 }
 0x5fb   :  { %v3979_v1 = vpop.f32.mrb[87].mxu1  ;;  %v7266_v61 = vpop.eup %7265  ;;  %v4054_v11 = vadd.f32 1.0, %v7264_v43  ;;  %7279 = vtanh.f32 %v4072_v50  ;;  %v6502_v0 = vadd.f32 %v3866_v63, %v7972_v52  ;;  %v4112_v63 = vmul.f32 0.5, %v6516_v3 }
 0x5fc   :  { %v4086_v47 = vadd.f32 1.0, %v7266_v61  ;;  %v4041_v56 = vmul.f32 0.5, %v6501_v19  ;;  %7281 = vtanh.f32 %v6515_v35  ;;  %v7268_v21 = vpop.eup %7267  ;;  %v6518_v61 = vadd.f32 %v3979_v1, %v7974_v6 }
 0x5fd   :  { %v4062_v51 = vmul.f32 0.5, %v4054_v11  ;;  %v4073_v10 = vmul.f32 0.5, %v6502_v0  ;;  %v3870_v18 = vpop.f32.mrb[88].mxu0  ;;  %v3983_v24 = vpop.f32.mrb[88].mxu1 }
 0x5fe   :  { %v4094_v23 = vmul.f32 0.5, %v4086_v47  ;;  %7283 = vtanh.f32 %v4041_v56  ;;  %v6503_v43 = vadd.f32 %v3870_v18, %v7970_v59  ;;  %v3872_v50 = vpop.f32.mrb[89].mxu0  ;;  %v3985_v38 = vpop.f32.mrb[89].mxu1  ;;  %v6519_v3 = vadd.f32 %v3983_v24, %v7976_v46 }
 0x5ff   :  { %v7270_v36 = vpop.eup %7269  ;;  %v4150_v20 = vmul.f32 %v7268_v21, %v4062_v51  ;;  %7285 = vtanh.f32 %v4073_v10  ;;  %v6504_v0 = vadd.f32 %v3872_v50, %v7972_v52  ;;  %v4113_v50 = vmul.f32 0.5, %v6518_v61 }
 0x600   :  { %v7272_v2 = vpop.eup %7271  ;;  %v4142_v11 = vmul.f32 %v4094_v23, %v8739_v48  ;;  %v4055_v35 = vadd.f32 1.0, %v7270_v36  ;;  %7287 = vtanh.f32 %v4111_v31  ;;  %v4042_v49 = vmul.f32 0.5, %v6503_v43 }
 0x601   :  { %v4087_v19 = vadd.f32 1.0, %v7272_v2  ;;  %7289 = vtanh.f32 %v6517_v60  ;;  %v7274_v47 = vpop.eup %7273  ;;  %v4074_v48 = vmul.f32 0.5, %v6504_v0 }
 0x602   :  { %v8910_v56 = vadd.f32 %v4150_v20, %v4142_v11  ;;  %v4063_v18 = vmul.f32 0.5, %v4055_v35  ;;  %7291 = vtanh.f32 %v4042_v49  ;;  %v7276_v10 = vpop.eup %7275  ;;  %v4126_v43 = vadd.f32 1.0, %v7274_v47 }
 0x603   :  { %v4095_v51 = vmul.f32 0.5, %v4087_v19  ;;  %7293 = vtanh.f32 %v4112_v63  ;;  %v6520_v35 = vadd.f32 %v3985_v38, %v7974_v6 }
 0x604   :  { %9348 = vst [vmem:[#allocation19_spill] sm:$0xff] %v8910_v56  ;;  %v7278_v23 = vpop.eup %7277  ;;  %7295 = vtanh.f32 %v8910_v56  ;;  %v4151_v31 = vmul.f32 %v7276_v10, %v4063_v18 }
 0x605   :  { %v7280_v60 = vpop.eup %7279  ;;  %v4143_v1 = vmul.f32 %v4095_v51, %v8744_v4  ;;  %v4056_v21 = vadd.f32 1.0, %v7278_v23  ;;  %7297 = vtanh.f32 %v4074_v48 }
 0x606   :  { %v4088_v20 = vadd.f32 1.0, %v7280_v60  ;;  %7299 = vtanh.f32 %v6519_v3  ;;  %v7282_v24 = vpop.eup %7281  ;;  %v4134_v60 = vmul.f32 0.5, %v4126_v43 }
 0x607   :  { %v3876_v36 = vpop.f32.mrb[90].mxu0  ;;  %v3989_v2 = vpop.f32.mrb[90].mxu1  ;;  %v8915_v11 = vadd.f32 %v4151_v31, %v4143_v1  ;;  %v4064_v63 = vmul.f32 0.5, %v4056_v21  ;;  %v4114_v21 = vmul.f32 0.5, %v6520_v35 }
 0x608   :  { %v6505_v49 = vadd.f32 %v3876_v36, %v7970_v59  ;;  %v3878_v19 = vpop.f32.mrb[91].mxu0  ;;  %v3991_v0 = vpop.f32.mrb[91].mxu1  ;;  %v4096_v4 = vmul.f32 0.5, %v4088_v20 }
 0x609   :  { %9349 = vst [vmem:[#allocation20_spill] sm:$0xff] %v8915_v11  ;;  %v7284_v18 = vpop.eup %7283  ;;  %v6506_v10 = vadd.f32 %v3878_v19, %v7972_v52  ;;  %7301 = vtanh.f32 %v8915_v11  ;;  %v4152_v61 = vmul.f32 %v7282_v24, %v4064_v63  ;;  %v6521_v11 = vadd.f32 %v3989_v2, %v7976_v46 }
 0x60a   :  { %v7286_v47 = vpop.eup %7285  ;;  %v4057_v3 = vadd.f32 1.0, %v7284_v18  ;;  %v4144_v48 = vmul.f32 %v4096_v4, %v8750_v32  ;;  %7303 = vtanh.f32 %v4113_v50  ;;  %v4043_v31 = vmul.f32 0.5, %v6505_v49 }
 0x60b   :  { %v7288_v51 = vpop.eup %7287  ;;  %v4089_v23 = vadd.f32 1.0, %v7286_v47  ;;  %v4075_v36 = vmul.f32 0.5, %v6506_v10  ;;  %v6522_v32 = vadd.f32 %v3991_v0, %v7974_v6 }
 0x60c   :  { %v7290_v38 = vpop.eup %7289  ;;  %v4065_v1 = vmul.f32 0.5, %v4057_v3  ;;  %v8922_v20 = vadd.f32 %v4152_v61, %v4144_v48  ;;  %7305 = vtanh.f32 %v4043_v31  ;;  %v4127_v49 = vadd.f32 1.0, %v7288_v51 }
 0x60d   :  { %v7292_v56 = vpop.eup %7291  ;;  %v4097_v19 = vmul.f32 0.5, %v4089_v23  ;;  %7307 = vtanh.f32 %v4075_v36 }
 0x60e   :  { %v7294_v24 = vpop.eup %7293  ;;  %v4153_v63 = vmul.f32 %v7290_v38, %v4065_v1  ;;  %v4058_v18 = vadd.f32 1.0, %v7292_v56  ;;  %7309 = vtanh.f32 %v8922_v20  ;;  %v4115_v56 = vmul.f32 0.5, %v6522_v32  ;;  %v7507_v1 = vld [vmem:[%s9185_s1] sm:$0xff] }
 0x60f   :  { %v7296_v50 = vpop.eup %7295  ;;  %v4145_v43 = vmul.f32 %v4097_v19, %v8756_v55  ;;  %7311 = vtanh.f32 %v4114_v21  ;;  %v4135_v0 = vmul.f32 0.5, %v4127_v49  ;;  %v7508_v21 = vld [vmem:[%s9185_s1 + $0x8] sm:$0xff]  ;;  %v4128_v19 = vadd.f32 1.0, %v7294_v24 }
 0x610   :  { %v7298_v35 = vpop.eup %7297  ;;  %v4174_v4 = vmul.f32 %v7296_v50, %v4134_v60  ;;  %v4066_v10 = vmul.f32 0.5, %v4058_v18  ;;  %7313 = vtanh.f32 %v6521_v11 }
 0x611   :  { %v7300_v47 = vpop.eup %7299  ;;  %v8928_v61 = vadd.f32 %v4153_v63, %v4145_v43  ;;  %v4090_v2 = vadd.f32 1.0, %v7298_v35 }
 0x612   :  { %v4154_v3 = vmul.f32 %v7300_v47, %v4066_v10  ;;  %v3882_v48 = vpop.f32.mrb[92].mxu0  ;;  %v3995_v23 = vpop.f32.mrb[92].mxu1  ;;  %4521 = vmatmul.mubr.f32.vlgmr.msra.gmra.mrb[96].mxu0 %v4174_v4  ;;  %4634 = vmatmul.mubr.f32.vlgmr.msra.gmra.mrb[96].mxu1 %v4174_v4 }
 0x613   :  { %7315 = vtanh.f32 %v8928_v61  ;;  %v4098_v51 = vmul.f32 0.5, %v4090_v2  ;;  %v6507_v55 = vadd.f32 %v3882_v48, %v7970_v59  ;;  %v3884_v31 = vpop.f32.mrb[93].mxu0  ;;  %v3997_v38 = vpop.f32.mrb[93].mxu1  ;;  %4526 = vmatprep.mubr.f32.mxu0 %v9257_v37  ;;  %4639 = vmatprep.mubr.f32.mxu1 %v9257_v37  ;;  %v6523_v50 = vadd.f32 %v3995_v23, %v7976_v46 }
 0x614   :  { %v7302_v60 = vpop.eup %7301  ;;  %v6508_v11 = vadd.f32 %v3884_v31, %v7972_v52  ;;  %5764 = vmatpush1.msk.msra.mxu0 %vm165_vm0, %v7507_v1  ;;  %5774 = vmatpush1.msk.msra.mxu1 %vm165_vm0, %v7508_v21  ;;  %7317 = vtanh.f32 %v4115_v56  ;;  %v6524_v31 = vadd.f32 %v3997_v38, %v7974_v6 }
 0x615   :  { %v7304_v36 = vpop.eup %7303  ;;  %v4146_v63 = vmul.f32 %v4098_v51, %v8764_v5  ;;  %v4044_v18 = vmul.f32 0.5, %v6507_v55  ;;  %v4175_v32 = vmul.f32 %v7302_v60, %v4135_v0  ;;  %6260 = vmatprep.subr.bf16.mxu0 %v7642_v9  ;;  %6292 = vmatprep.subr.bf16.mxu1 %v7648_v13 }
 0x616   :  { %v4076_v49 = vmul.f32 0.5, %v6508_v11  ;;  %v3888_v43 = vpop.f32.mrb[94].mxu0  ;;  %v4001_v35 = vpop.f32.mrb[94].mxu1  ;;  %v4129_v9 = vadd.f32 1.0, %v7304_v36 }
 0x617   :  { %v7306_v4 = vpop.eup %7305  ;;  %v8947_v10 = vadd.f32 %v4154_v3, %v4146_v63  ;;  %7319 = vtanh.f32 %v4044_v18  ;;  %v6509_v24 = vadd.f32 %v3888_v43, %v7970_v59  ;;  %v3890_v47 = vpop.f32.mrb[95].mxu0  ;;  %4527 = vmatmul.mubr.f32.gmra.mrb[98].mxu0 %v4175_v32  ;;  %4640 = vmatmul.mubr.f32.gmra.mrb[98].mxu1 %v4175_v32  ;;  %v4136_v3 = vmul.f32 0.5, %v4128_v19 }
 0x618   :  { %v4003_v5 = vpop.f32.mrb[95].mxu1  ;;  %v7308_v2 = vpop.eup %7307  ;;  %v4059_v48 = vadd.f32 1.0, %v7306_v4  ;;  %7321 = vtanh.f32 %v4076_v49  ;;  %v6510_v13 = vadd.f32 %v3890_v47, %v7972_v52  ;;  %4532 = vmatprep.mubr.f32.mxu0 %v9257_v37  ;;  %4645 = vmatprep.mubr.f32.mxu1 %v9257_v37  ;;  %v6525_v21 = vadd.f32 %v4001_v35, %v7976_v46 }
 0x619   :  { %v7310_v56 = vpop.eup %7309  ;;  %7323 = vtanh.f32 %v8947_v10  ;;  %v4091_v23 = vadd.f32 1.0, %v7308_v2  ;;  %v4045_v0 = vmul.f32 0.5, %v6509_v24  ;;  %v4137_v63 = vmul.f32 0.5, %v4129_v9 }
 0x61a   :  { %v7312_v51 = vpop.eup %7311  ;;  %v4067_v55 = vmul.f32 0.5, %v4059_v48  ;;  %7325 = vtanh.f32 %v6523_v50  ;;  %v4077_v60 = vmul.f32 0.5, %v6510_v13  ;;  %v4176_v36 = vmul.f32 %v7310_v56, %v4136_v3 }
 0x61b   :  { %v7314_v11 = vpop.eup %7313  ;;  %v4099_v1 = vmul.f32 0.5, %v4091_v23  ;;  %7327 = vtanh.f32 %v4045_v0  ;;  %v4130_v49 = vadd.f32 1.0, %v7312_v51  ;;  %v4116_v43 = vmul.f32 0.5, %v6524_v31 }
 0x61c   :  { %v4155_v18 = vmul.f32 %v7314_v11, %v4067_v55  ;;  %7329 = vtanh.f32 %v4077_v60  ;;  %4533 = vmatmul.mubr.f32.gmra.mrb[100].mxu0 %v4176_v36  ;;  %4646 = vmatmul.mubr.f32.gmra.mrb[100].mxu1 %v4176_v36  ;;  %v6526_v4 = vadd.f32 %v4003_v5, %v7974_v6 }
 0x61d   :  { %v7316_v32 = vpop.eup %7315  ;;  %v4147_v19 = vmul.f32 %v4099_v1, %v8783_v16  ;;  %4538 = vmatprep.mubr.f32.mxu0 %v9257_v37  ;;  %4651 = vmatprep.mubr.f32.mxu1 %v9257_v37  ;;  %7331 = vtanh.f32 %v6525_v21  ;;  %v4138_v47 = vmul.f32 0.5, %v4130_v49 }
 0x61e   :  { %v4177_v38 = vmul.f32 %v7316_v32, %v4137_v63  ;;  %v7318_v35 = vpop.eup %7317  ;;  %v4117_v3 = vmul.f32 0.5, %v6526_v4 }
 0x61f   :  { %v8959_v50 = vadd.f32 %v4155_v18, %v4147_v19  ;;  %v4131_v51 = vadd.f32 1.0, %v7318_v35 }
 0x620   :  { %4539 = vmatmul.mubr.f32.gmra.mrb[102].mxu0 %v4177_v38  ;;  %4652 = vmatmul.mubr.f32.gmra.mrb[102].mxu1 %v4177_v38 }
 0x621   :  { %v7320_v24 = vpop.eup %7319  ;;  %7333 = vtanh.f32 %v8959_v50  ;;  %4544 = vmatprep.mubr.f32.mxu0 %v9257_v37  ;;  %4657 = vmatprep.mubr.f32.mxu1 %v9257_v37  ;;  %v4139_v18 = vmul.f32 0.5, %v4131_v51 }
 0x622   :  { %v7322_v16 = vpop.eup %7321  ;;  %v4060_v2 = vadd.f32 1.0, %v7320_v24  ;;  %7335 = vtanh.f32 %v4116_v43 }
 0x623   :  { %v7324_v9 = vpop.eup %7323  ;;  %v4092_v48 = vadd.f32 1.0, %v7322_v16  ;;  %7337 = vtanh.f32 %v4117_v3  ;;  %v4877_v3 = vpop.permute.xlu1 %4876 }
 0x624   :  { %v7326_v13 = vpop.eup %7325  ;;  %v4068_v56 = vmul.f32 0.5, %v4060_v2  ;;  %v4178_v23 = vmul.f32 %v7324_v9, %v4138_v47 }
 0x625   :  { %v7328_v5 = vpop.eup %7327  ;;  %v4100_v0 = vmul.f32 0.5, %v4092_v48 }
 0x626   :  { %v4156_v55 = vmul.f32 %v7326_v13, %v4068_v56  ;;  %v4061_v31 = vadd.f32 1.0, %v7328_v5  ;;  %4545 = vmatmul.mubr.f32.gmra.mrb[104].mxu0 %v4178_v23  ;;  %4658 = vmatmul.mubr.f32.gmra.mrb[104].mxu1 %v4178_v23  ;;  %v7330_v60 = vpop.eup %7329  ;;  %v4875_v56 = vpop.permute.xlu0 %4874 }
 0x627   :  { %v4148_v11 = vmul.f32 %v4100_v0, %v8792_v42  ;;  %4550 = vmatprep.mubr.f32.mxu0 %v9257_v37  ;;  %4663 = vmatprep.mubr.f32.mxu1 %v9257_v37  ;;  %v4093_v21 = vadd.f32 1.0, %v7330_v60  ;;  %v7332_v36 = vpop.eup %7331 }
 0x628   :  { %v4069_v1 = vmul.f32 0.5, %v4061_v31 }
 0x629   :  { %v8968_v63 = vadd.f32 %v4156_v55, %v4148_v11  ;;  %v4101_v32 = vmul.f32 0.5, %v4093_v21 }
 0x62a   :  { %v4157_v19 = vmul.f32 %v7332_v36, %v4069_v1 }
 0x62b   :  { %v7334_v49 = vpop.eup %7333  ;;  %7339 = vtanh.f32 %v8968_v63  ;;  %v4149_v38 = vmul.f32 %v4101_v32, %v8796_v62 }
 0x62c   :  { %v4179_v43 = vmul.f32 %v7334_v49, %v4139_v18  ;;  %v7336_v42 = vpop.eup %7335 }
 0x62d   :  { %v8972_v35 = vadd.f32 %v4157_v19, %v4149_v38  ;;  %v4132_v4 = vadd.f32 1.0, %v7336_v42  ;;  %v7338_v24 = vpop.eup %7337 }
 0x62e   :  { %4551 = vmatmul.mubr.f32.gmra.mrb[106].mxu0 %v4179_v43  ;;  %4664 = vmatmul.mubr.f32.gmra.mrb[106].mxu1 %v4179_v43  ;;  %v4133_v2 = vadd.f32 1.0, %v7338_v24 }
 0x62f   :  { %4556 = vmatprep.mubr.f32.mxu0 %v9257_v37  ;;  %4669 = vmatprep.mubr.f32.mxu1 %v9257_v37  ;;  %7341 = vtanh.f32 %v8972_v35  ;;  %v4140_v16 = vmul.f32 0.5, %v4132_v4 }
 0x630   :  { %v4141_v62 = vmul.f32 0.5, %v4133_v2 }
 0x635   :  { %v7340_v47 = vpop.eup %7339 }
 0x636   :  { %v4180_v9 = vmul.f32 %v7340_v47, %v4140_v16 }
 0x638   :  { %4557 = vmatmul.mubr.f32.gmra.mrb[108].mxu0 %v4180_v9  ;;  %4670 = vmatmul.mubr.f32.gmra.mrb[108].mxu1 %v4180_v9 }
 0x639   :  { %4562 = vmatprep.mubr.f32.mxu0 %v9257_v37  ;;  %4675 = vmatprep.mubr.f32.mxu1 %v9257_v37  ;;  %v7342_v48 = vpop.eup %7341 }
 0x63a   :  { %v4181_v13 = vmul.f32 %v7342_v48, %v4141_v62 }
 0x63c   :  { %4563 = vmatmul.mubr.f32.gmra.mrb[110].mxu0 %v4181_v13  ;;  %4676 = vmatmul.mubr.f32.gmra.mrb[110].mxu1 %v4181_v13 }
 0x63d   :  { %4970 = vmatprep.mubr.f32.mxu0 %v9257_v37  ;;  %5083 = vmatprep.mubr.f32.mxu1 %v9257_v37 }
 0x640   :  { %5765 = vmatmul.mubr.msk.f32.vlgmr.msra.gmra.mrb[112].mxu0 %vm140_vm1, %v4875_v56  ;;  %5775 = vmatmul.mubr.msk.f32.vlgmr.msra.gmra.mrb[112].mxu1 %vm140_vm1, %v4875_v56 }
 0x641   :  { %6262 = vmatpush1.bf16.msra.mxu0 %v7650_v14  ;;  %6294 = vmatpush1.bf16.msra.mxu1 %v7656_v17  ;;  %v4879_v14 = vpop.permute.xlu0 %4878  ;;  %v4881_v17 = vpop.permute.xlu1 %4880 }
 0x642   :  { %4976 = vmatprep.mubr.f32.mxu0 %v9257_v37  ;;  %5089 = vmatprep.mubr.f32.mxu1 %v9257_v37 }
 0x643   :  { %6264 = vmatprep.subr.bf16.mxu0 %v7667_v25  ;;  %6296 = vmatprep.subr.bf16.mxu1 %v7669_v26 }
 0x644   :  { %5766 = vmatmul.mubr.msk.f32.gmra.mrb[114].mxu0 %vm140_vm1, %v4877_v3  ;;  %5776 = vmatmul.mubr.msk.f32.gmra.mrb[114].mxu1 %vm140_vm1, %v4877_v3 }
 0x645   :  { %6266 = vmatpush1.bf16.msra.mxu0 %v7673_v29  ;;  %6298 = vmatpush1.bf16.msra.mxu1 %v7675_v30  ;;  %v4883_v25 = vpop.permute.xlu0 %4882  ;;  %v4885_v26 = vpop.permute.xlu1 %4884  ;;  %v9350_v30 = vld [vmem:[#allocation13_spill] sm:$0xff] }
 0x646   :  { %4982 = vmatprep.mubr.f32.mxu0 %v9257_v37  ;;  %5095 = vmatprep.mubr.f32.mxu1 %v9257_v37 }
 0x647   :  { %6268 = vmatprep.subr.bf16.mxu0 %v7690_v40  ;;  %6300 = vmatprep.subr.bf16.mxu1 %v7692_v41  ;;  %v9351_v40 = vld [vmem:[#allocation14_spill] sm:$0xff] }
 0x648   :  { %5767 = vmatmul.mubr.msk.f32.gmra.mrb[116].mxu0 %vm140_vm1, %v4879_v14  ;;  %5777 = vmatmul.mubr.msk.f32.gmra.mrb[116].mxu1 %vm140_vm1, %v4879_v14 }
 0x649   :  { %6270 = vmatpush1.bf16.msra.mxu0 %v7696_v44  ;;  %6302 = vmatpush1.bf16.msra.mxu1 %v7698_v45  ;;  %v4887_v29 = vpop.permute.xlu0 %4886  ;;  %v4889_v41 = vpop.permute.xlu1 %4888  ;;  %v9352_v44 = vld [vmem:[#allocation15_spill] sm:$0xff]  ;;  %v9353_v45 = vld [vmem:[#allocation16_spill] sm:$0xff] }
 0x64a   :  { %4988 = vmatprep.mubr.f32.mxu0 %v9257_v37  ;;  %5101 = vmatprep.mubr.f32.mxu1 %v9257_v37 }
 0x64b   :  { %6272 = vmatprep.subr.bf16.mxu0 %v7713_v53  ;;  %6304 = vmatprep.subr.bf16.mxu1 %v7715_v54  ;;  %v9354_v53 = vld [vmem:[#allocation17_spill] sm:$0xff]  ;;  %v9355_v54 = vld [vmem:[#allocation18_spill] sm:$0xff] }
 0x64c   :  { %5768 = vmatmul.mubr.msk.f32.gmra.mrb[118].mxu0 %vm140_vm1, %v4881_v17  ;;  %5778 = vmatmul.mubr.msk.f32.gmra.mrb[118].mxu1 %vm140_vm1, %v4881_v17 }
 0x64d   :  { %6274 = vmatpush1.bf16.msra.mxu0 %v7719_v57  ;;  %6306 = vmatpush1.bf16.msra.mxu1 %v7721_v58 }
 0x64e   :  { %4994 = vmatprep.mubr.f32.mxu0 %v9257_v37  ;;  %5107 = vmatprep.mubr.f32.mxu1 %v9257_v37 }
 0x64f   :  { %6276 = vmatprep.subr.bf16.mxu0 %v7736_v7  ;;  %6308 = vmatprep.subr.bf16.mxu1 %v7738_v8 }
 0x650   :  { %5769 = vmatmul.mubr.msk.f32.gmra.mrb[120].mxu0 %vm140_vm1, %v4883_v25  ;;  %5779 = vmatmul.mubr.msk.f32.gmra.mrb[120].mxu1 %vm140_vm1, %v4883_v25 }
 0x651   :  { %6278 = vmatpush1.bf16.msra.mxu0 %v7742_v12  ;;  %6310 = vmatpush1.bf16.msra.mxu1 %v7744_v15 }
 0x652   :  { %5000 = vmatprep.mubr.f32.mxu0 %v9257_v37  ;;  %5113 = vmatprep.mubr.f32.mxu1 %v9257_v37 }
 0x653   :  { %6280 = vmatprep.subr.bf16.mxu0 %v7759_v27  ;;  %6312 = vmatprep.subr.bf16.mxu1 %v7761_v28 }
 0x654   :  { %5770 = vmatmul.mubr.msk.f32.gmra.mrb[122].mxu0 %vm140_vm1, %v4885_v26  ;;  %5780 = vmatmul.mubr.msk.f32.gmra.mrb[122].mxu1 %vm140_vm1, %v4885_v26 }
 0x655   :  { %6282 = vmatpush1.bf16.msra.mxu0 %v7765_v33  ;;  %6314 = vmatpush1.bf16.msra.mxu1 %v7767_v34 }
 0x656   :  { %5006 = vmatprep.mubr.f32.mxu0 %v9257_v37  ;;  %5119 = vmatprep.mubr.f32.mxu1 %v9257_v37 }
 0x657   :  { %6284 = vmatprep.subr.bf16.mxu0 %v9336_v22  ;;  %6316 = vmatprep.subr.bf16.mxu1 %v9337_v39 }
 0x658   :  { %5771 = vmatmul.mubr.msk.f32.gmra.mrb[124].mxu0 %vm140_vm1, %v4887_v29  ;;  %5781 = vmatmul.mubr.msk.f32.gmra.mrb[124].mxu1 %vm140_vm1, %v4887_v29 }
 0x659   :  { %6286 = vmatpush1.bf16.msra.mxu0 %v9350_v30  ;;  %6318 = vmatpush1.bf16.msra.mxu1 %v9351_v40 }
 0x65a   :  { %5012 = vmatprep.mubr.f32.mxu0 %v9257_v37  ;;  %5125 = vmatprep.mubr.f32.mxu1 %v9257_v37 }
 0x65b   :  { %6288 = vmatprep.subr.bf16.mxu0 %v9352_v44  ;;  %6320 = vmatprep.subr.bf16.mxu1 %v9353_v45 }
 0x65c   :  { %5772 = vmatmul.mubr.msk.f32.gmra.mrb[126].mxu0 %vm140_vm1, %v4889_v41  ;;  %5782 = vmatmul.mubr.msk.f32.gmra.mrb[126].mxu1 %vm140_vm1, %v4889_v41 }
 0x65d   :  { %6290 = vmatpush1.bf16.msra.mxu0 %v9354_v53  ;;  %6322 = vmatpush1.bf16.msra.mxu1 %v9355_v54 }
 0x65e   :  { %5196 = vmatprep.mubr.f32.mxu0 %v9257_v37  ;;  %5309 = vmatprep.mubr.f32.mxu1 %v9257_v37 }
 0x6e5   :  { %v4522_v57 = vpop.f32.mrb[96].mxu0  ;;  %v4635_v58 = vpop.f32.mrb[96].mxu1 }
 0x6e6   :  { %v6527_v7 = vadd.f32 %v4522_v57, %v7970_v59  ;;  %v4524_v8 = vpop.f32.mrb[97].mxu0  ;;  %v4637_v12 = vpop.f32.mrb[97].mxu1  ;;  %v6543_v33 = vadd.f32 %v4635_v58, %v7976_v46  ;;  %v9356_v57 = vld [vmem:[#allocation19_spill] sm:$0xff] }
 0x6e7   :  { %v6528_v15 = vadd.f32 %v4524_v8, %v7972_v52  ;;  %v6544_v0 = vadd.f32 %v4637_v12, %v7974_v6 }
 0x6e8   :  { %v4714_v27 = vmul.f32 0.5, %v6527_v7 }
 0x6e9   :  { %v4746_v28 = vmul.f32 0.5, %v6528_v15  ;;  %v4786_v11 = vmul.f32 0.5, %v6544_v0 }
 0x6ea   :  { %7343 = vtanh.f32 %v4714_v27  ;;  %v4528_v34 = vpop.f32.mrb[98].mxu0  ;;  %v4641_v22 = vpop.f32.mrb[98].mxu1 }
 0x6eb   :  { %7345 = vtanh.f32 %v4746_v28  ;;  %v6529_v39 = vadd.f32 %v4528_v34, %v7970_v59  ;;  %v4530_v23 = vpop.f32.mrb[99].mxu0  ;;  %v4643_v5 = vpop.f32.mrb[99].mxu1  ;;  %v6545_v60 = vadd.f32 %v4641_v22, %v7976_v46 }
 0x6ec   :  { %v6530_v51 = vadd.f32 %v4530_v23, %v7972_v52  ;;  %7347 = vtanh.f32 %v6543_v33  ;;  %v6546_v49 = vadd.f32 %v4643_v5, %v7974_v6 }
 0x6ed   :  { %v4715_v55 = vmul.f32 0.5, %v6529_v39 }
 0x6ee   :  { %v4747_v31 = vmul.f32 0.5, %v6530_v51  ;;  %v4787_v14 = vmul.f32 0.5, %v6546_v49 }
 0x6ef   :  { %7349 = vtanh.f32 %v4715_v55  ;;  %v4534_v1 = vpop.f32.mrb[100].mxu0  ;;  %v4647_v21 = vpop.f32.mrb[100].mxu1 }
 0x6f0   :  { %7351 = vtanh.f32 %v4747_v31  ;;  %v6531_v36 = vadd.f32 %v4534_v1, %v7970_v59  ;;  %v4536_v18 = vpop.f32.mrb[101].mxu0  ;;  %v4649_v32 = vpop.f32.mrb[101].mxu1  ;;  %v6547_v42 = vadd.f32 %v4647_v21, %v7976_v46  ;;  %v9357_v1 = vld [vmem:[#allocation20_spill] sm:$0xff] }
 0x6f1   :  { %v6532_v19 = vadd.f32 %v4536_v18, %v7972_v52  ;;  %7353 = vtanh.f32 %v6545_v60  ;;  %v6548_v29 = vadd.f32 %v4649_v32, %v7974_v6 }
 0x6f2   :  { %v4716_v38 = vmul.f32 0.5, %v6531_v36  ;;  %7355 = vtanh.f32 %v4786_v11 }
 0x6f3   :  { %v4748_v4 = vmul.f32 0.5, %v6532_v19  ;;  %v4540_v24 = vpop.f32.mrb[102].mxu0  ;;  %v4653_v16 = vpop.f32.mrb[102].mxu1  ;;  %v4788_v22 = vmul.f32 0.5, %v6548_v29 }
 0x6f4   :  { %v7344_v43 = vpop.eup %7343  ;;  %7357 = vtanh.f32 %v4716_v38  ;;  %v6533_v9 = vadd.f32 %v4540_v24, %v7970_v59  ;;  %v4542_v62 = vpop.f32.mrb[103].mxu0  ;;  %v6549_v44 = vadd.f32 %v4653_v16, %v7976_v46 }
 0x6f5   :  { %v7346_v47 = vpop.eup %7345  ;;  %v4730_v2 = vadd.f32 1.0, %v7344_v43  ;;  %v4655_v48 = vpop.f32.mrb[103].mxu1  ;;  %7359 = vtanh.f32 %v4748_v4  ;;  %v6534_v56 = vadd.f32 %v4542_v62, %v7972_v52 }
 0x6f6   :  { %v4762_v13 = vadd.f32 1.0, %v7346_v47  ;;  %v4717_v17 = vmul.f32 0.5, %v6533_v9  ;;  %v7348_v25 = vpop.eup %7347  ;;  %7361 = vtanh.f32 %v6547_v42  ;;  %v6550_v0 = vadd.f32 %v4655_v48, %v7974_v6 }
 0x6f7   :  { %v4738_v3 = vmul.f32 0.5, %v4730_v2  ;;  %v4749_v30 = vmul.f32 0.5, %v6534_v56 }
 0x6f8   :  { %v4770_v26 = vmul.f32 0.5, %v4762_v13  ;;  %7363 = vtanh.f32 %v4717_v17  ;;  %v4789_v49 = vmul.f32 0.5, %v6550_v0 }
 0x6f9   :  { %v7350_v40 = vpop.eup %7349  ;;  %v4826_v41 = vmul.f32 %v7348_v25, %v4738_v3  ;;  %v4546_v45 = vpop.f32.mrb[104].mxu0  ;;  %7365 = vtanh.f32 %v4749_v30 }
 0x6fa   :  { %v4659_v53 = vpop.f32.mrb[104].mxu1  ;;  %v7352_v54 = vpop.eup %7351  ;;  %v4818_v58 = vmul.f32 %v4770_v26, %v9356_v57  ;;  %v4731_v7 = vadd.f32 1.0, %v7350_v40  ;;  %v6535_v8 = vadd.f32 %v4546_v45, %v7970_v59  ;;  %7367 = vtanh.f32 %v4787_v14 }
 0x6fb   :  { %v4548_v12 = vpop.f32.mrb[105].mxu0  ;;  %v4661_v15 = vpop.f32.mrb[105].mxu1  ;;  %v4763_v27 = vadd.f32 1.0, %v7352_v54  ;;  %7369 = vtanh.f32 %v6549_v44  ;;  %v6551_v60 = vadd.f32 %v4659_v53, %v7976_v46 }
 0x6fc   :  { %v6536_v28 = vadd.f32 %v4548_v12, %v7972_v52  ;;  %v9061_v33 = vadd.f32 %v4826_v41, %v4818_v58  ;;  %v4739_v34 = vmul.f32 0.5, %v4731_v7  ;;  %v4718_v39 = vmul.f32 0.5, %v6535_v8  ;;  %v7354_v23 = vpop.eup %7353 }
 0x6fd   :  { %v4771_v5 = vmul.f32 0.5, %v4763_v27  ;;  %v7356_v55 = vpop.eup %7355  ;;  %v6552_v48 = vadd.f32 %v4661_v15, %v7974_v6 }
 0x6fe   :  { %v4750_v51 = vmul.f32 0.5, %v6536_v28  ;;  %7371 = vtanh.f32 %v9061_v33  ;;  %v4827_v31 = vmul.f32 %v7354_v23, %v4739_v34  ;;  %v7358_v11 = vpop.eup %7357  ;;  %v4802_v4 = vadd.f32 1.0, %v7356_v55 }
 0x6ff   :  { %v4819_v21 = vmul.f32 %v4771_v5, %v9357_v1  ;;  %7373 = vtanh.f32 %v4718_v39  ;;  %v7360_v36 = vpop.eup %7359  ;;  %v4732_v18 = vadd.f32 1.0, %v7358_v11  ;;  %v4790_v57 = vmul.f32 0.5, %v6552_v48 }
 0x700   :  { %7375 = vtanh.f32 %v4750_v51  ;;  %v4764_v19 = vadd.f32 1.0, %v7360_v36  ;;  %v7362_v42 = vpop.eup %7361  ;;  %v4810_v40 = vmul.f32 0.5, %v4802_v4 }
 0x701   :  { %v9067_v32 = vadd.f32 %v4827_v31, %v4819_v21  ;;  %7377 = vtanh.f32 %v4788_v22  ;;  %v4552_v38 = vpop.f32.mrb[106].mxu0  ;;  %v4665_v43 = vpop.f32.mrb[106].mxu1  ;;  %v4740_v24 = vmul.f32 0.5, %v4732_v18 }
 0x702   :  { %7379 = vtanh.f32 %v6551_v60  ;;  %v6537_v16 = vadd.f32 %v4552_v38, %v7970_v59  ;;  %v4554_v47 = vpop.f32.mrb[107].mxu0  ;;  %v4667_v2 = vpop.f32.mrb[107].mxu1  ;;  %v4772_v62 = vmul.f32 0.5, %v4764_v19  ;;  %v6553_v44 = vadd.f32 %v4665_v43, %v7976_v46 }
 0x703   :  { %v7364_v9 = vpop.eup %7363  ;;  %7381 = vtanh.f32 %v9067_v32  ;;  %v6538_v13 = vadd.f32 %v4554_v47, %v7972_v52  ;;  %v4828_v3 = vmul.f32 %v7362_v42, %v4740_v24  ;;  %v6554_v34 = vadd.f32 %v4667_v2, %v7974_v6 }
 0x704   :  { %v7366_v56 = vpop.eup %7365  ;;  %v4733_v14 = vadd.f32 1.0, %v7364_v9  ;;  %v4719_v17 = vmul.f32 0.5, %v6537_v16  ;;  %v4820_v26 = vmul.f32 %v4772_v62, %v8922_v20  ;;  %7383 = vtanh.f32 %v4789_v49 }
 0x705   :  { %v7368_v25 = vpop.eup %7367  ;;  %v4765_v29 = vadd.f32 1.0, %v7366_v56  ;;  %v4751_v30 = vmul.f32 0.5, %v6538_v13  ;;  %v4791_v19 = vmul.f32 0.5, %v6554_v34 }
 0x706   :  { %v4741_v41 = vmul.f32 0.5, %v4733_v14  ;;  %7385 = vtanh.f32 %v4719_v17  ;;  %v7370_v45 = vpop.eup %7369  ;;  %v9075_v53 = vadd.f32 %v4828_v3, %v4820_v26  ;;  %v4803_v15 = vadd.f32 1.0, %v7368_v25 }
 0x707   :  { %v4773_v54 = vmul.f32 0.5, %v4765_v29  ;;  %7387 = vtanh.f32 %v4751_v30 }
 0x708   :  { %v7372_v58 = vpop.eup %7371  ;;  %v4829_v7 = vmul.f32 %v7370_v45, %v4741_v41  ;;  %7389 = vtanh.f32 %v9075_v53  ;;  %v4811_v1 = vmul.f32 0.5, %v4803_v15 }
 0x709   :  { %v7374_v8 = vpop.eup %7373  ;;  %v4850_v12 = vmul.f32 %v7372_v58, %v4810_v40  ;;  %v4821_v20 = vmul.f32 %v4773_v54, %v8928_v61  ;;  %7391 = vtanh.f32 %v6553_v44 }
 0x70a   :  { %v7376_v27 = vpop.eup %7375  ;;  %v4734_v28 = vadd.f32 1.0, %v7374_v8  ;;  %7393 = vtanh.f32 %v4790_v57 }
 0x70b   :  { %v7378_v22 = vpop.eup %7377  ;;  %v9080_v39 = vadd.f32 %v4829_v7, %v4821_v20  ;;  %v4766_v23 = vadd.f32 1.0, %v7376_v27  ;;  %v4558_v5 = vpop.f32.mrb[108].mxu0  ;;  %5197 = vmatmul.mubr.f32.vlgmr.msra.gmra.mrb[112].mxu0 %v4850_v12  ;;  %5310 = vmatmul.mubr.f32.vlgmr.msra.gmra.mrb[112].mxu1 %v4850_v12 }
 0x70c   :  { %v4671_v0 = vpop.f32.mrb[108].mxu1  ;;  %v7380_v51 = vpop.eup %7379  ;;  %v4742_v55 = vmul.f32 0.5, %v4734_v28  ;;  %v6539_v31 = vadd.f32 %v4558_v5, %v7970_v59  ;;  %5202 = vmatprep.mubr.f32.mxu0 %v9257_v37  ;;  %5315 = vmatprep.mubr.f32.mxu1 %v9257_v37  ;;  %v4804_v43 = vadd.f32 1.0, %v7378_v22 }
 0x70d   :  { %v4560_v60 = vpop.f32.mrb[109].mxu0  ;;  %v4673_v61 = vpop.f32.mrb[109].mxu1  ;;  %7395 = vtanh.f32 %v9080_v39  ;;  %v4774_v21 = vmul.f32 0.5, %v4766_v23  ;;  %v6555_v47 = vadd.f32 %v4671_v0, %v7976_v46 }
 0x70e   :  { %v7382_v11 = vpop.eup %7381  ;;  %v6540_v36 = vadd.f32 %v4560_v60, %v7972_v52  ;;  %v4830_v18 = vmul.f32 %v7380_v51, %v4742_v55  ;;  %v4720_v49 = vmul.f32 0.5, %v6539_v31  ;;  %v4812_v29 = vmul.f32 0.5, %v4804_v43 }
 0x70f   :  { %v7384_v38 = vpop.eup %7383  ;;  %v4822_v42 = vmul.f32 %v4774_v21, %v8947_v10  ;;  %v4851_v24 = vmul.f32 %v7382_v11, %v4811_v1  ;;  %v4564_v2 = vpop.f32.mrb[110].mxu0  ;;  %v6556_v45 = vadd.f32 %v4673_v61, %v7974_v6 }
 0x710   :  { %v4752_v4 = vmul.f32 0.5, %v6540_v36  ;;  %v7386_v16 = vpop.eup %7385  ;;  %7397 = vtanh.f32 %v4720_v49  ;;  %v4677_v9 = vpop.f32.mrb[110].mxu1  ;;  %v6541_v56 = vadd.f32 %v4564_v2, %v7970_v59  ;;  %v4805_v10 = vadd.f32 1.0, %v7384_v38 }
 0x711   :  { %v7388_v62 = vpop.eup %7387  ;;  %v9089_v48 = vadd.f32 %v4830_v18, %v4822_v42  ;;  %v4735_v13 = vadd.f32 1.0, %v7386_v16  ;;  %v4566_v3 = vpop.f32.mrb[111].mxu0  ;;  %5203 = vmatmul.mubr.f32.gmra.mrb[114].mxu0 %v4851_v24  ;;  %5316 = vmatmul.mubr.f32.gmra.mrb[114].mxu1 %v4851_v24  ;;  %v6557_v7 = vadd.f32 %v4677_v9, %v7976_v46  ;;  %v4792_v34 = vmul.f32 0.5, %v6556_v45 }
 0x712   :  { %7399 = vtanh.f32 %v4752_v4  ;;  %v4679_v14 = vpop.f32.mrb[111].mxu1  ;;  %v4767_v17 = vadd.f32 1.0, %v7388_v62  ;;  %v6542_v25 = vadd.f32 %v4566_v3, %v7972_v52  ;;  %5208 = vmatprep.mubr.f32.mxu0 %v9257_v37  ;;  %5321 = vmatprep.mubr.f32.mxu1 %v9257_v37  ;;  %v7390_v26 = vpop.eup %7389  ;;  %v4721_v40 = vmul.f32 0.5, %v6541_v56 }
 0x713   :  { %7401 = vtanh.f32 %v4791_v19  ;;  %v4743_v30 = vmul.f32 0.5, %v4735_v13  ;;  %v7392_v41 = vpop.eup %7391  ;;  %v4852_v8 = vmul.f32 %v7390_v26, %v4812_v29  ;;  %v4813_v12 = vmul.f32 0.5, %v4805_v10 }
 0x714   :  { %7403 = vtanh.f32 %v9089_v48  ;;  %v4775_v44 = vmul.f32 0.5, %v4767_v17  ;;  %v4753_v54 = vmul.f32 0.5, %v6542_v25  ;;  %v7394_v57 = vpop.eup %7393  ;;  %v6558_v23 = vadd.f32 %v4679_v14, %v7974_v6 }
 0x715   :  { %7405 = vtanh.f32 %v6555_v47  ;;  %v4831_v58 = vmul.f32 %v7392_v41, %v4743_v30  ;;  %5209 = vmatmul.mubr.f32.gmra.mrb[116].mxu0 %v4852_v8  ;;  %5322 = vmatmul.mubr.f32.gmra.mrb[116].mxu1 %v4852_v8  ;;  %v4806_v27 = vadd.f32 1.0, %v7394_v57 }
 0x716   :  { %7407 = vtanh.f32 %v4721_v40  ;;  %v4823_v15 = vmul.f32 %v4775_v44, %v8959_v50  ;;  %5214 = vmatprep.mubr.f32.mxu0 %v9257_v37  ;;  %5327 = vmatprep.mubr.f32.mxu1 %v9257_v37  ;;  %v4793_v11 = vmul.f32 0.5, %v6558_v23  ;;  %v7568_v44 = vmov 0.0|0.0  }
 0x717   :  { %7409 = vtanh.f32 %v4753_v54  ;;  %v7396_v20 = vpop.eup %7395  ;;  %v4814_v55 = vmul.f32 0.5, %v4806_v27  ;;  %6323 = vmatprep.subr.bf16.mxu0 %v7568_v44 }
 0x718   :  { %v9099_v28 = vadd.f32 %v4831_v58, %v4823_v15  ;;  %v4853_v22 = vmul.f32 %v7396_v20, %v4813_v12  ;;  %7411 = vtanh.f32 %v6557_v7 }
 0x71a   :  { %v7398_v5 = vpop.eup %7397  ;;  %7413 = vtanh.f32 %v9099_v28  ;;  %5215 = vmatmul.mubr.f32.gmra.mrb[118].mxu0 %v4853_v22  ;;  %5328 = vmatmul.mubr.f32.gmra.mrb[118].mxu1 %v4853_v22 }
 0x71b   :  { %v4736_v0 = vadd.f32 1.0, %v7398_v5  ;;  %7415 = vtanh.f32 %v4792_v34  ;;  %5220 = vmatprep.mubr.f32.mxu0 %v9257_v37  ;;  %5333 = vmatprep.mubr.f32.mxu1 %v9257_v37 }
 0x71c   :  { %v7400_v50 = vpop.eup %7399  ;;  %7417 = vtanh.f32 %v4793_v11 }
 0x71d   :  { %v7402_v51 = vpop.eup %7401  ;;  %v4768_v31 = vadd.f32 1.0, %v7400_v50  ;;  %v4744_v61 = vmul.f32 0.5, %v4736_v0 }
 0x71e   :  { %v7404_v60 = vpop.eup %7403  ;;  %v4807_v19 = vadd.f32 1.0, %v7402_v51 }
 0x71f   :  { %v7406_v1 = vpop.eup %7405  ;;  %v4776_v21 = vmul.f32 0.5, %v4768_v31  ;;  %v4854_v36 = vmul.f32 %v7404_v60, %v4814_v55 }
 0x720   :  { %v7408_v18 = vpop.eup %7407  ;;  %v4832_v49 = vmul.f32 %v7406_v1, %v4744_v61  ;;  %v4815_v2 = vmul.f32 0.5, %v4807_v19 }
 0x721   :  { %v7410_v38 = vpop.eup %7409  ;;  %v4824_v43 = vmul.f32 %v4776_v21, %v8968_v63  ;;  %v4737_v42 = vadd.f32 1.0, %v7408_v18  ;;  %5221 = vmatmul.mubr.f32.gmra.mrb[120].mxu0 %v4854_v36  ;;  %5334 = vmatmul.mubr.f32.gmra.mrb[120].mxu1 %v4854_v36 }
 0x722   :  { %v4769_v4 = vadd.f32 1.0, %v7410_v38  ;;  %5226 = vmatprep.mubr.f32.mxu0 %v9257_v37  ;;  %5339 = vmatprep.mubr.f32.mxu1 %v9257_v37  ;;  %v7412_v47 = vpop.eup %7411 }
 0x723   :  { %v9110_v24 = vadd.f32 %v4832_v49, %v4824_v43  ;;  %v4745_v16 = vmul.f32 0.5, %v4737_v42 }
 0x724   :  { %v4777_v9 = vmul.f32 0.5, %v4769_v4  ;;  %v7414_v62 = vpop.eup %7413 }
 0x725   :  { %7419 = vtanh.f32 %v9110_v24  ;;  %v4833_v13 = vmul.f32 %v7412_v47, %v4745_v16  ;;  %v4855_v56 = vmul.f32 %v7414_v62, %v4815_v2  ;;  %v7416_v3 = vpop.eup %7415 }
 0x726   :  { %v4825_v63 = vmul.f32 %v4777_v9, %v8972_v35  ;;  %v4808_v10 = vadd.f32 1.0, %v7416_v3  ;;  %v7418_v17 = vpop.eup %7417 }
 0x727   :  { %5227 = vmatmul.mubr.f32.gmra.mrb[122].mxu0 %v4855_v56  ;;  %5340 = vmatmul.mubr.f32.gmra.mrb[122].mxu1 %v4855_v56  ;;  %v4809_v29 = vadd.f32 1.0, %v7418_v17 }
 0x728   :  { %v9114_v14 = vadd.f32 %v4833_v13, %v4825_v63  ;;  %5232 = vmatprep.mubr.f32.mxu0 %v9257_v37  ;;  %5345 = vmatprep.mubr.f32.mxu1 %v9257_v37  ;;  %v4816_v25 = vmul.f32 0.5, %v4808_v10 }
 0x729   :  { %v4817_v35 = vmul.f32 0.5, %v4809_v29 }
 0x72a   :  { %7421 = vtanh.f32 %v9114_v14 }
 0x72f   :  { %v7420_v26 = vpop.eup %7419 }
 0x730   :  { %v4856_v30 = vmul.f32 %v7420_v26, %v4816_v25 }
 0x732   :  { %5233 = vmatmul.mubr.f32.gmra.mrb[124].mxu0 %v4856_v30  ;;  %5346 = vmatmul.mubr.f32.gmra.mrb[124].mxu1 %v4856_v30 }
 0x733   :  { %5238 = vmatprep.mubr.f32.mxu0 %v9257_v37  ;;  %5351 = vmatprep.mubr.f32.mxu1 %v9257_v37 }
 0x734   :  { %v7422_v40 = vpop.eup %7421 }
 0x735   :  { %v4857_v41 = vmul.f32 %v7422_v40, %v4817_v35 }
 0x737   :  { %5239 = vmatmul.mubr.f32.gmra.mrb[126].mxu0 %v4857_v41  ;;  %5352 = vmatmul.mubr.f32.gmra.mrb[126].mxu1 %v4857_v41 }
 0x738   :  { %5808 = vmatprep.mubr.msk.f32.mxu0 %vm7569_vm2, %v9257_v37 }
 0x7de   :  { %v5198_v45 = vpop.f32.mrb[112].mxu0  ;;  %v5311_v54 = vpop.f32.mrb[112].mxu1 }
 0x7df   :  { %v6559_v57 = vadd.f32 %v5198_v45, %v7970_v59  ;;  %v5200_v58 = vpop.f32.mrb[113].mxu0  ;;  %v5313_v7 = vpop.f32.mrb[113].mxu1  ;;  %v6575_v20 = vadd.f32 %v5311_v54, %v7976_v46 }
 0x7e0   :  { %v6560_v8 = vadd.f32 %v5200_v58, %v7972_v52  ;;  %v6576_v5 = vadd.f32 %v5313_v7, %v7974_v6 }
 0x7e1   :  { %v5390_v12 = vmul.f32 0.5, %v6559_v57 }
 0x7e2   :  { %v5422_v15 = vmul.f32 0.5, %v6560_v8  ;;  %v5462_v60 = vmul.f32 0.5, %v6576_v5 }
 0x7e3   :  { %7423 = vtanh.f32 %v5390_v12 }
 0x7e4   :  { %7425 = vtanh.f32 %v5422_v15  ;;  %v5204_v27 = vpop.f32.mrb[114].mxu0  ;;  %v5317_v34 = vpop.f32.mrb[114].mxu1 }
 0x7e5   :  { %v6561_v22 = vadd.f32 %v5204_v27, %v7970_v59  ;;  %v5206_v23 = vpop.f32.mrb[115].mxu0  ;;  %v5319_v37 = vpop.f32.mrb[115].mxu1  ;;  %7427 = vtanh.f32 %v6575_v20  ;;  %v6577_v55 = vadd.f32 %v5317_v34, %v7976_v46 }
 0x7e6   :  { %v6562_v50 = vadd.f32 %v5206_v23, %v7972_v52  ;;  %v6578_v31 = vadd.f32 %v5319_v37, %v7974_v6 }
 0x7e7   :  { %v5391_v0 = vmul.f32 0.5, %v6561_v22 }
 0x7e8   :  { %v5423_v51 = vmul.f32 0.5, %v6562_v50  ;;  %v5210_v61 = vpop.f32.mrb[116].mxu0  ;;  %v5323_v11 = vpop.f32.mrb[116].mxu1  ;;  %v5463_v49 = vmul.f32 0.5, %v6578_v31 }
 0x7e9   :  { %7429 = vtanh.f32 %v5391_v0  ;;  %v6563_v1 = vadd.f32 %v5210_v61, %v7970_v59  ;;  %v5212_v21 = vpop.f32.mrb[117].mxu0  ;;  %v5325_v36 = vpop.f32.mrb[117].mxu1  ;;  %v6579_v16 = vadd.f32 %v5323_v11, %v7976_v46 }
 0x7ea   :  { %7431 = vtanh.f32 %v5423_v51  ;;  %v6564_v18 = vadd.f32 %v5212_v21, %v7972_v52  ;;  %v6580_v43 = vadd.f32 %v5325_v36, %v7974_v6 }
 0x7eb   :  { %7433 = vtanh.f32 %v6577_v55  ;;  %v5392_v38 = vmul.f32 0.5, %v6563_v1 }
 0x7ec   :  { %7435 = vtanh.f32 %v5462_v60  ;;  %v5424_v47 = vmul.f32 0.5, %v6564_v18  ;;  %v5464_v26 = vmul.f32 0.5, %v6580_v43 }
 0x7ed   :  { %v7424_v19 = vpop.eup %7423  ;;  %v5216_v2 = vpop.f32.mrb[118].mxu0  ;;  %7437 = vtanh.f32 %v5392_v38 }
 0x7ee   :  { %v7426_v42 = vpop.eup %7425  ;;  %v5406_v4 = vadd.f32 1.0, %v7424_v19  ;;  %v5329_v9 = vpop.f32.mrb[118].mxu1  ;;  %v6565_v13 = vadd.f32 %v5216_v2, %v7970_v59  ;;  %7439 = vtanh.f32 %v5424_v47 }
 0x7ef   :  { %v5438_v62 = vadd.f32 1.0, %v7426_v42  ;;  %v5218_v63 = vpop.f32.mrb[119].mxu0  ;;  %v5331_v56 = vpop.f32.mrb[119].mxu1  ;;  %7441 = vtanh.f32 %v5463_v49  ;;  %v6581_v35 = vadd.f32 %v5329_v9, %v7976_v46 }
 0x7f0   :  { %v5414_v3 = vmul.f32 0.5, %v5406_v4  ;;  %v6566_v10 = vadd.f32 %v5218_v63, %v7972_v52  ;;  %v7428_v17 = vpop.eup %7427  ;;  %v5393_v29 = vmul.f32 0.5, %v6565_v13  ;;  %7443 = vtanh.f32 %v6579_v16 }
 0x7f1   :  { %v5446_v25 = vmul.f32 0.5, %v5438_v62  ;;  %v6582_v23 = vadd.f32 %v5331_v56, %v7974_v6 }
 0x7f2   :  { %v5502_v30 = vmul.f32 %v7428_v17, %v5414_v3  ;;  %v5425_v40 = vmul.f32 0.5, %v6566_v10  ;;  %7445 = vtanh.f32 %v5393_v29 }
 0x7f3   :  { %v7430_v41 = vpop.eup %7429  ;;  %v5494_v45 = vmul.f32 %v5446_v25, %v9061_v33  ;;  %v5465_v1 = vmul.f32 0.5, %v6582_v23 }
 0x7f4   :  { %v5222_v54 = vpop.f32.mrb[120].mxu0  ;;  %v5335_v57 = vpop.f32.mrb[120].mxu1  ;;  %v5407_v7 = vadd.f32 1.0, %v7430_v41  ;;  %7447 = vtanh.f32 %v5425_v40 }
 0x7f5   :  { %v7432_v58 = vpop.eup %7431  ;;  %v6567_v8 = vadd.f32 %v5222_v54, %v7970_v59  ;;  %v5224_v12 = vpop.f32.mrb[121].mxu0  ;;  %v5510_v20 = vadd.f32 %v5502_v30, %v5494_v45  ;;  %7449 = vtanh.f32 %v5464_v26  ;;  %v6583_v55 = vadd.f32 %v5335_v57, %v7976_v46 }
 0x7f6   :  { %v5337_v15 = vpop.f32.mrb[121].mxu1  ;;  %v5439_v27 = vadd.f32 1.0, %v7432_v58  ;;  %v6568_v34 = vadd.f32 %v5224_v12, %v7972_v52  ;;  %v5415_v22 = vmul.f32 0.5, %v5407_v7  ;;  %7451 = vtanh.f32 %v6581_v35  ;;  %v7434_v37 = vpop.eup %7433 }
 0x7f7   :  { %v5394_v33 = vmul.f32 0.5, %v6567_v8  ;;  %7453 = vtanh.f32 %v5510_v20  ;;  %v7436_v0 = vpop.eup %7435  ;;  %v6584_v2 = vadd.f32 %v5337_v15, %v7974_v6 }
 0x7f8   :  { %v5447_v5 = vmul.f32 0.5, %v5439_v27  ;;  %v5426_v50 = vmul.f32 0.5, %v6568_v34  ;;  %v5503_v51 = vmul.f32 %v7434_v37, %v5415_v22  ;;  %v7438_v31 = vpop.eup %7437  ;;  %v5478_v19 = vadd.f32 1.0, %v7436_v0 }
 0x7f9   :  { %7455 = vtanh.f32 %v5394_v33  ;;  %v7440_v61 = vpop.eup %7439  ;;  %v5408_v11 = vadd.f32 1.0, %v7438_v31  ;;  %v5466_v41 = vmul.f32 0.5, %v6584_v2 }
 0x7fa   :  { %v5495_v60 = vmul.f32 %v5447_v5, %v9067_v32  ;;  %7457 = vtanh.f32 %v5426_v50  ;;  %v5228_v21 = vpop.f32.mrb[122].mxu0  ;;  %v5341_v36 = vpop.f32.mrb[122].mxu1  ;;  %v5440_v38 = vadd.f32 1.0, %v7440_v61  ;;  %v5486_v35 = vmul.f32 0.5, %v5478_v19 }
 0x7fb   :  { %v7442_v18 = vpop.eup %7441  ;;  %v6569_v43 = vadd.f32 %v5228_v21, %v7970_v59  ;;  %v5230_v42 = vpop.f32.mrb[123].mxu0  ;;  %v5416_v47 = vmul.f32 0.5, %v5408_v11  ;;  %7459 = vtanh.f32 %v6583_v55  ;;  %v6585_v10 = vadd.f32 %v5341_v36, %v7976_v46 }
 0x7fc   :  { %v5511_v49 = vadd.f32 %v5503_v51, %v5495_v60  ;;  %v5343_v4 = vpop.f32.mrb[123].mxu1  ;;  %v7444_v16 = vpop.eup %7443  ;;  %v6570_v32 = vadd.f32 %v5230_v42, %v7972_v52  ;;  %v5448_v62 = vmul.f32 0.5, %v5440_v38  ;;  %v5479_v54 = vadd.f32 1.0, %v7442_v18 }
 0x7fd   :  { %v7446_v9 = vpop.eup %7445  ;;  %v5395_v13 = vmul.f32 0.5, %v6569_v43  ;;  %v5504_v56 = vmul.f32 %v7444_v16, %v5416_v47  ;;  %v6586_v15 = vadd.f32 %v5343_v4, %v7974_v6 }
 0x7fe   :  { %7461 = vtanh.f32 %v5511_v49  ;;  %v7448_v63 = vpop.eup %7447  ;;  %v5409_v3 = vadd.f32 1.0, %v7446_v9  ;;  %v5496_v25 = vmul.f32 %v5448_v62, %v9075_v53  ;;  %v5427_v29 = vmul.f32 0.5, %v6570_v32 }
 0x7ff   :  { %7463 = vtanh.f32 %v5465_v1  ;;  %v7450_v17 = vpop.eup %7449  ;;  %v5441_v26 = vadd.f32 1.0, %v7448_v63  ;;  %v5487_v31 = vmul.f32 0.5, %v5479_v54  ;;  %v5467_v61 = vmul.f32 0.5, %v6586_v15 }
 0x800   :  { %7465 = vtanh.f32 %v5395_v13  ;;  %v7452_v30 = vpop.eup %7451  ;;  %v5417_v40 = vmul.f32 0.5, %v5409_v3  ;;  %v5512_v57 = vadd.f32 %v5504_v56, %v5496_v25  ;;  %v5480_v33 = vadd.f32 1.0, %v7450_v17 }
 0x801   :  { %v7454_v45 = vpop.eup %7453  ;;  %v5449_v58 = vmul.f32 0.5, %v5441_v26  ;;  %7467 = vtanh.f32 %v5427_v29 }
 0x802   :  { %v5526_v8 = vmul.f32 %v7454_v45, %v5486_v35  ;;  %v5505_v12 = vmul.f32 %v7452_v30, %v5417_v40  ;;  %7469 = vtanh.f32 %v6585_v10  ;;  %v5488_v38 = vmul.f32 0.5, %v5480_v33 }
 0x803   :  { %v7456_v7 = vpop.eup %7455  ;;  %7471 = vtanh.f32 %v5512_v57  ;;  %v5497_v53 = vmul.f32 %v5449_v58, %v9080_v39 }
 0x804   :  { %v7458_v20 = vpop.eup %7457  ;;  %v5410_v27 = vadd.f32 1.0, %v7456_v7  ;;  %7473 = vtanh.f32 %v5466_v41 }
 0x805   :  { %v5442_v34 = vadd.f32 1.0, %v7458_v20  ;;  %v5234_v22 = vpop.f32.mrb[124].mxu0  ;;  %v5347_v23 = vpop.f32.mrb[124].mxu1  ;;  %v5513_v37 = vadd.f32 %v5505_v12, %v5497_v53 }
 0x806   :  { %v5418_v5 = vmul.f32 0.5, %v5410_v27  ;;  %v6571_v50 = vadd.f32 %v5234_v22, %v7970_v59  ;;  %v5236_v0 = vpop.f32.mrb[125].mxu0  ;;  %v5349_v51 = vpop.f32.mrb[125].mxu1  ;;  %v6587_v43 = vadd.f32 %v5347_v23, %v7976_v46 }
 0x807   :  { %v7460_v55 = vpop.eup %7459  ;;  %v5450_v60 = vmul.f32 0.5, %v5442_v34  ;;  %v6572_v11 = vadd.f32 %v5236_v0, %v7972_v52  ;;  %7475 = vtanh.f32 %v5513_v37  ;;  %v6588_v29 = vadd.f32 %v5349_v51, %v7974_v6 }
 0x808   :  { %v7462_v1 = vpop.eup %7461  ;;  %v5506_v39 = vmul.f32 %v7460_v55, %v5418_v5  ;;  %v5396_v21 = vmul.f32 0.5, %v6571_v50 }
 0x809   :  { %v7464_v36 = vpop.eup %7463  ;;  %v5527_v18 = vmul.f32 %v7462_v1, %v5487_v31  ;;  %v5498_v19 = vmul.f32 %v5450_v60, %v9089_v48  ;;  %v5428_v42 = vmul.f32 0.5, %v6572_v11  ;;  %v5468_v12 = vmul.f32 0.5, %v6588_v29 }
 0x80a   :  { %v7466_v49 = vpop.eup %7465  ;;  %7477 = vtanh.f32 %v5396_v21  ;;  %v5240_v4 = vpop.f32.mrb[126].mxu0  ;;  %v5481_v63 = vadd.f32 1.0, %v7464_v36 }
 0x80b   :  { %v5353_v16 = vpop.f32.mrb[126].mxu1  ;;  %v5514_v47 = vadd.f32 %v5506_v39, %v5498_v19  ;;  %v5411_v2 = vadd.f32 1.0, %v7466_v49  ;;  %7479 = vtanh.f32 %v5467_v61  ;;  %v6573_v32 = vadd.f32 %v5240_v4, %v7970_v59  ;;  %v5242_v9 = vpop.f32.mrb[127].mxu0 }
 0x80c   :  { %v5355_v62 = vpop.f32.mrb[127].mxu1  ;;  %v7468_v13 = vpop.eup %7467  ;;  %7481 = vtanh.f32 %v5428_v42  ;;  %v6574_v48 = vadd.f32 %v5242_v9, %v7972_v52  ;;  %v6324_v56 = vpack.c.bf16 %v5527_v18, %v5526_v8  ;;  %v6589_v30 = vadd.f32 %v5353_v16, %v7976_v46 }
 0x80d   :  { %v7470_v3 = vpop.eup %7469  ;;  %7483 = vtanh.f32 %v5514_v47  ;;  %v5419_v10 = vmul.f32 0.5, %v5411_v2  ;;  %v5443_v17 = vadd.f32 1.0, %v7468_v13  ;;  %v5397_v25 = vmul.f32 0.5, %v6573_v32 }
 0x80e   :  { %v7472_v26 = vpop.eup %7471  ;;  %7485 = vtanh.f32 %v6587_v43  ;;  %v5429_v59 = vmul.f32 0.5, %v6574_v48  ;;  %6325 = vmatpush3.bf16.xpose.msra.mxu0 %v6324_v56  ;;  %v5489_v52 = vmul.f32 0.5, %v5481_v63  ;;  %v6590_v15 = vadd.f32 %v5355_v62, %v7974_v6 }
 0x80f   :  { %v7474_v35 = vpop.eup %7473  ;;  %v5528_v40 = vmul.f32 %v7472_v26, %v5488_v38  ;;  %v5451_v41 = vmul.f32 0.5, %v5443_v17  ;;  %v5507_v45 = vmul.f32 %v7470_v3, %v5419_v10  ;;  %7487 = vtanh.f32 %v5397_v25  ;;  %6326 = vmatprep.subr.bf16.mxu0 %v7568_v44 }
 0x810   :  { %7489 = vtanh.f32 %v5429_v59  ;;  %v5482_v58 = vadd.f32 1.0, %v7474_v35  ;;  %v5469_v50 = vmul.f32 0.5, %v6590_v15  ;;  %v5535_v3 = vstv %s9189_s5 }
 0x811   :  { %v5499_v54 = vmul.f32 %v5451_v41, %v9099_v28  ;;  %v7476_v57 = vpop.eup %7475  ;;  %7491 = vtanh.f32 %v6589_v30 }
 0x812   :  { %v5529_v7 = vmul.f32 %v7476_v57, %v5489_v52  ;;  %v5490_v22 = vmul.f32 0.5, %v5482_v58 }
 0x813   :  { %v5515_v8 = vadd.f32 %v5507_v45, %v5499_v54 }
 0x814   :  { %v7478_v46 = vpop.eup %7477  ;;  %v6327_v27 = vpack.c.bf16 %v5529_v7, %v5528_v40 }
 0x815   :  { %v7480_v20 = vpop.eup %7479  ;;  %7493 = vtanh.f32 %v5515_v8  ;;  %v5412_v53 = vadd.f32 1.0, %v7478_v46 }
 0x816   :  { %v7482_v34 = vpop.eup %7481  ;;  %7495 = vtanh.f32 %v5468_v12  ;;  %6328 = vmatpush3.bf16.xpose.msra.mxu0 %v6327_v27  ;;  %v5483_v6 = vadd.f32 1.0, %v7480_v20 }
 0x817   :  { %v7484_v23 = vpop.eup %7483  ;;  %v5420_v33 = vmul.f32 0.5, %v5412_v53  ;;  %v5444_v37 = vadd.f32 1.0, %v7482_v34  ;;  %6329 = vmatprep.subr.bf16.mxu0 %v7568_v44  ;;  %7497 = vtanh.f32 %v5469_v50 }
 0x818   :  { %v7486_v28 = vpop.eup %7485  ;;  %v5530_v5 = vmul.f32 %v7484_v23, %v5490_v22  ;;  %v5491_v36 = vmul.f32 0.5, %v5483_v6 }
 0x819   :  { %v7488_v0 = vpop.eup %7487  ;;  %v5452_v51 = vmul.f32 0.5, %v5444_v37  ;;  %v5508_v55 = vmul.f32 %v7486_v28, %v5420_v33 }
 0x81a   :  { %v5413_v31 = vadd.f32 1.0, %v7488_v0  ;;  %v7490_v60 = vpop.eup %7489 }
 0x81b   :  { %v5500_v61 = vmul.f32 %v5452_v51, %v9110_v24  ;;  %v5445_v1 = vadd.f32 1.0, %v7490_v60  ;;  %v7492_v39 = vpop.eup %7491 }
 0x81c   :  { %v5421_v11 = vmul.f32 0.5, %v5413_v31 }
 0x81d   :  { %v5516_v21 = vadd.f32 %v5508_v55, %v5500_v61  ;;  %v5453_v18 = vmul.f32 0.5, %v5445_v1 }
 0x81e   :  { %v5509_v19 = vmul.f32 %v7492_v39, %v5421_v11 }
 0x81f   :  { %v7494_v49 = vpop.eup %7493  ;;  %7499 = vtanh.f32 %v5516_v21  ;;  %v5501_v43 = vmul.f32 %v5453_v18, %v9114_v14  ;;  %v106_v14 = vld [vmem:[%s9188_s4] sm:$0x1] }
 0x820   :  { %v5531_v38 = vmul.f32 %v7494_v49, %v5491_v36  ;;  %v7496_v42 = vpop.eup %7495 }
 0x821   :  { %v5517_v4 = vadd.f32 %v5509_v19, %v5501_v43  ;;  %v5484_v47 = vadd.f32 1.0, %v7496_v42  ;;  %v7498_v24 = vpop.eup %7497 }
 0x822   :  { %v6330_v16 = vpack.c.bf16 %v5531_v38, %v5530_v5  ;;  %v5485_v9 = vadd.f32 1.0, %v7498_v24 }
 0x823   :  { %7501 = vtanh.f32 %v5517_v4  ;;  %v5492_v2 = vmul.f32 0.5, %v5484_v47 }
 0x824   :  { %6331 = vmatpush3.bf16.xpose.msra.mxu0 %v6330_v16  ;;  %v5493_v13 = vmul.f32 0.5, %v5485_v9 }
 0x825   :  { %6332 = vmatprep.subr.bf16.mxu0 %v7568_v44 }
 0x829   :  { %v7500_v32 = vpop.eup %7499 }
 0x82a   :  { %v5532_v62 = vmul.f32 %v7500_v32, %v5492_v2 }
 0x82d   :  { %v7502_v63 = vpop.eup %7501 }
 0x82e   :  { %v5533_v48 = vmul.f32 %v7502_v63, %v5493_v13 }
 0x830   :  { %v6333_v56 = vpack.c.bf16 %v5533_v48, %v5532_v62 }
 0x832   :  { %6334 = vmatpush3.bf16.xpose.msra.mxu0 %v6333_v56 }
 0x839   :  { %5809 = vmatmul.mubr.f32.vlgmr.msra.gmra.mrb[128].mxu0 %v106_v14 }
 0x90c   :  { %v5602_v44 = vpop.f32.mrb[128].mxu0 }
 0x90d   :  { %v5603_v10 = vadd.f32 %v5602_v44, %v5535_v3  ;;  %v5810_v17 = vpop.f32.mrb[129].mxu0 }
 0x90f   :  { %5607 = vst.msk [vmem:[#allocation6] sm:$0x1] %vm5606_vm3, %v5603_v10 }
 0x910   :  { %7542 = shalt.err (!%p7539_p12)
}
 0x911   :  { %s7543_s5 = scalar_lea.hbm %s9190_s6, 16 }
 0x912   :  { %p7544_p13 = scmp.ne.s32.totalorder %s9190_s6, %s7543_s5  ;;  %p7547_p0 = scmp.lt.u32.totalorder %s7543_s5, %s9190_s6 }
 0x914   :  { %p7549_p1 = pnand %p7547_p0, %p7544_p13 }
 0x916   :  { %7552 = shalt.err (!%p7549_p1)
}
 0x917   :  { %5617 = dma.vmem_to_hbm [thread:$0]  %s5615_s24, 16, %s9190_s6, [#allocation5]  }
 0x918   :  { %7555 = dma.done.wait [#allocation5], 16  }
 0x919   :  { %7556 = vsyncadd [#allocation5], 4294967280 }
 0x91a   :  { %5621 = vsyncpa [#allocation4], 1 }
 0x91b   :  { %5622 = vsyncpa [#allocation5], 1 }

</bundles_post_ra>
